<compile_context>
chip_gen: v7x
topology: tpu7x:2x2x1
jax: 0.10.0
libtpu: 0.0.40
codegen_flags: <defaults>
</compile_context>

<pallas_src>
import functools

import jax
import jax.numpy as jnp
from jax import lax
from jax.experimental import pallas as pl
from jax.experimental.pallas import tpu as pltpu

LANE = 128  # stored channel width for h / block output -> lane-dense vst


# ------------------------------ Pallas kernel ------------------------------ #
def _fused_backbone_kernel(H, W, nf,
                           x_ref, w1_ref, b1_ref, w2_ref, b2_ref,
                           w3_ref, b3_ref, o_ref):
    """conv1+bn1+relu -> BasicBlock(conv/bn/relu, conv/bn, +id, relu), fused.

    x_ref  : (B, H*W, Cin)  f32   B images, row r = h*W + w (NHWC flattened)
    w*_ref : (9, Cin_l, Cout_l) bf16  BN-folded weights, tap t = kh*3 + kw
    b*_ref : (1, Cout_l)    f32   BN-folded biases
    o_ref  : (B, H*W, LANE) f32   block output, channels zero-padded to LANE
    """
    HW = H * W
    B = x_ref.shape[0]
    M = B * HW

    # --- index planes & per-tap boundary masks: built once, reused by all 3
    # convs.  Indices are modular per image so batch-stacked rolls never read
    # across image boundaries (wrapped rows are masked to zero = SAME pad).
    r = lax.broadcasted_iota(jnp.int32, (M, 1), 0)
    ri = lax.rem(r, HW)                       # row index within one image
    ci = lax.rem(ri, W)                       # column index within one row
    col_ok = (ci >= 1, ci >= 0, ci <= W - 2)  # dx = -1, 0, +1
    row_ok = (ri >= W, ri >= 0, ri < HW - W)  # dy = -1, 0, +1
    tap_mask = [
        jnp.where(jnp.logical_and(row_ok[kh], col_ok[kw]), 1.0, 0.0)
        for kh in range(3) for kw in range(3)
    ]                                          # 9 x (M, 1) f32

    def conv3x3(x2d, w_ref, b_ref):
        """SAME 3x3 / stride-1 conv: 8 XLU rolls + masks, 9 bf16 MXU matmuls
        accumulated in a straight chain into one f32 acc."""
        acc = None
        for kh in range(3):
            for kw in range(3):
                t = kh * 3 + kw
                s = (kh - 1) * W + (kw - 1)          # source row offset
                # shifted[i] = x2d[i + s]  (mod M; wrapped rows masked below)
                shifted = pltpu.roll(x2d, (-s) % M, axis=0) if s != 0 else x2d
                piece = (shifted * tap_mask[t]).astype(jnp.bfloat16)
                d = jnp.dot(piece, w_ref[t], preferred_element_type=jnp.float32)
                acc = d if acc is None else acc + d
        return acc + b_ref[...]                       # (M, Cout) f32

    x = x_ref[...].reshape(M, x_ref.shape[2]).astype(jnp.float32)   # (M, Cin)
    h = jnp.maximum(conv3x3(x, w1_ref, b1_ref), 0.0)                # (M, LANE)
    y = jnp.maximum(conv3x3(h[:, :nf], w2_ref, b2_ref), 0.0)        # (M, nf)
    z = jnp.maximum(conv3x3(y, w3_ref, b3_ref) + h, 0.0)            # (M, LANE)
    o_ref[...] = z.reshape(B, HW, LANE)                             # lane-dense


# ------------------------------- JAX wrapper -------------------------------- #
def _fold_bn_into_conv(w_oihw, bn, eps=1e-5):
    """Fold inference-mode BN into conv weight/bias; (3,3,Cin,Cout), (Cout,)."""
    scale = bn["gamma"] * lax.rsqrt(bn["var"] + eps)
    bias = bn["beta"] - bn["mean"] * scale
    w = jnp.transpose(w_oihw, (2, 3, 1, 0)) * scale   # (kh, kw, cin, cout)
    return w.astype(jnp.float32), bias.astype(jnp.float32)


def _prep_conv(w_oihw, bn, pad_cout_to=None):
    """BN-fold, optional Cout zero-pad, reshape to (9, Cin, Cout) bf16 taps."""
    w, b = _fold_bn_into_conv(w_oihw, bn)
    kh, kw, cin, cout = w.shape
    if pad_cout_to is not None and pad_cout_to > cout:
        w = jnp.pad(w, ((0, 0), (0, 0), (0, 0), (0, pad_cout_to - cout)))
        b = jnp.pad(b, ((0, pad_cout_to - cout),))
    w = w.reshape(kh * kw, cin, w.shape[-1]).astype(jnp.bfloat16)
    return w, b[None, :].astype(jnp.float32)


def feature_extractor_backbone_forward(x_nchw, params, *, b_tile=None):
    """Equivalent of FeatureExtractorBackbone(model, "layer1")(x)."""
    N, Cin, H, W = x_nchw.shape
    nf = params["conv1_w"].shape[0]
    HW = H * W
    assert H >= 2 and W >= 2, "3x3 SAME-pad boundary masks assume H, W >= 2"
    assert nf <= LANE and HW % 8 == 0

    if b_tile is None:
        # >= 2 grid steps when possible (both v7x TCs busy), M grows with batch.
        b_tile = max(1, N // 2)
        while N % b_tile:
            b_tile -= 1
        b_tile = min(b_tile, 8)
    assert N % b_tile == 0

    x2d = jnp.transpose(x_nchw, (0, 2, 3, 1)).astype(jnp.float32).reshape(N, HW, Cin)

    w1, b1 = _prep_conv(params["conv1_w"], params["bn1"], pad_cout_to=LANE)
    w2, b2 = _prep_conv(params["l1_conv1_w"], params["l1_bn1"])        # K, Cout = nf
    w3, b3 = _prep_conv(params["l1_conv2_w"], params["l1_bn2"], pad_cout_to=LANE)

    kernel = functools.partial(_fused_backbone_kernel, H, W, nf)
    out = pl.pallas_call(
        kernel,
        out_shape=jax.ShapeDtypeStruct((N, HW, LANE), jnp.float32),
        grid_spec=pltpu.PrefetchScalarGridSpec(
            num_scalar_prefetch=0,
            grid=(N // b_tile,),
            in_specs=[
                pl.BlockSpec((b_tile, HW, Cin), lambda n: (n, 0, 0)),
                pl.BlockSpec(w1.shape, lambda n: (0, 0, 0)),
                pl.BlockSpec(b1.shape, lambda n: (0, 0)),
                pl.BlockSpec(w2.shape, lambda n: (0, 0, 0)),
                pl.BlockSpec(b2.shape, lambda n: (0, 0)),
                pl.BlockSpec(w3.shape, lambda n: (0, 0, 0)),
                pl.BlockSpec(b3.shape, lambda n: (0, 0)),
            ],
            out_specs=pl.BlockSpec((b_tile, HW, LANE), lambda n: (n, 0, 0)),
        ),
        compiler_params=pltpu.CompilerParams(
            dimension_semantics=("parallel",),
            vmem_limit_bytes=48 * 1024 * 1024,   # safe on v7x's 64 MiB physical
        ),
    )(x2d, w1, b1, w2, b2, w3, b3)

    block_out = out[:, :, :nf].reshape(N, H, W, nf)       # drop channel padding
    hooked = jnp.transpose(block_out, (0, 3, 1, 2))        # NHWC -> NCHW

    # Remainder of model.forward (avgpool + linear), mirroring `self.model(x)`.
    # Its result is discarded by the hook-based extractor (XLA will DCE it).
    pooled = block_out.mean(axis=(1, 2))
    _logits = pooled @ params["fc_w"].T + params["fc_b"]

    return hooked


# ---------------------------- pure-JAX reference ---------------------------- #
def _ref_conv_bn_relu(x_nhwc, w_oihw, bn, residual_nhwc=None, eps=1e-5):
    w_hwio = jnp.transpose(w_oihw, (2, 3, 1, 0))
    y = lax.conv_general_dilated(x_nhwc, w_hwio, (1, 1), "SAME",
                                 dimension_numbers=("NHWC", "HWIO", "NHWC"),
                                 precision=lax.Precision.HIGHEST)
    scale = bn["gamma"] * lax.rsqrt(bn["var"] + eps)
    shift = bn["beta"] - bn["mean"] * scale
    y = y * scale + shift
    if residual_nhwc is not None:
        y = y + residual_nhwc
    return jnp.maximum(y, 0.0)


def _reference(x_nchw, params):
    x = jnp.transpose(x_nchw, (0, 2, 3, 1)).astype(jnp.float32)
    h = _ref_conv_bn_relu(x, params["conv1_w"], params["bn1"])
    y = _ref_conv_bn_relu(h, params["l1_conv1_w"], params["l1_bn1"])
    block_out = _ref_conv_bn_relu(y, params["l1_conv2_w"], params["l1_bn2"],
                                  residual_nhwc=h)
    return jnp.transpose(block_out, (0, 3, 1, 2))


# -------------------------------- param init -------------------------------- #
def _make_bn(key, c):
    k1, k2, k3, k4 = jax.random.split(key, 4)
    return {
        "gamma": jax.random.uniform(k1, (c,), jnp.float32, 0.5, 1.5),
        "beta": 0.1 * jax.random.normal(k2, (c,), jnp.float32),
        "mean": 0.1 * jax.random.normal(k3, (c,), jnp.float32),
        "var": jax.random.uniform(k4, (c,), jnp.float32, 0.5, 1.5),
    }


def init_params(key, c_in=3, nf=16, num_classes=10):
    ks = jax.random.split(key, 8)
    return {
        "conv1_w": 0.1 * jax.random.normal(ks[0], (nf, c_in, 3, 3), jnp.float32),
        "bn1": _make_bn(ks[1], nf),
        "l1_conv1_w": 0.1 * jax.random.normal(ks[2], (nf, nf, 3, 3), jnp.float32),
        "l1_bn1": _make_bn(ks[3], nf),
        "l1_conv2_w": 0.1 * jax.random.normal(ks[4], (nf, nf, 3, 3), jnp.float32),
        "l1_bn2": _make_bn(ks[5], nf),
        "fc_w": 0.1 * jax.random.normal(ks[6], (num_classes, nf), jnp.float32),
        "fc_b": jnp.zeros((num_classes,), jnp.float32),
    }


if __name__ == "__main__":
    key = jax.random.PRNGKey(0)
    k_x, k_p = jax.random.split(key)
    # small shapes: batch=2, in_channels=3, spatial=16x16 (NCHW, PyTorch style)
    x = jax.random.normal(k_x, (2, 3, 16, 16), jnp.float32)
    params = init_params(k_p)

    feat = jax.jit(feature_extractor_backbone_forward)(x, params)
    feat = jax.block_until_ready(feat)

    ref = _reference(x, params)
    assert feat.shape == ref.shape == (2, 16, 16, 16), feat.shape
    # Tolerance: matmul operands are bf16 (single-pass MXU, ~2^-9 relative
    # rounding) and the error compounds across three chained 3x3 convolutions,
    # so the expected worst-case deviation vs. the f32 HIGHEST-precision XLA
    # reference is a few 1e-2 absolute / ~1% relative.
    err = float(jnp.max(jnp.abs(feat - ref)))
    assert jnp.allclose(feat, ref, atol=4e-2, rtol=4e-2), f"max_abs_err={err}"
    print("KERNEL_OK")
</pallas_src>

<mosaic_0001>
module attributes {stable_mosaic.version = 11 : i64} {
  func.func @_fused_backbone_kernel(%arg0: i32, %arg1: memref<1x256x3xf32, #tpu.memory_space<vmem>>, %arg2: memref<9x3x128xbf16, #tpu.memory_space<vmem>>, %arg3: memref<1x128xf32, #tpu.memory_space<vmem>>, %arg4: memref<9x16x16xbf16, #tpu.memory_space<vmem>>, %arg5: memref<1x16xf32, #tpu.memory_space<vmem>>, %arg6: memref<9x16x128xbf16, #tpu.memory_space<vmem>>, %arg7: memref<1x128xf32, #tpu.memory_space<vmem>>, %arg8: memref<1x256x128xf32, #tpu.memory_space<vmem>>) attributes {dimension_semantics = [#tpu.dimension_semantics<parallel>], iteration_bounds = array<i64: 2>, scalar_prefetch = 0 : i64, scratch_operands = 0 : i64, tpu.core_type = #tpu.core_type<tc>, window_params = [{transform_indices = @transform_0, window_bounds = array<i64: 1, 256, 3>}, {pipeline_mode = #tpu.pipeline_mode<synchronous>, transform_indices = @transform_1, window_bounds = array<i64: 9, 3, 128>}, {pipeline_mode = #tpu.pipeline_mode<synchronous>, transform_indices = @transform_2, window_bounds = array<i64: 1, 128>}, {pipeline_mode = #tpu.pipeline_mode<synchronous>, transform_indices = @transform_3, window_bounds = array<i64: 9, 16, 16>}, {pipeline_mode = #tpu.pipeline_mode<synchronous>, transform_indices = @transform_4, window_bounds = array<i64: 1, 16>}, {pipeline_mode = #tpu.pipeline_mode<synchronous>, transform_indices = @transform_5, window_bounds = array<i64: 9, 16, 128>}, {pipeline_mode = #tpu.pipeline_mode<synchronous>, transform_indices = @transform_6, window_bounds = array<i64: 1, 128>}, {transform_indices = @transform_7, window_bounds = array<i64: 1, 256, 128>}]} {
    %0 = tpu.iota {dimensions = array<i32: 0>} : vector<256x1xi32>
    %c256_i32 = arith.constant 256 : i32
    %1 = vector.broadcast %c256_i32 : i32 to vector<256x1xi32>
    %2 = arith.remsi %0, %1 : vector<256x1xi32>
    %c16_i32 = arith.constant 16 : i32
    %3 = vector.broadcast %c16_i32 : i32 to vector<256x1xi32>
    %4 = arith.remsi %2, %3 : vector<256x1xi32>
    %c1_i32 = arith.constant 1 : i32
    %5 = vector.broadcast %c1_i32 : i32 to vector<256x1xi32>
    %6 = arith.cmpi sge, %4, %5 : vector<256x1xi32>
    %c0_i32 = arith.constant 0 : i32
    %7 = vector.broadcast %c0_i32 : i32 to vector<256x1xi32>
    %8 = arith.cmpi sge, %4, %7 : vector<256x1xi32>
    %c14_i32 = arith.constant 14 : i32
    %9 = vector.broadcast %c14_i32 : i32 to vector<256x1xi32>
    %10 = arith.cmpi sle, %4, %9 : vector<256x1xi32>
    %c16_i32_0 = arith.constant 16 : i32
    %11 = vector.broadcast %c16_i32_0 : i32 to vector<256x1xi32>
    %12 = arith.cmpi sge, %2, %11 : vector<256x1xi32>
    %c0_i32_1 = arith.constant 0 : i32
    %13 = vector.broadcast %c0_i32_1 : i32 to vector<256x1xi32>
    %14 = arith.cmpi sge, %2, %13 : vector<256x1xi32>
    %c240_i32 = arith.constant 240 : i32
    %15 = vector.broadcast %c240_i32 : i32 to vector<256x1xi32>
    %16 = arith.cmpi slt, %2, %15 : vector<256x1xi32>
    %17 = arith.andi %12, %6 : vector<256x1xi1>
    %cst = arith.constant 1.000000e+00 : f32
    %cst_2 = arith.constant 0.000000e+00 : f32
    %18 = vector.broadcast %cst : f32 to vector<256x1xf32>
    %19 = vector.broadcast %cst_2 : f32 to vector<256x1xf32>
    %20 = arith.select %17, %18, %19 : vector<256x1xi1>, vector<256x1xf32>
    %21 = arith.andi %12, %8 : vector<256x1xi1>
    %cst_3 = arith.constant 1.000000e+00 : f32
    %cst_4 = arith.constant 0.000000e+00 : f32
    %22 = vector.broadcast %cst_3 : f32 to vector<256x1xf32>
    %23 = vector.broadcast %cst_4 : f32 to vector<256x1xf32>
    %24 = arith.select %21, %22, %23 : vector<256x1xi1>, vector<256x1xf32>
    %25 = arith.andi %12, %10 : vector<256x1xi1>
    %cst_5 = arith.constant 1.000000e+00 : f32
    %cst_6 = arith.constant 0.000000e+00 : f32
    %26 = vector.broadcast %cst_5 : f32 to vector<256x1xf32>
    %27 = vector.broadcast %cst_6 : f32 to vector<256x1xf32>
    %28 = arith.select %25, %26, %27 : vector<256x1xi1>, vector<256x1xf32>
    %29 = arith.andi %14, %6 : vector<256x1xi1>
    %cst_7 = arith.constant 1.000000e+00 : f32
    %cst_8 = arith.constant 0.000000e+00 : f32
    %30 = vector.broadcast %cst_7 : f32 to vector<256x1xf32>
    %31 = vector.broadcast %cst_8 : f32 to vector<256x1xf32>
    %32 = arith.select %29, %30, %31 : vector<256x1xi1>, vector<256x1xf32>
    %33 = arith.andi %14, %8 : vector<256x1xi1>
    %cst_9 = arith.constant 1.000000e+00 : f32
    %cst_10 = arith.constant 0.000000e+00 : f32
    %34 = vector.broadcast %cst_9 : f32 to vector<256x1xf32>
    %35 = vector.broadcast %cst_10 : f32 to vector<256x1xf32>
    %36 = arith.select %33, %34, %35 : vector<256x1xi1>, vector<256x1xf32>
    %37 = arith.andi %14, %10 : vector<256x1xi1>
    %cst_11 = arith.constant 1.000000e+00 : f32
    %cst_12 = arith.constant 0.000000e+00 : f32
    %38 = vector.broadcast %cst_11 : f32 to vector<256x1xf32>
    %39 = vector.broadcast %cst_12 : f32 to vector<256x1xf32>
    %40 = arith.select %37, %38, %39 : vector<256x1xi1>, vector<256x1xf32>
    %41 = arith.andi %16, %6 : vector<256x1xi1>
    %cst_13 = arith.constant 1.000000e+00 : f32
    %cst_14 = arith.constant 0.000000e+00 : f32
    %42 = vector.broadcast %cst_13 : f32 to vector<256x1xf32>
    %43 = vector.broadcast %cst_14 : f32 to vector<256x1xf32>
    %44 = arith.select %41, %42, %43 : vector<256x1xi1>, vector<256x1xf32>
    %45 = arith.andi %16, %8 : vector<256x1xi1>
    %cst_15 = arith.constant 1.000000e+00 : f32
    %cst_16 = arith.constant 0.000000e+00 : f32
    %46 = vector.broadcast %cst_15 : f32 to vector<256x1xf32>
    %47 = vector.broadcast %cst_16 : f32 to vector<256x1xf32>
    %48 = arith.select %45, %46, %47 : vector<256x1xi1>, vector<256x1xf32>
    %49 = arith.andi %16, %10 : vector<256x1xi1>
    %cst_17 = arith.constant 1.000000e+00 : f32
    %cst_18 = arith.constant 0.000000e+00 : f32
    %50 = vector.broadcast %cst_17 : f32 to vector<256x1xf32>
    %51 = vector.broadcast %cst_18 : f32 to vector<256x1xf32>
    %52 = arith.select %49, %50, %51 : vector<256x1xi1>, vector<256x1xf32>
    %c0 = arith.constant 0 : index
    %c0_19 = arith.constant 0 : index
    %c0_20 = arith.constant 0 : index
    %53 = vector.load %arg1[%c0, %c0_19, %c0_20] : memref<1x256x3xf32, #tpu.memory_space<vmem>>, vector<1x256x3xf32>
    %54 = vector.shape_cast %53 : vector<1x256x3xf32> to vector<256x3xf32>
    %c17_i32 = arith.constant 17 : i32
    %55 = tpu.dynamic_rotate %54 by %c17_i32 dim 0 : vector<256x3xf32>, i32 -> vector<256x3xf32>
    %56 = vector.broadcast %20 : vector<256x1xf32> to vector<256x3xf32>
    %57 = arith.mulf %55, %56 : vector<256x3xf32>
    %58 = arith.truncf %57 : vector<256x3xf32> to vector<256x3xbf16>
    %c0_21 = arith.constant 0 : index
    %c0_22 = arith.constant 0 : index
    %c0_23 = arith.constant 0 : index
    %59 = vector.load %arg2[%c0_21, %c0_22, %c0_23] : memref<9x3x128xbf16, #tpu.memory_space<vmem>>, vector<1x3x128xbf16>
    %60 = vector.shape_cast %59 : vector<1x3x128xbf16> to vector<3x128xbf16>
    %cst_24 = arith.constant dense<0.000000e+00> : vector<256x128xf32>
    %61 = tpu.matmul %58, %60, %cst_24 {dimension_numbers = #tpu.dot_dimension_numbers<[1], [0], [0], [1], [0, 0, 1, 1], [], []>} : vector<256x3xbf16>, vector<3x128xbf16>, vector<256x128xf32> -> vector<256x128xf32>
    %c16_i32_25 = arith.constant 16 : i32
    %62 = tpu.dynamic_rotate %54 by %c16_i32_25 dim 0 : vector<256x3xf32>, i32 -> vector<256x3xf32>
    %63 = vector.broadcast %24 : vector<256x1xf32> to vector<256x3xf32>
    %64 = arith.mulf %62, %63 : vector<256x3xf32>
    %65 = arith.truncf %64 : vector<256x3xf32> to vector<256x3xbf16>
    %c1 = arith.constant 1 : index
    %c0_26 = arith.constant 0 : index
    %c0_27 = arith.constant 0 : index
    %66 = vector.load %arg2[%c1, %c0_26, %c0_27] : memref<9x3x128xbf16, #tpu.memory_space<vmem>>, vector<1x3x128xbf16>
    %67 = vector.shape_cast %66 : vector<1x3x128xbf16> to vector<3x128xbf16>
    %cst_28 = arith.constant dense<0.000000e+00> : vector<256x128xf32>
    %68 = tpu.matmul %65, %67, %cst_28 {dimension_numbers = #tpu.dot_dimension_numbers<[1], [0], [0], [1], [0, 0, 1, 1], [], []>} : vector<256x3xbf16>, vector<3x128xbf16>, vector<256x128xf32> -> vector<256x128xf32>
    %69 = arith.addf %61, %68 : vector<256x128xf32>
    %c15_i32 = arith.constant 15 : i32
    %70 = tpu.dynamic_rotate %54 by %c15_i32 dim 0 : vector<256x3xf32>, i32 -> vector<256x3xf32>
    %71 = vector.broadcast %28 : vector<256x1xf32> to vector<256x3xf32>
    %72 = arith.mulf %70, %71 : vector<256x3xf32>
    %73 = arith.truncf %72 : vector<256x3xf32> to vector<256x3xbf16>
    %c2 = arith.constant 2 : index
    %c0_29 = arith.constant 0 : index
    %c0_30 = arith.constant 0 : index
    %74 = vector.load %arg2[%c2, %c0_29, %c0_30] : memref<9x3x128xbf16, #tpu.memory_space<vmem>>, vector<1x3x128xbf16>
    %75 = vector.shape_cast %74 : vector<1x3x128xbf16> to vector<3x128xbf16>
    %cst_31 = arith.constant dense<0.000000e+00> : vector<256x128xf32>
    %76 = tpu.matmul %73, %75, %cst_31 {dimension_numbers = #tpu.dot_dimension_numbers<[1], [0], [0], [1], [0, 0, 1, 1], [], []>} : vector<256x3xbf16>, vector<3x128xbf16>, vector<256x128xf32> -> vector<256x128xf32>
    %77 = arith.addf %69, %76 : vector<256x128xf32>
    %c1_i32_32 = arith.constant 1 : i32
    %78 = tpu.dynamic_rotate %54 by %c1_i32_32 dim 0 : vector<256x3xf32>, i32 -> vector<256x3xf32>
    %79 = vector.broadcast %32 : vector<256x1xf32> to vector<256x3xf32>
    %80 = arith.mulf %78, %79 : vector<256x3xf32>
    %81 = arith.truncf %80 : vector<256x3xf32> to vector<256x3xbf16>
    %c3 = arith.constant 3 : index
    %c0_33 = arith.constant 0 : index
    %c0_34 = arith.constant 0 : index
    %82 = vector.load %arg2[%c3, %c0_33, %c0_34] : memref<9x3x128xbf16, #tpu.memory_space<vmem>>, vector<1x3x128xbf16>
    %83 = vector.shape_cast %82 : vector<1x3x128xbf16> to vector<3x128xbf16>
    %cst_35 = arith.constant dense<0.000000e+00> : vector<256x128xf32>
    %84 = tpu.matmul %81, %83, %cst_35 {dimension_numbers = #tpu.dot_dimension_numbers<[1], [0], [0], [1], [0, 0, 1, 1], [], []>} : vector<256x3xbf16>, vector<3x128xbf16>, vector<256x128xf32> -> vector<256x128xf32>
    %85 = arith.addf %77, %84 : vector<256x128xf32>
    %86 = vector.broadcast %36 : vector<256x1xf32> to vector<256x3xf32>
    %87 = arith.mulf %54, %86 : vector<256x3xf32>
    %88 = arith.truncf %87 : vector<256x3xf32> to vector<256x3xbf16>
    %c4 = arith.constant 4 : index
    %c0_36 = arith.constant 0 : index
    %c0_37 = arith.constant 0 : index
    %89 = vector.load %arg2[%c4, %c0_36, %c0_37] : memref<9x3x128xbf16, #tpu.memory_space<vmem>>, vector<1x3x128xbf16>
    %90 = vector.shape_cast %89 : vector<1x3x128xbf16> to vector<3x128xbf16>
    %cst_38 = arith.constant dense<0.000000e+00> : vector<256x128xf32>
    %91 = tpu.matmul %88, %90, %cst_38 {dimension_numbers = #tpu.dot_dimension_numbers<[1], [0], [0], [1], [0, 0, 1, 1], [], []>} : vector<256x3xbf16>, vector<3x128xbf16>, vector<256x128xf32> -> vector<256x128xf32>
    %92 = arith.addf %85, %91 : vector<256x128xf32>
    %c255_i32 = arith.constant 255 : i32
    %93 = tpu.dynamic_rotate %54 by %c255_i32 dim 0 : vector<256x3xf32>, i32 -> vector<256x3xf32>
    %94 = vector.broadcast %40 : vector<256x1xf32> to vector<256x3xf32>
    %95 = arith.mulf %93, %94 : vector<256x3xf32>
    %96 = arith.truncf %95 : vector<256x3xf32> to vector<256x3xbf16>
    %c5 = arith.constant 5 : index
    %c0_39 = arith.constant 0 : index
    %c0_40 = arith.constant 0 : index
    %97 = vector.load %arg2[%c5, %c0_39, %c0_40] : memref<9x3x128xbf16, #tpu.memory_space<vmem>>, vector<1x3x128xbf16>
    %98 = vector.shape_cast %97 : vector<1x3x128xbf16> to vector<3x128xbf16>
    %cst_41 = arith.constant dense<0.000000e+00> : vector<256x128xf32>
    %99 = tpu.matmul %96, %98, %cst_41 {dimension_numbers = #tpu.dot_dimension_numbers<[1], [0], [0], [1], [0, 0, 1, 1], [], []>} : vector<256x3xbf16>, vector<3x128xbf16>, vector<256x128xf32> -> vector<256x128xf32>
    %100 = arith.addf %92, %99 : vector<256x128xf32>
    %c241_i32 = arith.constant 241 : i32
    %101 = tpu.dynamic_rotate %54 by %c241_i32 dim 0 : vector<256x3xf32>, i32 -> vector<256x3xf32>
    %102 = vector.broadcast %44 : vector<256x1xf32> to vector<256x3xf32>
    %103 = arith.mulf %101, %102 : vector<256x3xf32>
    %104 = arith.truncf %103 : vector<256x3xf32> to vector<256x3xbf16>
    %c6 = arith.constant 6 : index
    %c0_42 = arith.constant 0 : index
    %c0_43 = arith.constant 0 : index
    %105 = vector.load %arg2[%c6, %c0_42, %c0_43] : memref<9x3x128xbf16, #tpu.memory_space<vmem>>, vector<1x3x128xbf16>
    %106 = vector.shape_cast %105 : vector<1x3x128xbf16> to vector<3x128xbf16>
    %cst_44 = arith.constant dense<0.000000e+00> : vector<256x128xf32>
    %107 = tpu.matmul %104, %106, %cst_44 {dimension_numbers = #tpu.dot_dimension_numbers<[1], [0], [0], [1], [0, 0, 1, 1], [], []>} : vector<256x3xbf16>, vector<3x128xbf16>, vector<256x128xf32> -> vector<256x128xf32>
    %108 = arith.addf %100, %107 : vector<256x128xf32>
    %c240_i32_45 = arith.constant 240 : i32
    %109 = tpu.dynamic_rotate %54 by %c240_i32_45 dim 0 : vector<256x3xf32>, i32 -> vector<256x3xf32>
    %110 = vector.broadcast %48 : vector<256x1xf32> to vector<256x3xf32>
    %111 = arith.mulf %109, %110 : vector<256x3xf32>
    %112 = arith.truncf %111 : vector<256x3xf32> to vector<256x3xbf16>
    %c7 = arith.constant 7 : index
    %c0_46 = arith.constant 0 : index
    %c0_47 = arith.constant 0 : index
    %113 = vector.load %arg2[%c7, %c0_46, %c0_47] : memref<9x3x128xbf16, #tpu.memory_space<vmem>>, vector<1x3x128xbf16>
    %114 = vector.shape_cast %113 : vector<1x3x128xbf16> to vector<3x128xbf16>
    %cst_48 = arith.constant dense<0.000000e+00> : vector<256x128xf32>
    %115 = tpu.matmul %112, %114, %cst_48 {dimension_numbers = #tpu.dot_dimension_numbers<[1], [0], [0], [1], [0, 0, 1, 1], [], []>} : vector<256x3xbf16>, vector<3x128xbf16>, vector<256x128xf32> -> vector<256x128xf32>
    %116 = arith.addf %108, %115 : vector<256x128xf32>
    %c239_i32 = arith.constant 239 : i32
    %117 = tpu.dynamic_rotate %54 by %c239_i32 dim 0 : vector<256x3xf32>, i32 -> vector<256x3xf32>
    %118 = vector.broadcast %52 : vector<256x1xf32> to vector<256x3xf32>
    %119 = arith.mulf %117, %118 : vector<256x3xf32>
    %120 = arith.truncf %119 : vector<256x3xf32> to vector<256x3xbf16>
    %c8 = arith.constant 8 : index
    %c0_49 = arith.constant 0 : index
    %c0_50 = arith.constant 0 : index
    %121 = vector.load %arg2[%c8, %c0_49, %c0_50] : memref<9x3x128xbf16, #tpu.memory_space<vmem>>, vector<1x3x128xbf16>
    %122 = vector.shape_cast %121 : vector<1x3x128xbf16> to vector<3x128xbf16>
    %cst_51 = arith.constant dense<0.000000e+00> : vector<256x128xf32>
    %123 = tpu.matmul %120, %122, %cst_51 {dimension_numbers = #tpu.dot_dimension_numbers<[1], [0], [0], [1], [0, 0, 1, 1], [], []>} : vector<256x3xbf16>, vector<3x128xbf16>, vector<256x128xf32> -> vector<256x128xf32>
    %124 = arith.addf %116, %123 : vector<256x128xf32>
    %c0_52 = arith.constant 0 : index
    %c0_53 = arith.constant 0 : index
    %125 = vector.load %arg3[%c0_52, %c0_53] : memref<1x128xf32, #tpu.memory_space<vmem>>, vector<1x128xf32>
    %126 = vector.broadcast %125 : vector<1x128xf32> to vector<256x128xf32>
    %127 = arith.addf %124, %126 : vector<256x128xf32>
    %cst_54 = arith.constant 0.000000e+00 : f32
    %128 = vector.broadcast %cst_54 : f32 to vector<256x128xf32>
    %129 = arith.maximumf %127, %128 : vector<256x128xf32>
    %130 = vector.extract_strided_slice %129 {offsets = [0, 0], sizes = [256, 16], strides = [1, 1]} : vector<256x128xf32> to vector<256x16xf32>
    %c17_i32_55 = arith.constant 17 : i32
    %131 = tpu.dynamic_rotate %130 by %c17_i32_55 dim 0 : vector<256x16xf32>, i32 -> vector<256x16xf32>
    %132 = vector.broadcast %20 : vector<256x1xf32> to vector<256x16xf32>
    %133 = arith.mulf %131, %132 : vector<256x16xf32>
    %134 = arith.truncf %133 : vector<256x16xf32> to vector<256x16xbf16>
    %c0_56 = arith.constant 0 : index
    %c0_57 = arith.constant 0 : index
    %c0_58 = arith.constant 0 : index
    %135 = vector.load %arg4[%c0_56, %c0_57, %c0_58] : memref<9x16x16xbf16, #tpu.memory_space<vmem>>, vector<1x16x16xbf16>
    %136 = vector.shape_cast %135 : vector<1x16x16xbf16> to vector<16x16xbf16>
    %cst_59 = arith.constant dense<0.000000e+00> : vector<256x16xf32>
    %137 = tpu.matmul %134, %136, %cst_59 {dimension_numbers = #tpu.dot_dimension_numbers<[1], [0], [0], [1], [0, 0, 1, 1], [], []>} : vector<256x16xbf16>, vector<16x16xbf16>, vector<256x16xf32> -> vector<256x16xf32>
    %c16_i32_60 = arith.constant 16 : i32
    %138 = tpu.dynamic_rotate %130 by %c16_i32_60 dim 0 : vector<256x16xf32>, i32 -> vector<256x16xf32>
    %139 = vector.broadcast %24 : vector<256x1xf32> to vector<256x16xf32>
    %140 = arith.mulf %138, %139 : vector<256x16xf32>
    %141 = arith.truncf %140 : vector<256x16xf32> to vector<256x16xbf16>
    %c1_61 = arith.constant 1 : index
    %c0_62 = arith.constant 0 : index
    %c0_63 = arith.constant 0 : index
    %142 = vector.load %arg4[%c1_61, %c0_62, %c0_63] : memref<9x16x16xbf16, #tpu.memory_space<vmem>>, vector<1x16x16xbf16>
    %143 = vector.shape_cast %142 : vector<1x16x16xbf16> to vector<16x16xbf16>
    %cst_64 = arith.constant dense<0.000000e+00> : vector<256x16xf32>
    %144 = tpu.matmul %141, %143, %cst_64 {dimension_numbers = #tpu.dot_dimension_numbers<[1], [0], [0], [1], [0, 0, 1, 1], [], []>} : vector<256x16xbf16>, vector<16x16xbf16>, vector<256x16xf32> -> vector<256x16xf32>
    %145 = arith.addf %137, %144 : vector<256x16xf32>
    %c15_i32_65 = arith.constant 15 : i32
    %146 = tpu.dynamic_rotate %130 by %c15_i32_65 dim 0 : vector<256x16xf32>, i32 -> vector<256x16xf32>
    %147 = vector.broadcast %28 : vector<256x1xf32> to vector<256x16xf32>
    %148 = arith.mulf %146, %147 : vector<256x16xf32>
    %149 = arith.truncf %148 : vector<256x16xf32> to vector<256x16xbf16>
    %c2_66 = arith.constant 2 : index
    %c0_67 = arith.constant 0 : index
    %c0_68 = arith.constant 0 : index
    %150 = vector.load %arg4[%c2_66, %c0_67, %c0_68] : memref<9x16x16xbf16, #tpu.memory_space<vmem>>, vector<1x16x16xbf16>
    %151 = vector.shape_cast %150 : vector<1x16x16xbf16> to vector<16x16xbf16>
    %cst_69 = arith.constant dense<0.000000e+00> : vector<256x16xf32>
    %152 = tpu.matmul %149, %151, %cst_69 {dimension_numbers = #tpu.dot_dimension_numbers<[1], [0], [0], [1], [0, 0, 1, 1], [], []>} : vector<256x16xbf16>, vector<16x16xbf16>, vector<256x16xf32> -> vector<256x16xf32>
    %153 = arith.addf %145, %152 : vector<256x16xf32>
    %c1_i32_70 = arith.constant 1 : i32
    %154 = tpu.dynamic_rotate %130 by %c1_i32_70 dim 0 : vector<256x16xf32>, i32 -> vector<256x16xf32>
    %155 = vector.broadcast %32 : vector<256x1xf32> to vector<256x16xf32>
    %156 = arith.mulf %154, %155 : vector<256x16xf32>
    %157 = arith.truncf %156 : vector<256x16xf32> to vector<256x16xbf16>
    %c3_71 = arith.constant 3 : index
    %c0_72 = arith.constant 0 : index
    %c0_73 = arith.constant 0 : index
    %158 = vector.load %arg4[%c3_71, %c0_72, %c0_73] : memref<9x16x16xbf16, #tpu.memory_space<vmem>>, vector<1x16x16xbf16>
    %159 = vector.shape_cast %158 : vector<1x16x16xbf16> to vector<16x16xbf16>
    %cst_74 = arith.constant dense<0.000000e+00> : vector<256x16xf32>
    %160 = tpu.matmul %157, %159, %cst_74 {dimension_numbers = #tpu.dot_dimension_numbers<[1], [0], [0], [1], [0, 0, 1, 1], [], []>} : vector<256x16xbf16>, vector<16x16xbf16>, vector<256x16xf32> -> vector<256x16xf32>
    %161 = arith.addf %153, %160 : vector<256x16xf32>
    %162 = vector.broadcast %36 : vector<256x1xf32> to vector<256x16xf32>
    %163 = arith.mulf %130, %162 : vector<256x16xf32>
    %164 = arith.truncf %163 : vector<256x16xf32> to vector<256x16xbf16>
    %c4_75 = arith.constant 4 : index
    %c0_76 = arith.constant 0 : index
    %c0_77 = arith.constant 0 : index
    %165 = vector.load %arg4[%c4_75, %c0_76, %c0_77] : memref<9x16x16xbf16, #tpu.memory_space<vmem>>, vector<1x16x16xbf16>
    %166 = vector.shape_cast %165 : vector<1x16x16xbf16> to vector<16x16xbf16>
    %cst_78 = arith.constant dense<0.000000e+00> : vector<256x16xf32>
    %167 = tpu.matmul %164, %166, %cst_78 {dimension_numbers = #tpu.dot_dimension_numbers<[1], [0], [0], [1], [0, 0, 1, 1], [], []>} : vector<256x16xbf16>, vector<16x16xbf16>, vector<256x16xf32> -> vector<256x16xf32>
    %168 = arith.addf %161, %167 : vector<256x16xf32>
    %c255_i32_79 = arith.constant 255 : i32
    %169 = tpu.dynamic_rotate %130 by %c255_i32_79 dim 0 : vector<256x16xf32>, i32 -> vector<256x16xf32>
    %170 = vector.broadcast %40 : vector<256x1xf32> to vector<256x16xf32>
    %171 = arith.mulf %169, %170 : vector<256x16xf32>
    %172 = arith.truncf %171 : vector<256x16xf32> to vector<256x16xbf16>
    %c5_80 = arith.constant 5 : index
    %c0_81 = arith.constant 0 : index
    %c0_82 = arith.constant 0 : index
    %173 = vector.load %arg4[%c5_80, %c0_81, %c0_82] : memref<9x16x16xbf16, #tpu.memory_space<vmem>>, vector<1x16x16xbf16>
    %174 = vector.shape_cast %173 : vector<1x16x16xbf16> to vector<16x16xbf16>
    %cst_83 = arith.constant dense<0.000000e+00> : vector<256x16xf32>
    %175 = tpu.matmul %172, %174, %cst_83 {dimension_numbers = #tpu.dot_dimension_numbers<[1], [0], [0], [1], [0, 0, 1, 1], [], []>} : vector<256x16xbf16>, vector<16x16xbf16>, vector<256x16xf32> -> vector<256x16xf32>
    %176 = arith.addf %168, %175 : vector<256x16xf32>
    %c241_i32_84 = arith.constant 241 : i32
    %177 = tpu.dynamic_rotate %130 by %c241_i32_84 dim 0 : vector<256x16xf32>, i32 -> vector<256x16xf32>
    %178 = vector.broadcast %44 : vector<256x1xf32> to vector<256x16xf32>
    %179 = arith.mulf %177, %178 : vector<256x16xf32>
    %180 = arith.truncf %179 : vector<256x16xf32> to vector<256x16xbf16>
    %c6_85 = arith.constant 6 : index
    %c0_86 = arith.constant 0 : index
    %c0_87 = arith.constant 0 : index
    %181 = vector.load %arg4[%c6_85, %c0_86, %c0_87] : memref<9x16x16xbf16, #tpu.memory_space<vmem>>, vector<1x16x16xbf16>
    %182 = vector.shape_cast %181 : vector<1x16x16xbf16> to vector<16x16xbf16>
    %cst_88 = arith.constant dense<0.000000e+00> : vector<256x16xf32>
    %183 = tpu.matmul %180, %182, %cst_88 {dimension_numbers = #tpu.dot_dimension_numbers<[1], [0], [0], [1], [0, 0, 1, 1], [], []>} : vector<256x16xbf16>, vector<16x16xbf16>, vector<256x16xf32> -> vector<256x16xf32>
    %184 = arith.addf %176, %183 : vector<256x16xf32>
    %c240_i32_89 = arith.constant 240 : i32
    %185 = tpu.dynamic_rotate %130 by %c240_i32_89 dim 0 : vector<256x16xf32>, i32 -> vector<256x16xf32>
    %186 = vector.broadcast %48 : vector<256x1xf32> to vector<256x16xf32>
    %187 = arith.mulf %185, %186 : vector<256x16xf32>
    %188 = arith.truncf %187 : vector<256x16xf32> to vector<256x16xbf16>
    %c7_90 = arith.constant 7 : index
    %c0_91 = arith.constant 0 : index
    %c0_92 = arith.constant 0 : index
    %189 = vector.load %arg4[%c7_90, %c0_91, %c0_92] : memref<9x16x16xbf16, #tpu.memory_space<vmem>>, vector<1x16x16xbf16>
    %190 = vector.shape_cast %189 : vector<1x16x16xbf16> to vector<16x16xbf16>
    %cst_93 = arith.constant dense<0.000000e+00> : vector<256x16xf32>
    %191 = tpu.matmul %188, %190, %cst_93 {dimension_numbers = #tpu.dot_dimension_numbers<[1], [0], [0], [1], [0, 0, 1, 1], [], []>} : vector<256x16xbf16>, vector<16x16xbf16>, vector<256x16xf32> -> vector<256x16xf32>
    %192 = arith.addf %184, %191 : vector<256x16xf32>
    %c239_i32_94 = arith.constant 239 : i32
    %193 = tpu.dynamic_rotate %130 by %c239_i32_94 dim 0 : vector<256x16xf32>, i32 -> vector<256x16xf32>
    %194 = vector.broadcast %52 : vector<256x1xf32> to vector<256x16xf32>
    %195 = arith.mulf %193, %194 : vector<256x16xf32>
    %196 = arith.truncf %195 : vector<256x16xf32> to vector<256x16xbf16>
    %c8_95 = arith.constant 8 : index
    %c0_96 = arith.constant 0 : index
    %c0_97 = arith.constant 0 : index
    %197 = vector.load %arg4[%c8_95, %c0_96, %c0_97] : memref<9x16x16xbf16, #tpu.memory_space<vmem>>, vector<1x16x16xbf16>
    %198 = vector.shape_cast %197 : vector<1x16x16xbf16> to vector<16x16xbf16>
    %cst_98 = arith.constant dense<0.000000e+00> : vector<256x16xf32>
    %199 = tpu.matmul %196, %198, %cst_98 {dimension_numbers = #tpu.dot_dimension_numbers<[1], [0], [0], [1], [0, 0, 1, 1], [], []>} : vector<256x16xbf16>, vector<16x16xbf16>, vector<256x16xf32> -> vector<256x16xf32>
    %200 = arith.addf %192, %199 : vector<256x16xf32>
    %c0_99 = arith.constant 0 : index
    %c0_100 = arith.constant 0 : index
    %201 = vector.load %arg5[%c0_99, %c0_100] : memref<1x16xf32, #tpu.memory_space<vmem>>, vector<1x16xf32>
    %202 = vector.broadcast %201 : vector<1x16xf32> to vector<256x16xf32>
    %203 = arith.addf %200, %202 : vector<256x16xf32>
    %cst_101 = arith.constant 0.000000e+00 : f32
    %204 = vector.broadcast %cst_101 : f32 to vector<256x16xf32>
    %205 = arith.maximumf %203, %204 : vector<256x16xf32>
    %c17_i32_102 = arith.constant 17 : i32
    %206 = tpu.dynamic_rotate %205 by %c17_i32_102 dim 0 : vector<256x16xf32>, i32 -> vector<256x16xf32>
    %207 = vector.broadcast %20 : vector<256x1xf32> to vector<256x16xf32>
    %208 = arith.mulf %206, %207 : vector<256x16xf32>
    %209 = arith.truncf %208 : vector<256x16xf32> to vector<256x16xbf16>
    %c0_103 = arith.constant 0 : index
    %c0_104 = arith.constant 0 : index
    %c0_105 = arith.constant 0 : index
    %210 = vector.load %arg6[%c0_103, %c0_104, %c0_105] : memref<9x16x128xbf16, #tpu.memory_space<vmem>>, vector<1x16x128xbf16>
    %211 = vector.shape_cast %210 : vector<1x16x128xbf16> to vector<16x128xbf16>
    %cst_106 = arith.constant dense<0.000000e+00> : vector<256x128xf32>
    %212 = tpu.matmul %209, %211, %cst_106 {dimension_numbers = #tpu.dot_dimension_numbers<[1], [0], [0], [1], [0, 0, 1, 1], [], []>} : vector<256x16xbf16>, vector<16x128xbf16>, vector<256x128xf32> -> vector<256x128xf32>
    %c16_i32_107 = arith.constant 16 : i32
    %213 = tpu.dynamic_rotate %205 by %c16_i32_107 dim 0 : vector<256x16xf32>, i32 -> vector<256x16xf32>
    %214 = vector.broadcast %24 : vector<256x1xf32> to vector<256x16xf32>
    %215 = arith.mulf %213, %214 : vector<256x16xf32>
    %216 = arith.truncf %215 : vector<256x16xf32> to vector<256x16xbf16>
    %c1_108 = arith.constant 1 : index
    %c0_109 = arith.constant 0 : index
    %c0_110 = arith.constant 0 : index
    %217 = vector.load %arg6[%c1_108, %c0_109, %c0_110] : memref<9x16x128xbf16, #tpu.memory_space<vmem>>, vector<1x16x128xbf16>
    %218 = vector.shape_cast %217 : vector<1x16x128xbf16> to vector<16x128xbf16>
    %cst_111 = arith.constant dense<0.000000e+00> : vector<256x128xf32>
    %219 = tpu.matmul %216, %218, %cst_111 {dimension_numbers = #tpu.dot_dimension_numbers<[1], [0], [0], [1], [0, 0, 1, 1], [], []>} : vector<256x16xbf16>, vector<16x128xbf16>, vector<256x128xf32> -> vector<256x128xf32>
    %220 = arith.addf %212, %219 : vector<256x128xf32>
    %c15_i32_112 = arith.constant 15 : i32
    %221 = tpu.dynamic_rotate %205 by %c15_i32_112 dim 0 : vector<256x16xf32>, i32 -> vector<256x16xf32>
    %222 = vector.broadcast %28 : vector<256x1xf32> to vector<256x16xf32>
    %223 = arith.mulf %221, %222 : vector<256x16xf32>
    %224 = arith.truncf %223 : vector<256x16xf32> to vector<256x16xbf16>
    %c2_113 = arith.constant 2 : index
    %c0_114 = arith.constant 0 : index
    %c0_115 = arith.constant 0 : index
    %225 = vector.load %arg6[%c2_113, %c0_114, %c0_115] : memref<9x16x128xbf16, #tpu.memory_space<vmem>>, vector<1x16x128xbf16>
    %226 = vector.shape_cast %225 : vector<1x16x128xbf16> to vector<16x128xbf16>
    %cst_116 = arith.constant dense<0.000000e+00> : vector<256x128xf32>
    %227 = tpu.matmul %224, %226, %cst_116 {dimension_numbers = #tpu.dot_dimension_numbers<[1], [0], [0], [1], [0, 0, 1, 1], [], []>} : vector<256x16xbf16>, vector<16x128xbf16>, vector<256x128xf32> -> vector<256x128xf32>
    %228 = arith.addf %220, %227 : vector<256x128xf32>
    %c1_i32_117 = arith.constant 1 : i32
    %229 = tpu.dynamic_rotate %205 by %c1_i32_117 dim 0 : vector<256x16xf32>, i32 -> vector<256x16xf32>
    %230 = vector.broadcast %32 : vector<256x1xf32> to vector<256x16xf32>
    %231 = arith.mulf %229, %230 : vector<256x16xf32>
    %232 = arith.truncf %231 : vector<256x16xf32> to vector<256x16xbf16>
    %c3_118 = arith.constant 3 : index
    %c0_119 = arith.constant 0 : index
    %c0_120 = arith.constant 0 : index
    %233 = vector.load %arg6[%c3_118, %c0_119, %c0_120] : memref<9x16x128xbf16, #tpu.memory_space<vmem>>, vector<1x16x128xbf16>
    %234 = vector.shape_cast %233 : vector<1x16x128xbf16> to vector<16x128xbf16>
    %cst_121 = arith.constant dense<0.000000e+00> : vector<256x128xf32>
    %235 = tpu.matmul %232, %234, %cst_121 {dimension_numbers = #tpu.dot_dimension_numbers<[1], [0], [0], [1], [0, 0, 1, 1], [], []>} : vector<256x16xbf16>, vector<16x128xbf16>, vector<256x128xf32> -> vector<256x128xf32>
    %236 = arith.addf %228, %235 : vector<256x128xf32>
    %237 = vector.broadcast %36 : vector<256x1xf32> to vector<256x16xf32>
    %238 = arith.mulf %205, %237 : vector<256x16xf32>
    %239 = arith.truncf %238 : vector<256x16xf32> to vector<256x16xbf16>
    %c4_122 = arith.constant 4 : index
    %c0_123 = arith.constant 0 : index
    %c0_124 = arith.constant 0 : index
    %240 = vector.load %arg6[%c4_122, %c0_123, %c0_124] : memref<9x16x128xbf16, #tpu.memory_space<vmem>>, vector<1x16x128xbf16>
    %241 = vector.shape_cast %240 : vector<1x16x128xbf16> to vector<16x128xbf16>
    %cst_125 = arith.constant dense<0.000000e+00> : vector<256x128xf32>
    %242 = tpu.matmul %239, %241, %cst_125 {dimension_numbers = #tpu.dot_dimension_numbers<[1], [0], [0], [1], [0, 0, 1, 1], [], []>} : vector<256x16xbf16>, vector<16x128xbf16>, vector<256x128xf32> -> vector<256x128xf32>
    %243 = arith.addf %236, %242 : vector<256x128xf32>
    %c255_i32_126 = arith.constant 255 : i32
    %244 = tpu.dynamic_rotate %205 by %c255_i32_126 dim 0 : vector<256x16xf32>, i32 -> vector<256x16xf32>
    %245 = vector.broadcast %40 : vector<256x1xf32> to vector<256x16xf32>
    %246 = arith.mulf %244, %245 : vector<256x16xf32>
    %247 = arith.truncf %246 : vector<256x16xf32> to vector<256x16xbf16>
    %c5_127 = arith.constant 5 : index
    %c0_128 = arith.constant 0 : index
    %c0_129 = arith.constant 0 : index
    %248 = vector.load %arg6[%c5_127, %c0_128, %c0_129] : memref<9x16x128xbf16, #tpu.memory_space<vmem>>, vector<1x16x128xbf16>
    %249 = vector.shape_cast %248 : vector<1x16x128xbf16> to vector<16x128xbf16>
    %cst_130 = arith.constant dense<0.000000e+00> : vector<256x128xf32>
    %250 = tpu.matmul %247, %249, %cst_130 {dimension_numbers = #tpu.dot_dimension_numbers<[1], [0], [0], [1], [0, 0, 1, 1], [], []>} : vector<256x16xbf16>, vector<16x128xbf16>, vector<256x128xf32> -> vector<256x128xf32>
    %251 = arith.addf %243, %250 : vector<256x128xf32>
    %c241_i32_131 = arith.constant 241 : i32
    %252 = tpu.dynamic_rotate %205 by %c241_i32_131 dim 0 : vector<256x16xf32>, i32 -> vector<256x16xf32>
    %253 = vector.broadcast %44 : vector<256x1xf32> to vector<256x16xf32>
    %254 = arith.mulf %252, %253 : vector<256x16xf32>
    %255 = arith.truncf %254 : vector<256x16xf32> to vector<256x16xbf16>
    %c6_132 = arith.constant 6 : index
    %c0_133 = arith.constant 0 : index
    %c0_134 = arith.constant 0 : index
    %256 = vector.load %arg6[%c6_132, %c0_133, %c0_134] : memref<9x16x128xbf16, #tpu.memory_space<vmem>>, vector<1x16x128xbf16>
    %257 = vector.shape_cast %256 : vector<1x16x128xbf16> to vector<16x128xbf16>
    %cst_135 = arith.constant dense<0.000000e+00> : vector<256x128xf32>
    %258 = tpu.matmul %255, %257, %cst_135 {dimension_numbers = #tpu.dot_dimension_numbers<[1], [0], [0], [1], [0, 0, 1, 1], [], []>} : vector<256x16xbf16>, vector<16x128xbf16>, vector<256x128xf32> -> vector<256x128xf32>
    %259 = arith.addf %251, %258 : vector<256x128xf32>
    %c240_i32_136 = arith.constant 240 : i32
    %260 = tpu.dynamic_rotate %205 by %c240_i32_136 dim 0 : vector<256x16xf32>, i32 -> vector<256x16xf32>
    %261 = vector.broadcast %48 : vector<256x1xf32> to vector<256x16xf32>
    %262 = arith.mulf %260, %261 : vector<256x16xf32>
    %263 = arith.truncf %262 : vector<256x16xf32> to vector<256x16xbf16>
    %c7_137 = arith.constant 7 : index
    %c0_138 = arith.constant 0 : index
    %c0_139 = arith.constant 0 : index
    %264 = vector.load %arg6[%c7_137, %c0_138, %c0_139] : memref<9x16x128xbf16, #tpu.memory_space<vmem>>, vector<1x16x128xbf16>
    %265 = vector.shape_cast %264 : vector<1x16x128xbf16> to vector<16x128xbf16>
    %cst_140 = arith.constant dense<0.000000e+00> : vector<256x128xf32>
    %266 = tpu.matmul %263, %265, %cst_140 {dimension_numbers = #tpu.dot_dimension_numbers<[1], [0], [0], [1], [0, 0, 1, 1], [], []>} : vector<256x16xbf16>, vector<16x128xbf16>, vector<256x128xf32> -> vector<256x128xf32>
    %267 = arith.addf %259, %266 : vector<256x128xf32>
    %c239_i32_141 = arith.constant 239 : i32
    %268 = tpu.dynamic_rotate %205 by %c239_i32_141 dim 0 : vector<256x16xf32>, i32 -> vector<256x16xf32>
    %269 = vector.broadcast %52 : vector<256x1xf32> to vector<256x16xf32>
    %270 = arith.mulf %268, %269 : vector<256x16xf32>
    %271 = arith.truncf %270 : vector<256x16xf32> to vector<256x16xbf16>
    %c8_142 = arith.constant 8 : index
    %c0_143 = arith.constant 0 : index
    %c0_144 = arith.constant 0 : index
    %272 = vector.load %arg6[%c8_142, %c0_143, %c0_144] : memref<9x16x128xbf16, #tpu.memory_space<vmem>>, vector<1x16x128xbf16>
    %273 = vector.shape_cast %272 : vector<1x16x128xbf16> to vector<16x128xbf16>
    %cst_145 = arith.constant dense<0.000000e+00> : vector<256x128xf32>
    %274 = tpu.matmul %271, %273, %cst_145 {dimension_numbers = #tpu.dot_dimension_numbers<[1], [0], [0], [1], [0, 0, 1, 1], [], []>} : vector<256x16xbf16>, vector<16x128xbf16>, vector<256x128xf32> -> vector<256x128xf32>
    %275 = arith.addf %267, %274 : vector<256x128xf32>
    %c0_146 = arith.constant 0 : index
    %c0_147 = arith.constant 0 : index
    %276 = vector.load %arg7[%c0_146, %c0_147] : memref<1x128xf32, #tpu.memory_space<vmem>>, vector<1x128xf32>
    %277 = vector.broadcast %276 : vector<1x128xf32> to vector<256x128xf32>
    %278 = arith.addf %275, %277 : vector<256x128xf32>
    %279 = arith.addf %278, %129 : vector<256x128xf32>
    %cst_148 = arith.constant 0.000000e+00 : f32
    %280 = vector.broadcast %cst_148 : f32 to vector<256x128xf32>
    %281 = arith.maximumf %279, %280 : vector<256x128xf32>
    %282 = vector.shape_cast %281 : vector<256x128xf32> to vector<1x256x128xf32>
    %c0_149 = arith.constant 0 : index
    %c0_150 = arith.constant 0 : index
    %c0_151 = arith.constant 0 : index
    %283 = vector.load %arg8[%c0_149, %c0_150, %c0_151] : memref<1x256x128xf32, #tpu.memory_space<vmem>>, vector<1x256x128xf32>
    tpu.vector_store %arg8[%c0_149, %c0_150, %c0_151], %282 {strides = array<i32>} : memref<1x256x128xf32, #tpu.memory_space<vmem>>, vector<1x256x128xf32>,
    return
  }
  func.func @transform_0(%arg0: i32) -> (i32, i32, i32) {
    %c0_i32 = arith.constant 0 : i32
    %c0_i32_0 = arith.constant 0 : i32
    %c0_i32_1 = arith.constant 0 : i32
    return %arg0, %c0_i32, %c0_i32_0 : i32, i32, i32
  }
  func.func @transform_1(%arg0: i32) -> (i32, i32, i32) {
    %c0_i32 = arith.constant 0 : i32
    %c0_i32_0 = arith.constant 0 : i32
    %c0_i32_1 = arith.constant 0 : i32
    %c0_i32_2 = arith.constant 0 : i32
    return %c0_i32, %c0_i32_0, %c0_i32_1 : i32, i32, i32
  }
  func.func @transform_2(%arg0: i32) -> (i32, i32) {
    %c0_i32 = arith.constant 0 : i32
    %c0_i32_0 = arith.constant 0 : i32
    %c0_i32_1 = arith.constant 0 : i32
    return %c0_i32, %c0_i32_0 : i32, i32
  }
  func.func @transform_3(%arg0: i32) -> (i32, i32, i32) {
    %c0_i32 = arith.constant 0 : i32
    %c0_i32_0 = arith.constant 0 : i32
    %c0_i32_1 = arith.constant 0 : i32
    %c0_i32_2 = arith.constant 0 : i32
    return %c0_i32, %c0_i32_0, %c0_i32_1 : i32, i32, i32
  }
  func.func @transform_4(%arg0: i32) -> (i32, i32) {
    %c0_i32 = arith.constant 0 : i32
    %c0_i32_0 = arith.constant 0 : i32
    %c0_i32_1 = arith.constant 0 : i32
    return %c0_i32, %c0_i32_0 : i32, i32
  }
  func.func @transform_5(%arg0: i32) -> (i32, i32, i32) {
    %c0_i32 = arith.constant 0 : i32
    %c0_i32_0 = arith.constant 0 : i32
    %c0_i32_1 = arith.constant 0 : i32
    %c0_i32_2 = arith.constant 0 : i32
    return %c0_i32, %c0_i32_0, %c0_i32_1 : i32, i32, i32
  }
  func.func @transform_6(%arg0: i32) -> (i32, i32) {
    %c0_i32 = arith.constant 0 : i32
    %c0_i32_0 = arith.constant 0 : i32
    %c0_i32_1 = arith.constant 0 : i32
    return %c0_i32, %c0_i32_0 : i32, i32
  }
  func.func @transform_7(%arg0: i32) -> (i32, i32, i32) {
    %c0_i32 = arith.constant 0 : i32
    %c0_i32_0 = arith.constant 0 : i32
    %c0_i32_1 = arith.constant 0 : i32
    return %arg0, %c0_i32, %c0_i32_0 : i32, i32, i32
  }
}

</mosaic_0001>

<bundles_post_ra>
// kernel: feature_extractor_backbone_forward.1
= control target key start
LH: loop header
LB: loop body
LE: loop exit
PB: predicated region body
PF: predicated region fallthrough
CT: control target
= control target key end

     0   :  { %s12835_s24 = smov 0   ;;  %s17485_s0 = inlined_call_operand.vmem [shape: f32[2,256,3], index: 0, kind: input, shape index: {}]   ;;  %s17486_s1 = inlined_call_operand.vmem [shape: bf16[9,3,128], index: 1, kind: input, shape index: {}]   ;;  %s17487_s2 = inlined_call_operand.vmem [shape: f32[1,128], index: 2, kind: input, shape index: {}]   ;;  %s17488_s3 = inlined_call_operand.vmem [shape: bf16[9,16,16], index: 3, kind: input, shape index: {}]   ;;  %s17489_s4 = inlined_call_operand.vmem [shape: f32[1,16], index: 4, kind: input, shape index: {}]   ;;  %s17490_s5 = inlined_call_operand.vmem [shape: bf16[9,16,128], index: 5, kind: input, shape index: {}]   ;;  %s17491_s6 = inlined_call_operand.vmem [shape: f32[1,128], index: 6, kind: input, shape index: {}]   ;;  %s17492_s7 = inlined_call_operand.vmem [shape: f32[2,256,128], index: 7, kind: output, shape index: {}]  }
   0x1 LB: > { %s10100_s25 = sadd.s32 4294967295, %s12791_s24   ;;  %p10104_p0 = scmp.ge.s32.totalorder %s12791_s24, 1  ;;  %s12791_s24 = sphi %s12835_s24, %s17_s24  }
   0x2   : > { %p237_p1 = scmp.lt.s32.totalorder %s12791_s24, 3 }
   0x4   : > { %p238_p2 = pnand %p10104_p0, %p237_p1 }
   0x6   : > { %241 = sbr.rel (%p238_p2) target bundleno = 2133 (0x855), region = 48 }
   0xd   : > { %vm1774_vm0 = vcmask 1040384   ;;  %vm1775_vm1 = vcmask 1041408   ;;  %v10176_v0 = vld [vmem:[%s17486_s1 + $0x8] sm:$0x3]  ;;  %p269_p3 = scmp.lt.s32.totalorder %s10100_s25, 1  ;;  %v280_v1 = vlaneseq  ;;  %v12793_v2 = vmov 65535  }
   0xe   : > { %v1776_v3 = vsel %vm1774_vm0, 4294967295, %v12793_v2  ;;  %v10109_v4 = vld [vmem:[%s17486_s1 + $0x2] sm:$0x3]  ;;  %v1674_v7 = vld [vmem:[%s17486_s1] sm:$0x3]  ;;  %vm1725_vm2 = vcmask 23552  }
   0xf   : > { %v12849_v5 = vsel %vm1775_vm1, %v1776_v3, 0  ;;  %s19300_s25 = smov (!%p269_p3, %s10100_s25), 1  ;;  %v12853_v6 = vshrl.u32 %v280_v1, 7  ;;  %v10193_v11 = vld [vmem:[%s17486_s1 + $0xa] sm:$0x3]  ;;  %v17497_v62 = vmov 0.0  }
  0x10   : > { %v12859_v8 = vand.u32 %v10176_v0, %v12849_v5  ;;  %v1779_v9 = vand.u32 %v10109_v4, %v12849_v5  ;;  %v1991_v10 = vand.u32 %v12849_v5, %v1674_v7  ;;  %s10604_s11 = sshll.u32 %s19300_s25, 8  ;;  %v3200_v13 = vand.u32 %v10193_v11, %v12849_v5  ;;  %v10210_v14 = vld [vmem:[%s17486_s1 + $0xc] sm:$0x3]  ;;  %v10142_v30 = vld [vmem:[%s17486_s1 + $0x4] sm:$0x3] }
  0x11   : > { %18090 = vst [vmem:[#allocation2_spill] sm:$0xff] %v12853_v6  ;;  %v283_v12 = vadd.s32 16, %v12853_v6  ;;  %s12875_s14 = scalar_lea.vmem %s17485_s0, %s10604_s11  ;;  %v284_v24 = vadd.s32 24, %v12853_v6  ;;  %v12907_v25 = vand.u32 %v10210_v14, %v12849_v5  ;;  %v282_v36 = vadd.s32 8, %v12853_v6  ;;  %s17388_s8 = scalar_lea.vmem %s17492_s7, %s10604_s11 }
  0x12   : > { %18091 = vst [vmem:[#allocation3_spill] sm:$0xff] %v12859_v8  ;;  %11201 = vmatprep.subr.bf16.mxu0 %v12859_v8  ;;  %11065 = vmatprep.subr.bf16.mxu1 %v1779_v9  ;;  %v12882_v15 = vld [vmem:[%s12875_s14] sm:$0xff]  ;;  %v12885_v16 = vld [vmem:[%s12875_s14 + $0x8] sm:$0xff]  ;;  %v12888_v17 = vld [vmem:[%s12875_s14 + $0x10] sm:$0xff]  ;;  %v12936_v38 = vadd.s32 40, %v12853_v6  ;;  %v12939_v39 = vadd.s32 56, %v12853_v6  ;;  %v12942_v40 = vand.u32 %v10142_v30, %v12849_v5 }
  0x13   : > { %11202 = vmatpush3.bf16.msra.mxu0 %v12859_v8  ;;  %11066 = vmatpush3.bf16.msra.mxu1 %v1779_v9  ;;  %v1708_v18 = vpack.c.bf16 %v12885_v16, %v12882_v15  ;;  %v12893_v19 = vld [vmem:[%s12875_s14 + $0x18] sm:$0xff]  ;;  %v12896_v20 = vld [vmem:[%s12875_s14 + $0xf0] sm:$0xff]  ;;  %v331_v23 = vand.u32 255, %v283_v12  ;;  %v12915_v28 = vld [vmem:[%s12875_s14 + $0x20] sm:$0xff]  ;;  %v338_v33 = vand.u32 255, %v284_v24  ;;  %v1561_v41 = vrot.slane %v12882_v15, 7 }
  0x14   : > { %v12899_v21 = vld [vmem:[%s12875_s14 + $0xf8] sm:$0xff]  ;;  %11099 = vmatprep.subr.bf16.mxu1 %v1991_v10  ;;  %11235 = vmatprep.subr.bf16.mxu0 %v3200_v13  ;;  %v12903_v22 = vpack.c.bf16 %v12893_v19, %v12888_v17  ;;  %v1675_v26 = vmul.f32 0.0, %v12896_v20  ;;  %v12918_v29 = vld [vmem:[%s12875_s14 + $0x28] sm:$0xff]  ;;  %v12924_v34 = vld [vmem:[%s12875_s14 + $0x30] sm:$0xff]  ;;  %v17495_v42 = vrot.slane %v12885_v16, 7  ;;  %v17493_v43 = vrot.slane %v12882_v15, 1 }
  0x15   : > { %11203 = vmatprep.mubr.msk.bf16.mxu0 %vm1725_vm2, %v1708_v18  ;;  %v1676_v27 = vmul.f32 0.0, %v12899_v21  ;;  %v555_v31 = vand.u32 15, %v331_v23  ;;  %v12927_v35 = vld [vmem:[%s12875_s14 + $0x38] sm:$0xff]  ;;  %v12933_v37 = vpack.c.bf16 %v12918_v29, %v12915_v28  ;;  %vm2186_vm3 = vcmp.lt.s32.totalorder %v12853_v6, 7  ;;  %v12950_v44 = vld [vmem:[%s12875_s14 + $0x40] sm:$0xff]  ;;  %v12953_v45 = vld [vmem:[%s12875_s14 + $0x48] sm:$0xff] }
  0x16   : > { %18092 = vst [vmem:[#allocation4_spill] sm:$0xff] %v12903_v22  ;;  %11204 = vmatmul.mubr.msk.bf16.vlgmr.msra.gmra.mrb[0].mxu0 %vm1725_vm2, %v12903_v22  ;;  %v12956_v46 = vadd.s32 72, %v12853_v6  ;;  %vm1593_vm4 = vcmp.lt.s32.totalorder %v12853_v6, 1  ;;  %v2155_v47 = vrot.slane %v12885_v16, 1  ;;  %v12967_v50 = vpack.c.bf16 %v12927_v35, %v12924_v34  ;;  %v12981_v58 = vld [vmem:[%s12875_s14 + $0x50] sm:$0xff]  ;;  %v12984_v59 = vld [vmem:[%s12875_s14 + $0x58] sm:$0xff] }
  0x17   : > { %11236 = vmatpush3.bf16.msra.mxu0 %v3200_v13  ;;  %v1707_v32 = vpack.c.bf16 %v1676_v27, %v1675_v26  ;;  %18093 = vst [vmem:[#allocation5_spill] sm:$0xff] %v12933_v37  ;;  %11207 = vmatprep.mubr.msk.bf16.mxu0 %vm1725_vm2, %v12933_v37  ;;  %v2156_v51 = vrot.slane %v12888_v17, 1  ;;  %v2157_v52 = vrot.slane %v12893_v19, 1  ;;  %vm763_vm5 = vcmp.ge.s32.totalorder %v555_v31, 1  ;;  %v12991_v61 = vld [vmem:[%s12875_s14 + $0x60] sm:$0xff]  ;;  %v13001_v2 = vld [vmem:[%s12875_s14 + $0x68] sm:$0xff] }
  0x18   : > { %11269 = vmatprep.subr.bf16.mxu0 %v12907_v25  ;;  %18094 = vst [vmem:[#allocation6_spill] sm:$0xff] %v12967_v50  ;;  %v562_v53 = vand.u32 15, %v338_v33  ;;  %v17494_v55 = vrot.slane %v12899_v21, 7  ;;  %v12978_v57 = vpack.c.bf16 %v12953_v45, %v12950_v44  ;;  %v12994_v63 = vsel %vm763_vm5, 1.0, %v17497_v62  ;;  %v13039_v60 = vld [vmem:[%s12875_s14 + $0x78] sm:$0xff]  ;;  %v13086_v0 = vld [vmem:[%s12875_s14 + $0x80] sm:$0xff] }
  0x19   : > { %11067 = vmatprep.mubr.msk.bf16.mxu1 %vm1725_vm2, %v1707_v32  ;;  %18096 = vst [vmem:[#allocation8_spill] sm:$0xff] %v12994_v63  ;;  %v2158_v3 = vrot.slane %v12915_v28, 1  ;;  %v2159_v4 = vrot.slane %v12918_v29, 1  ;;  %v2161_v11 = vrot.slane %v12927_v35, 1  ;;  %v13013_v14 = vpack.c.bf16 %v12984_v59, %v12981_v58  ;;  %18106 = vst [vmem:[#allocation18_spill] sm:$0xff] %v13086_v0 }
  0x1a   : > { %11068 = vmatmul.mubr.msk.bf16.vlgmr.msra.gmra.mrb[0].mxu1 %vm1725_vm2, %v1708_v18  ;;  %18095 = vst [vmem:[#allocation7_spill] sm:$0xff] %v12978_v57  ;;  %vm828_vm6 = vcmp.le.s32.totalorder %v562_v53, 14  ;;  %v324_v18 = vand.u32 255, %v282_v36  ;;  %v17496_v24 = vrot.slane %v12950_v44, 1  ;;  %v13023_v26 = vpack.c.bf16 %v13001_v2, %v12991_v61  ;;  %v13036_v53 = vld [vmem:[%s12875_s14 + $0x70] sm:$0xff] }
  0x1b   : > { %11100 = vmatpush3.bf16.msra.mxu1 %v1991_v10  ;;  %11071 = vmatprep.mubr.msk.bf16.mxu1 %vm1725_vm2, %v12903_v22  ;;  %v2160_v10 = vrot.slane %v12924_v34, 1  ;;  %18097 = vst [vmem:[#allocation9_spill] sm:$0xff] %v13013_v14  ;;  %v13016_v23 = vsel %vm828_vm6, 1.0, %v17497_v62  ;;  %v352_v32 = vand.u32 255, %v12936_v38  ;;  %v13032_v33 = vsel %vm2186_vm3, %v2156_v51, %v2157_v52 }
  0x1c   : > { %11133 = vmatprep.subr.bf16.mxu1 %v12942_v40  ;;  %18098 = vst [vmem:[#allocation10_spill] sm:$0xff] %v13016_v23  ;;  %18099 = vst [vmem:[#allocation11_spill] sm:$0xff] %v13023_v26  ;;  %v548_v31 = vand.u32 15, %v324_v18  ;;  %v13045_v30 = vsel %vm2186_vm3, %v2155_v47, %v2156_v51  ;;  %v366_v18 = vand.u32 255, %v12939_v39  ;;  %v13054_v38 = vsel %vm1593_vm4, %v17494_v55, %v1561_v41  ;;  %v13134_v55 = vld [vmem:[%s12875_s14 + $0x98] sm:$0xff] }
  0x1d   : > { %18100 = vst [vmem:[#allocation12_spill] sm:$0xff] %v13032_v33  ;;  %18101 = vst [vmem:[#allocation13_spill] sm:$0xff] %v13045_v30  ;;  %v13060_v36 = vsel %vm2186_vm3, %v2157_v52, %v2158_v3  ;;  %v576_v39 = vand.u32 15, %v352_v32  ;;  %v13089_v52 = vld [vmem:[%s12875_s14 + $0x88] sm:$0xff]  ;;  %v13099_v1 = vpack.c.bf16 %v13039_v60, %v13036_v53  ;;  %v13147_v48 = vmul.f32 %v13054_v38, %v12994_v63 }
  0x1e   : > { %11208 = vmatmul.mubr.msk.bf16.gmra.mrb[4].mxu0 %vm1725_vm2, %v12967_v50  ;;  %18102 = vst [vmem:[#allocation14_spill] sm:$0xff] %v13054_v38  ;;  %18103 = vst [vmem:[#allocation15_spill] sm:$0xff] %v13060_v36  ;;  %vm826_vm7 = vcmp.le.s32.totalorder %v548_v31, 14  ;;  %v590_v13 = vand.u32 15, %v366_v18  ;;  %v13079_v31 = vsel %vm2186_vm3, %v17493_v43, %v2155_v47  ;;  %v13093_v7 = vmul.f32 %v13060_v36, %v13016_v23  ;;  %v13115_v43 = vld [vmem:[%s12875_s14 + $0x90] sm:$0xff] }
  0x1f   : > { %11211 = vmatprep.mubr.msk.bf16.mxu0 %vm1725_vm2, %v12978_v57  ;;  %v13069_v12 = vsel %vm826_vm7, 1.0, %v17497_v62  ;;  %18105 = vst [vmem:[#allocation17_spill] sm:$0xff] %v13079_v31  ;;  %18107 = vst [vmem:[#allocation19_spill] sm:$0xff] %v13089_v52  ;;  %vm830_vm8 = vcmp.le.s32.totalorder %v576_v39, 14  ;;  %v13112_v47 = vsel %vm2186_vm3, %v2159_v4, %v2160_v10  ;;  %v380_v39 = vand.u32 255, %v12956_v46 }
  0x20   : > { %18104 = vst [vmem:[#allocation16_spill] sm:$0xff] %v13069_v12  ;;  %v3102_v32 = vmul.f32 %v13045_v30, %v13069_v12  ;;  %vm832_vm9 = vcmp.le.s32.totalorder %v590_v13, 14  ;;  %18108 = vst [vmem:[#allocation20_spill] sm:$0xff] %v13099_v1  ;;  %v13120_v49 = vsel %vm830_vm8, 1.0, %v17497_v62  ;;  %v13143_v18 = vsel %vm1593_vm4, %v1561_v41, %v17495_v42  ;;  %v13198_v12 = vld [vmem:[%s12875_s14 + $0xb8] sm:$0xff] }
  0x21   : > { %18109 = vst [vmem:[#allocation21_spill] sm:$0xff] %v13112_v47  ;;  %18110 = vst [vmem:[#allocation22_spill] sm:$0xff] %v13120_v49  ;;  %v13123_v54 = vsel %vm832_vm9, 1.0, %v17497_v62  ;;  %v292_v9 = vadd.s32 88, %v12853_v6  ;;  %v3134_v46 = vpack.c.bf16 %v13093_v7, %v13032_v33  ;;  %v13157_v41 = vpack.c.bf16 %v13089_v52, %v13086_v0  ;;  %v13195_v62 = vld [vmem:[%s12875_s14 + $0xb0] sm:$0xff] }
  0x22   : > { %11072 = vmatmul.mubr.msk.bf16.gmra.mrb[4].mxu1 %vm1725_vm2, %v12933_v37  ;;  %v3133_v13 = vpack.c.bf16 %v3102_v32, %v13079_v31  ;;  %18111 = vst [vmem:[#allocation23_spill] sm:$0xff] %v13123_v54  ;;  %v13131_v32 = vsel %vm2186_vm3, %v2161_v11, %v17496_v24  ;;  %18113 = vst [vmem:[#allocation25_spill] sm:$0xff] %v13134_v55  ;;  %v604_v24 = vand.u32 15, %v380_v39  ;;  %v13176_v39 = vld [vmem:[%s12875_s14 + $0xa0] sm:$0xff]  ;;  %v18123_v22 = vrot.slane %v12981_v58, 1 }
  0x23   : > { %11075 = vmatprep.mubr.msk.bf16.mxu1 %vm1725_vm2, %v12967_v50  ;;  %18112 = vst [vmem:[#allocation24_spill] sm:$0xff] %v13131_v32  ;;  %18114 = vst [vmem:[#allocation26_spill] sm:$0xff] %v13157_v41  ;;  %v13167_v56 = vsel %vm2186_vm3, %v2158_v3, %v2159_v4  ;;  %v3106_v7 = vmul.f32 %v13112_v47, %v13120_v49  ;;  %v13173_v27 = vmul.f32 %v13131_v32, %v13123_v54 }
  0x24   : > { %18115 = vst [vmem:[#allocation27_spill] sm:$0xff] %v13167_v56  ;;  %18116 = vst [vmem:[#allocation28_spill] sm:$0xff] %v13176_v39  ;;  %v394_v42 = vand.u32 255, %v292_v9  ;;  %v13187_v3 = vsel %vm2186_vm3, %v2160_v10, %v2161_v11  ;;  %v13191_v4 = vpack.c.bf16 %v13134_v55, %v13115_v43  ;;  %vm834_vm10 = vcmp.le.s32.totalorder %v604_v24, 14  ;;  %v13204_v10 = vld [vmem:[%s12875_s14 + $0xc0] sm:$0xff]  ;;  %v13207_v11 = vld [vmem:[%s12875_s14 + $0xc8] sm:$0xff] }
  0x25   : > { %18118 = vst [vmem:[#allocation30_spill] sm:$0xff] %v13187_v3  ;;  %v18121_v24 = vmov 0.0   ;;  %v18124_v9 = vrot.slane %v12953_v45, 1  ;;  %v3136_v38 = vpack.c.bf16 %v13173_v27, %v13187_v3  ;;  %v296_v8 = vadd.s32 120, %v12853_v6 }
  0x26   : > { %11212 = vmatmul.mubr.msk.bf16.gmra.mrb[8].mxu0 %vm1725_vm2, %v13013_v14  ;;  %18119 = vst [vmem:[#allocation31_spill] sm:$0xff] %v13191_v4  ;;  %v618_v50 = vand.u32 15, %v394_v42  ;;  %v13214_v51 = vsel %vm834_vm10, 1.0, %v18121_v24  ;;  %v294_v42 = vadd.s32 104, %v12853_v6  ;;  %v13264_v47 = vpack.c.bf16 %v13198_v12, %v13195_v62 }
  0x27   : > { %11215 = vmatprep.mubr.msk.bf16.mxu0 %vm1725_vm2, %v13023_v26  ;;  %18122 = vst [vmem:[#allocation33_spill] sm:$0xff] %v13214_v51  ;;  %v18126_v32 = vmov %v18124_v9  ;;  %v18145_v54 = vrot.slane %v13039_v60, 1  ;;  %v18163_v49 = vrot.slane %v13086_v0, 1  ;;  %v304_v23 = vadd.s32 184, %v12853_v6 }
  0x28   : > { %vm836_vm11 = vcmp.le.s32.totalorder %v618_v50, 14  ;;  %18136 = vst [vmem:[#allocation39_spill] sm:$0xff] %v13264_v47 }
  0x2a   : > { %11076 = vmatmul.mubr.msk.bf16.gmra.mrb[8].mxu1 %vm1725_vm2, %v12978_v57  ;;  %v3135_v57 = vpack.c.bf16 %v3106_v7, %v13167_v56  ;;  %v18130_v7 = vrot.slane %v12984_v59, 1  ;;  %v408_v56 = vand.u32 255, %v294_v42  ;;  %v13271_v42 = vpack.c.bf16 %v13207_v11, %v13204_v10 }
  0x2b   : > { %11079 = vmatprep.mubr.msk.bf16.mxu1 %vm1725_vm2, %v13013_v14  ;;  %v13222_v14 = vsel %vm2186_vm3, %v18124_v9, %v18123_v22  ;;  %v18127_v22 = vrot.slane %v12950_v44, 1 }
  0x2c   : > { %18125 = vst [vmem:[#allocation34_spill] sm:$0xff] %v13222_v14  ;;  %v18132_v27 = vmov %v18130_v7  ;;  %18137 = vst [vmem:[#allocation40_spill] sm:$0xff] %v13271_v42 }
  0x2d   : > { %v13239_v9 = vsel %vm2186_vm3, %v18127_v22, %v18126_v32  ;;  %v3110_v32 = vmul.f32 %v13222_v14, %v13214_v51  ;;  %v13260_v22 = vsel %vm836_vm11, 1.0, %v18121_v24  ;;  %v18138_v14 = vrot.slane %v13036_v53, 1 }
  0x2e   : > { %11216 = vmatmul.mubr.msk.bf16.gmra.mrb[12].mxu0 %vm1725_vm2, %v13099_v1  ;;  %18128 = vst [vmem:[#allocation35_spill] sm:$0xff] %v13239_v9  ;;  %18135 = vst [vmem:[#allocation38_spill] sm:$0xff] %v13260_v22 }
  0x2f   : > { %11237 = vmatprep.mubr.msk.bf16.mxu0 %vm1725_vm2, %v3133_v13  ;;  %v13179_v13 = vld [vmem:[%s12875_s14 + $0xa8] sm:$0xff] }
  0x30   : > { %18117 = vst [vmem:[#allocation29_spill] sm:$0xff] %v13179_v13  ;;  %v13211_v37 = vpack.c.bf16 %v13179_v13, %v13176_v39 }
  0x32   : > { %18120 = vst [vmem:[#allocation32_spill] sm:$0xff] %v13211_v37  ;;  %11080 = vmatmul.mubr.msk.bf16.gmra.mrb[12].mxu1 %vm1725_vm2, %v13023_v26  ;;  %v18129_v26 = vrot.slane %v12991_v61, 1 }
  0x33   : > { %11083 = vmatprep.mubr.msk.bf16.mxu1 %vm1725_vm2, %v13099_v1  ;;  %v18133_v1 = vrot.slane %v12981_v58, 1 }
  0x34   : > { %v13247_v50 = vsel %vm2186_vm3, %v18130_v7, %v18129_v26  ;;  %v422_v26 = vand.u32 255, %v296_v8  ;;  %v18139_v7 = vrot.slane %v13001_v2, 1  ;;  %v18144_v8 = vrot.slane %v13086_v0, 1 }
  0x35   : > { %18131 = vst [vmem:[#allocation36_spill] sm:$0xff] %v13247_v50  ;;  %v13255_v3 = vsel %vm2186_vm3, %v18133_v1, %v18132_v27  ;;  %v632_v27 = vand.u32 15, %v408_v56  ;;  %v13287_v56 = vmul.f32 %v13247_v50, %v13260_v22  ;;  %v298_v22 = vadd.s32 136, %v12853_v6 }
  0x36   : > { %18134 = vst [vmem:[#allocation37_spill] sm:$0xff] %v13255_v3  ;;  %11238 = vmatmul.mubr.msk.bf16.vlgmr.msra.gmra.mrb[0].mxu0 %vm1725_vm2, %v3134_v46  ;;  %v13283_v1 = vsel %vm2186_vm3, %v18139_v7, %v18138_v14  ;;  %v646_v51 = vand.u32 15, %v422_v26  ;;  %v13303_v14 = vsel %vm2186_vm3, %v18145_v54, %v18144_v8  ;;  %v13306_v26 = vld [vmem:[%s12875_s14 + $0xd0] sm:$0xff]  ;;  %v18149_v8 = vrot.slane %v13036_v53, 1 }
  0x37   : > { %11270 = vmatpush3.bf16.msra.mxu0 %v12907_v25  ;;  %11241 = vmatprep.mubr.msk.bf16.mxu0 %vm1725_vm2, %v3135_v57  ;;  %18140 = vst [vmem:[#allocation41_spill] sm:$0xff] %v13283_v1  ;;  %vm838_vm12 = vcmp.le.s32.totalorder %v632_v27, 14  ;;  %v18141_v25 = vmov %v18139_v7  ;;  %v18142_v57 = vrot.slane %v12991_v61, 1  ;;  %18146 = vst [vmem:[#allocation43_spill] sm:$0xff] %v13303_v14  ;;  %v13309_v7 = vld [vmem:[%s12875_s14 + $0xd8] sm:$0xff]  ;;  %v3137_v27 = vpack.c.bf16 %v3110_v32, %v13239_v9 }
  0x38   : > { %v13313_v50 = vsel %vm838_vm12, 1.0, %v18121_v24  ;;  %vm840_vm13 = vcmp.le.s32.totalorder %v646_v51, 14  ;;  %v13331_v32 = vsel %vm2186_vm3, %v18149_v8, %v18145_v54  ;;  %v300_v51 = vadd.s32 152, %v12853_v6 }
  0x39   : > { %v13295_v46 = vsel %vm2186_vm3, %v18142_v57, %v18141_v25  ;;  %18147 = vst [vmem:[#allocation44_spill] sm:$0xff] %v13313_v50  ;;  %v13316_v25 = vld [vmem:[%s12875_s14 + $0xe0] sm:$0xff]  ;;  %v13319_v57 = vld [vmem:[%s12875_s14 + $0xe8] sm:$0xff]  ;;  %v13323_v33 = vsel %vm840_vm13, 1.0, %v18121_v24  ;;  %18150 = vst [vmem:[#allocation46_spill] sm:$0xff] %v13331_v32  ;;  %v13339_v31 = vpack.c.bf16 %v13309_v7, %v13306_v26  ;;  %v436_v30 = vand.u32 255, %v298_v22 }
  0x3a   : > { %18143 = vst [vmem:[#allocation42_spill] sm:$0xff] %v13295_v46  ;;  %18148 = vst [vmem:[#allocation45_spill] sm:$0xff] %v13323_v33  ;;  %11084 = vmatmul.mubr.msk.bf16.gmra.mrb[16].mxu1 %vm1725_vm2, %v13157_v41  ;;  %v3138_v54 = vpack.c.bf16 %v13287_v56, %v13255_v3  ;;  %v3114_v8 = vmul.f32 %v13283_v1, %v13313_v50  ;;  %v13351_v9 = vpack.c.bf16 %v13319_v57, %v13316_v25 }
  0x3b   : > { %18151 = vst [vmem:[#allocation47_spill] sm:$0xff] %v13339_v31  ;;  %11087 = vmatprep.mubr.msk.bf16.mxu1 %vm1725_vm2, %v13191_v4  ;;  %v450_v41 = vand.u32 255, %v300_v51  ;;  %v13355_v36 = vmul.f32 %v13303_v14, %v13323_v33  ;;  %v660_v4 = vand.u32 15, %v436_v30  ;;  %v18153_v3 = vrot.slane %v12899_v21, 7 }
  0x3c   : > { %18152 = vst [vmem:[#allocation48_spill] sm:$0xff] %v13351_v9  ;;  %v18154_v1 = vrot.slane %v12896_v20, 7  ;;  %v18157_v14 = vrot.slane %v13319_v57, 7  ;;  %v302_v30 = vadd.s32 168, %v12853_v6 }
  0x3d   : > { %v674_v56 = vand.u32 15, %v450_v41  ;;  %v18160_v41 = vrot.slane %v13089_v52, 1  ;;  %vm842_vm14 = vcmp.le.s32.totalorder %v660_v4, 14  ;;  %v18169_v52 = vrot.slane %v13115_v43, 1 }
  0x3e   : > { %11242 = vmatmul.mubr.msk.bf16.gmra.mrb[4].mxu0 %vm1725_vm2, %v3136_v38  ;;  %v13366_v50 = vsel %vm1593_vm4, %v18154_v1, %v18153_v3  ;;  %v18156_v51 = vmov %v18154_v1  ;;  %v18159_v38 = vrot.slane %v13115_v43, 1  ;;  %v3140_v0 = vpack.c.bf16 %v13355_v36, %v13331_v32 }
  0x3f   : > { %18155 = vst [vmem:[#allocation49_spill] sm:$0xff] %v13366_v50  ;;  %v13374_v22 = vsel %vm1593_vm4, %v18157_v14, %v18156_v51  ;;  %11245 = vmatprep.mubr.msk.bf16.mxu0 %vm1725_vm2, %v3137_v27  ;;  %v18162_v1 = vmov %v18160_v41  ;;  %v18165_v51 = vrot.slane %v13176_v39, 1  ;;  %v18166_v27 = vrot.slane %v13134_v55, 1 }
  0x40   : > { %18158 = vst [vmem:[#allocation50_spill] sm:$0xff] %v13374_v22  ;;  %v13384_v3 = vsel %vm2186_vm3, %v18160_v41, %v18159_v38  ;;  %v13392_v14 = vsel %vm2186_vm3, %v18163_v49, %v18162_v1  ;;  %v3139_v38 = vpack.c.bf16 %v3114_v8, %v13295_v46  ;;  %v464_v1 = vand.u32 255, %v302_v30 }
  0x41   : > { %18161 = vst [vmem:[#allocation51_spill] sm:$0xff] %v13384_v3  ;;  %18164 = vst [vmem:[#allocation52_spill] sm:$0xff] %v13392_v14  ;;  %v13400_v33 = vsel %vm2186_vm3, %v18166_v27, %v18165_v51  ;;  %v18168_v41 = vmov %v18166_v27  ;;  %v13415_v51 = vmul.f32 0.0, %v13374_v22  ;;  %v13418_v27 = vmul.f32 0.0, %v13366_v50 }
  0x42   : > { %18167 = vst [vmem:[#allocation53_spill] sm:$0xff] %v13400_v33  ;;  %v13410_v49 = vsel %vm2186_vm3, %v18169_v52, %v18168_v41  ;;  %v478_v8 = vand.u32 255, %v304_v23  ;;  %vm844_vm15 = vcmp.le.s32.totalorder %v674_v56, 14  ;;  %v688_v4 = vand.u32 15, %v464_v1  ;;  %11088 = vmatmul.mubr.msk.bf16.gmra.mrb[20].mxu1 %vm1725_vm2, %v13211_v37 }
  0x43   : > { %18170 = vst [vmem:[#allocation54_spill] sm:$0xff] %v13410_v49  ;;  %v285_v46 = vadd.s32 32, %v12853_v6  ;;  %v18171_v55 = vrot.slane %v12893_v19, 7  ;;  %v18172_v52 = vrot.slane %v12888_v17, 7  ;;  %v13432_v36 = vsel %vm842_vm14, 1.0, %v18121_v24  ;;  %11091 = vmatprep.mubr.msk.bf16.mxu1 %vm1725_vm2, %v13264_v47 }
  0x44   : > { %18174 = vst [vmem:[#allocation56_spill] sm:$0xff] %v13432_v36  ;;  %v702_v41 = vand.u32 15, %v478_v8  ;;  %v18176_v56 = vrot.slane %v12885_v16, 7  ;;  %v287_v32 = vadd.s32 48, %v12853_v6  ;;  %v18178_v8 = vrot.slane %v13179_v13, 1 }
  0x45   : > { %v13427_v30 = vsel %vm1593_vm4, %v18172_v52, %v18171_v55  ;;  %v18175_v23 = vmov %v18172_v52  ;;  %v18177_v52 = vrot.slane %v13195_v62, 1  ;;  %v345_v16 = vand.u32 255, %v285_v46 }
  0x46   : > { %18173 = vst [vmem:[#allocation55_spill] sm:$0xff] %v13427_v30  ;;  %v13440_v1 = vsel %vm1593_vm4, %v18176_v56, %v18175_v23  ;;  %v13460_v56 = vsel %vm844_vm15, 1.0, %v18121_v24  ;;  %v18182_v47 = vmov %v18178_v8  ;;  %v18183_v55 = vrot.slane %v13176_v39, 1  ;;  %11246 = vmatmul.mubr.msk.bf16.gmra.mrb[8].mxu0 %vm1725_vm2, %v3138_v54 }
  0x47   : > { %v13453_v17 = vsel %vm2186_vm3, %v18178_v8, %v18177_v52  ;;  %v13457_v23 = vmul.f32 %v13440_v1, %v12994_v63  ;;  %18181 = vst [vmem:[#allocation59_spill] sm:$0xff] %v13460_v56  ;;  %v359_v50 = vand.u32 255, %v287_v32  ;;  %v18185_v52 = vrot.slane %v12918_v29, 7  ;;  %11249 = vmatprep.mubr.msk.bf16.mxu0 %vm1725_vm2, %v3139_v38 }
  0x48   : > { %18179 = vst [vmem:[#allocation57_spill] sm:$0xff] %v13453_v17  ;;  %v13468_v37 = vsel %vm2186_vm3, %v18183_v55, %v18182_v47  ;;  %v18186_v46 = vrot.slane %v12915_v28, 7  ;;  %v3118_v22 = vmul.f32 %v13384_v3, %v13432_v36  ;;  %vm846_vm0 = vcmp.le.s32.totalorder %v688_v4, 14 }
  0x49   : > { %18180 = vst [vmem:[#allocation58_spill] sm:$0xff] %v13457_v23  ;;  %18184 = vst [vmem:[#allocation60_spill] sm:$0xff] %v13468_v37  ;;  %v569_v13 = vand.u32 15, %v345_v16  ;;  %vm848_vm1 = vcmp.le.s32.totalorder %v702_v41, 14  ;;  %v583_v32 = vand.u32 15, %v359_v50  ;;  %v18188_v39 = vrot.slane %v12893_v19, 7 }
  0x4a   : > { %v13476_v8 = vsel %vm1593_vm4, %v18186_v46, %v18185_v52  ;;  %v18187_v55 = vmov %v18186_v46  ;;  %v306_v54 = vadd.s32 200, %v12853_v6  ;;  %v13495_v4 = vmul.f32 %v13400_v33, %v13460_v56  ;;  %11092 = vmatmul.mubr.msk.bf16.gmra.mrb[24].mxu1 %vm1725_vm2, %v13271_v42 }
  0x4b   : > { %v13490_v52 = vsel %vm1593_vm4, %v18188_v39, %v18187_v55  ;;  %v18189_v16 = vrot.slane %v13204_v10, 1  ;;  %v18190_v38 = vrot.slane %v13198_v12, 1  ;;  %vm765_vm5 = vcmp.ge.s32.totalorder %v569_v13, 1  ;;  %11095 = vmatprep.mubr.msk.bf16.mxu1 %vm1725_vm2, %v13339_v31 }
  0x4c   : > { %v13507_v19 = vmul.f32 %v13490_v52, %v12994_v63  ;;  %v13510_v28 = vsel %vm846_vm0, 1.0, %v18121_v24  ;;  %v13513_v39 = vsel %vm765_vm5, 1.0, %v18121_v24  ;;  %vm767_vm6 = vcmp.ge.s32.totalorder %v583_v32, 1 }
  0x4d   : > { %v13503_v50 = vsel %vm2186_vm3, %v18190_v38, %v18189_v16  ;;  %18192 = vst [vmem:[#allocation62_spill] sm:$0xff] %v13510_v28  ;;  %18193 = vst [vmem:[#allocation63_spill] sm:$0xff] %v13513_v39  ;;  %v492_v41 = vand.u32 255, %v306_v54  ;;  %v13516_v46 = vsel %vm848_vm1, 1.0, %v18121_v24  ;;  %v13520_v55 = vmul.f32 %v13440_v1, %v13513_v39 }
  0x4e   : > { %18191 = vst [vmem:[#allocation61_spill] sm:$0xff] %v13503_v50  ;;  %18194 = vst [vmem:[#allocation64_spill] sm:$0xff] %v13516_v46  ;;  %v13523_v13 = vsel %vm767_vm6, 1.0, %v18121_v24  ;;  %v3141_v38 = vpack.c.bf16 %v3118_v22, %v13392_v14  ;;  %v308_v47 = vadd.s32 216, %v12853_v6  ;;  %v3122_v63 = vmul.f32 %v13453_v17, %v13510_v28  ;;  %11250 = vmatmul.mubr.msk.bf16.gmra.mrb[12].mxu0 %vm1725_vm2, %v3140_v0 }
  0x4f   : > { %18195 = vst [vmem:[#allocation65_spill] sm:$0xff] %v13523_v13  ;;  %v13532_v32 = vmul.f32 %v13490_v52, %v13523_v13  ;;  %v716_v54 = vand.u32 15, %v492_v41  ;;  %v289_v42 = vadd.s32 64, %v12853_v6  ;;  %v18196_v22 = vrot.slane %v12927_v35, 7 }
  0x50   : > { %v18197_v23 = vrot.slane %v12924_v34, 7  ;;  %v13552_v14 = vmul.f32 %v13503_v50, %v13516_v46  ;;  %v506_v17 = vand.u32 255, %v308_v47  ;;  %v18199_v33 = vrot.slane %v12918_v29, 7  ;;  %11253 = vmatprep.mubr.msk.bf16.mxu0 %vm1725_vm2, %v3141_v38 }
  0x51   : > { %vm850_vm7 = vcmp.le.s32.totalorder %v716_v54, 14  ;;  %v18200_v50 = vrot.slane %v12953_v45, 7  ;;  %v18201_v46 = vrot.slane %v12950_v44, 7  ;;  %v18202_v29 = vrot.slane %v13198_v12, 1 }
  0x52   : > { %v13548_v41 = vsel %vm1593_vm4, %v18197_v23, %v18196_v22  ;;  %v18198_v16 = vmov %v18197_v23  ;;  %v373_v23 = vand.u32 255, %v289_v42  ;;  %v291_v22 = vadd.s32 80, %v12853_v6  ;;  %11096 = vmatmul.mubr.msk.bf16.gmra.mrb[28].mxu1 %vm1725_vm2, %v13351_v9 }
  0x53   : > { %v13562_v28 = vsel %vm1593_vm4, %v18199_v33, %v18198_v16  ;;  %v13572_v47 = vsel %vm1593_vm4, %v18201_v46, %v18200_v50  ;;  %v18203_v34 = vrot.slane %v13195_v62, 1  ;;  %v730_v33 = vand.u32 15, %v506_v17 }
  0x54   : > { %v18205_v42 = vmov %v18201_v46  ;;  %v18206_v16 = vrot.slane %v12927_v35, 7  ;;  %v310_v50 = vadd.s32 232, %v12853_v6  ;;  %v3142_v46 = vpack.c.bf16 %v13495_v4, %v13410_v49 }
  0x55   : > { %v13581_v0 = vsel %vm2186_vm3, %v18203_v34, %v18202_v29  ;;  %v1658_v38 = vpack.c.bf16 %v13418_v27, %v13415_v51  ;;  %v597_v31 = vand.u32 15, %v373_v23  ;;  %v387_v29 = vand.u32 255, %v291_v22 }
  0x56   : > { %18204 = vst [vmem:[#allocation66_spill] sm:$0xff] %v13581_v0  ;;  %v13589_v54 = vsel %vm1593_vm4, %v18206_v16, %v18205_v42  ;;  %v3143_v17 = vpack.c.bf16 %v3122_v63, %v13468_v37  ;;  %v13598_v44 = vsel %vm850_vm7, 1.0, %v18121_v24  ;;  %v18208_v35 = vrot.slane %v13306_v26, 1  ;;  %11254 = vmatmul.mubr.msk.bf16.gmra.mrb[16].mxu0 %vm1725_vm2, %v3142_v46 }
  0x57   : > { %18207 = vst [vmem:[#allocation67_spill] sm:$0xff] %v13598_v44  ;;  %v18209_v34 = vrot.slane %v13207_v11, 1  ;;  %v520_v16 = vand.u32 255, %v310_v50  ;;  %v3144_v4 = vpack.c.bf16 %v13552_v14, %v13581_v0  ;;  %vm852_vm8 = vcmp.le.s32.totalorder %v730_v33, 14  ;;  %11101 = vmatprep.mubr.msk.bf16.mxu1 %vm1725_vm2, %v1658_v38 }
  0x58   : > { %vm769_vm9 = vcmp.ge.s32.totalorder %v597_v31, 1  ;;  %v611_v51 = vand.u32 15, %v387_v29  ;;  %v18212_v27 = vrot.slane %v13204_v10, 1  ;;  %v312_v14 = vadd.s32 248, %v12853_v6  ;;  %11257 = vmatprep.mubr.msk.bf16.mxu0 %vm1725_vm2, %v3143_v17 }
  0x59   : > { %v13606_v42 = vsel %vm2186_vm3, %v18209_v34, %v18208_v35  ;;  %v18211_v63 = vmov %v18209_v34  ;;  %v13621_v22 = vsel %vm769_vm9, 1.0, %v18121_v24  ;;  %v744_v50 = vand.u32 15, %v520_v16 }
  0x5a   : > { %18210 = vst [vmem:[#allocation68_spill] sm:$0xff] %v13606_v42  ;;  %v13618_v23 = vsel %vm2186_vm3, %v18212_v27, %v18211_v63  ;;  %18214 = vst [vmem:[#allocation70_spill] sm:$0xff] %v13621_v22  ;;  %v3126_v31 = vmul.f32 %v13606_v42, %v13598_v44  ;;  %v13629_v33 = vmul.f32 %v13562_v28, %v13621_v22  ;;  %vm771_vm10 = vcmp.ge.s32.totalorder %v611_v51, 1 }
  0x5b   : > { %18213 = vst [vmem:[#allocation69_spill] sm:$0xff] %v13618_v23  ;;  %v293_v29 = vadd.s32 96, %v12853_v6  ;;  %v13633_v35 = vsel %vm852_vm8, 1.0, %v18121_v24  ;;  %v18216_v34 = vrot.slane %v13316_v25, 1  ;;  %v18217_v16 = vrot.slane %v13309_v7, 1 }
  0x5c   : > { %18215 = vst [vmem:[#allocation71_spill] sm:$0xff] %v13633_v35  ;;  %v18220_v27 = vrot.slane %v13306_v26, 1  ;;  %v13652_v9 = vsel %vm771_vm10, 1.0, %v18121_v24  ;;  %vm854_vm11 = vcmp.le.s32.totalorder %v744_v50, 14  ;;  %v18223_v0 = vrot.slane %v12896_v20, 1 }
  0x5d   : > { %v13641_v38 = vsel %vm2186_vm3, %v18217_v16, %v18216_v34  ;;  %v18219_v63 = vmov %v18217_v16  ;;  %18222 = vst [vmem:[#allocation74_spill] sm:$0xff] %v13652_v9  ;;  %v13659_v34 = vmul.f32 %v13589_v54, %v13652_v9  ;;  %v401_v16 = vand.u32 255, %v293_v29 }
  0x5e   : > { %18218 = vst [vmem:[#allocation72_spill] sm:$0xff] %v13641_v38  ;;  %v13649_v51 = vsel %vm2186_vm3, %v18220_v27, %v18219_v63  ;;  %v18224_v63 = vrot.slane %v13319_v57, 1  ;;  %v534_v46 = vand.u32 255, %v312_v14  ;;  %v18226_v37 = vrot.slane %v12984_v59, 7  ;;  %11258 = vmatmul.mubr.msk.bf16.gmra.mrb[20].mxu0 %vm1725_vm2, %v3144_v4 }
  0x5f   : > { %18221 = vst [vmem:[#allocation73_spill] sm:$0xff] %v13649_v51  ;;  %v18227_v42 = vrot.slane %v12981_v58, 7  ;;  %v18229_v17 = vrot.slane %v12953_v45, 7  ;;  %v295_v49 = vadd.s32 112, %v12853_v6  ;;  %v18231_v45 = vrot.slane %v13001_v2, 7 }
  0x60   : > { %v13668_v27 = vsel %vm2186_vm3, %v18224_v63, %v18223_v0  ;;  %v3145_v0 = vpack.c.bf16 %v3126_v31, %v13618_v23  ;;  %v625_v63 = vand.u32 15, %v401_v16  ;;  %v18232_v58 = vrot.slane %v12991_v61, 7 }
  0x61   : > { %18225 = vst [vmem:[#allocation75_spill] sm:$0xff] %v13668_v27  ;;  %v13676_v44 = vsel %vm1593_vm4, %v18227_v42, %v18226_v37  ;;  %v18228_v50 = vmov %v18227_v42  ;;  %v3128_v37 = vmul.f32 %v13641_v38, %v13633_v35  ;;  %v13693_v42 = vsel %vm854_vm11, 1.0, %v18121_v24  ;;  %v10227_v35 = vld [vmem:[%s17486_s1 + $0xe] sm:$0x3] }
  0x62   : > { %v13684_v29 = vsel %vm1593_vm4, %v18229_v17, %v18228_v50  ;;  %18230 = vst [vmem:[#allocation76_spill] sm:$0xff] %v13693_v42  ;;  %v13701_v50 = vsel %vm1593_vm4, %v18232_v58, %v18231_v45  ;;  %v18233_v31 = vmov %v18232_v58  ;;  %v18234_v16 = vrot.slane %v12984_v59, 7  ;;  %11261 = vmatprep.mubr.msk.bf16.mxu0 %vm1725_vm2, %v3145_v0 }
  0x63   : > { %vm773_vm12 = vcmp.ge.s32.totalorder %v625_v63, 1  ;;  %v415_v14 = vand.u32 255, %v295_v49  ;;  %v317_v23 = vand.u32 255, %v12853_v6  ;;  %v297_v38 = vadd.s32 128, %v12853_v6 }
  0x64   : > { %v13709_v17 = vsel %vm1593_vm4, %v18234_v16, %v18233_v31  ;;  %v18235_v45 = vpack.c.bf16 %v13143_v18, %v13147_v48  ;;  %v758_v59 = vand.u32 15, %v534_v46  ;;  %v13721_v61 = vsel %vm773_vm12, 1.0, %v18121_v24 }
  0x65   : > { %18236 = vst [vmem:[#allocation77_spill] sm:$0xff] %v13721_v61  ;;  %v18237_v63 = vrot.slane %v13039_v60, 7  ;;  %v18238_v49 = vrot.slane %v13036_v53, 7  ;;  %v18240_v16 = vrot.slane %v13001_v2, 7  ;;  %v18241_v46 = vpack.c.bf16 %v13427_v30, %v13520_v55 }
  0x66   : > { %11102 = vmatmul.mubr.msk.bf16.vlgmr.msra.gmra.mrb[0].mxu1 %vm1725_vm2, %v18235_v45  ;;  %v1638_v45 = vmul.f32 %v13684_v29, %v13721_v61  ;;  %v429_v3 = vand.u32 255, %v297_v38  ;;  %v3146_v53 = vpack.c.bf16 %v3128_v37, %v13649_v51  ;;  %v18242_v2 = vrot.slane %v13319_v57, 1 }
  0x67   : > { %v13729_v58 = vsel %vm1593_vm4, %v18238_v49, %v18237_v63  ;;  %v18239_v31 = vmov %v18238_v49  ;;  %11134 = vmatpush3.bf16.msra.mxu1 %v12942_v40  ;;  %11105 = vmatprep.mubr.msk.bf16.mxu1 %vm1725_vm2, %v18241_v46  ;;  %v639_v63 = vand.u32 15, %v415_v14  ;;  %v541_v49 = vand.u32 15, %v317_v23 }
  0x68   : > { %v13737_v48 = vsel %vm1593_vm4, %v18240_v16, %v18239_v31  ;;  %v18243_v31 = vrot.slane %v13316_v25, 1  ;;  %v3130_v55 = vmul.f32 %v13668_v27, %v13693_v42  ;;  %v13758_v16 = vand.u32 %v10227_v35, %v12849_v5  ;;  %11262 = vmatmul.mubr.msk.bf16.gmra.mrb[24].mxu0 %vm1725_vm2, %v3146_v53 }
  0x69   : > { %v1664_v23 = vpack.c.bf16 %v13676_v44, %v1638_v45  ;;  %vm775_vm13 = vcmp.ge.s32.totalorder %v639_v63, 1  ;;  %vm761_vm14 = vcmp.ge.s32.totalorder %v541_v49, 1  ;;  %v653_v38 = vand.u32 15, %v429_v3 }
  0x6a   : > { %v13753_v40 = vsel %vm2186_vm3, %v18243_v31, %v18242_v2  ;;  %vm856_vm15 = vcmp.le.s32.totalorder %v758_v59, 14  ;;  %v13764_v14 = vsel %vm775_vm13, 1.0, %v18121_v24  ;;  %v13767_v37 = vsel %vm761_vm14, 1.0, %v18121_v24  ;;  %11303 = vmatprep.subr.bf16.mxu0 %v13758_v16 }
  0x6b   : > { %18244 = vst [vmem:[#allocation78_spill] sm:$0xff] %v13753_v40  ;;  %18245 = vst [vmem:[#allocation79_spill] sm:$0xff] %v13764_v14  ;;  %v13772_v35 = vmul.f32 %v13562_v28, %v13513_v39  ;;  %v1640_v4 = vmul.f32 %v13709_v17, %v13764_v14  ;;  %v3395_v3 = vmul.f32 %v13440_v1, %v13767_v37  ;;  %vm777_vm0 = vcmp.ge.s32.totalorder %v653_v38, 1 }
  0x6c   : > { %18246 = vst [vmem:[#allocation80_spill] sm:$0xff] %v13767_v37  ;;  %v13780_v0 = vmul.f32 %v13589_v54, %v13523_v13  ;;  %v13783_v46 = vsel %vm777_vm0, 1.0, %v18121_v24  ;;  %v299_v45 = vadd.s32 144, %v12853_v6  ;;  %v301_v49 = vadd.s32 160, %v12853_v6 }
  0x6d   : > { %18247 = vst [vmem:[#allocation81_spill] sm:$0xff] %v13783_v46  ;;  %v1665_v2 = vpack.c.bf16 %v13701_v50, %v1640_v4  ;;  %v3427_v31 = vpack.c.bf16 %v13427_v30, %v3395_v3  ;;  %v1642_v1 = vmul.f32 %v13737_v48, %v13783_v46  ;;  %v18248_v37 = vpack.c.bf16 %v13476_v8, %v13532_v32 }
  0x6e   : > { %v3147_v27 = vpack.c.bf16 %v3130_v55, %v13753_v40  ;;  %v13802_v63 = vsel %vm856_vm15, 1.0, %v18121_v24  ;;  %v18250_v4 = vrot.slane %v12882_v15, 1  ;;  %v18251_v3 = vrot.slane %v12899_v21, 1 }
  0x6f   : > { %11106 = vmatmul.mubr.msk.bf16.gmra.mrb[4].mxu1 %vm1725_vm2, %v18248_v37  ;;  %18249 = vst [vmem:[#allocation82_spill] sm:$0xff] %v13802_v63  ;;  %v18253_v38 = vpack.c.bf16 %v13548_v41, %v13629_v33  ;;  %v1666_v32 = vpack.c.bf16 %v13729_v58, %v1642_v1  ;;  %v443_v55 = vand.u32 255, %v299_v45  ;;  %v457_v37 = vand.u32 255, %v301_v49 }
  0x70   : > { %v13810_v30 = vsel %vm2186_vm3, %v18251_v3, %v18250_v4  ;;  %v13819_v59 = vmul.f32 %v13684_v29, %v13621_v22  ;;  %v13826_v4 = vmul.f32 %v13709_v17, %v13652_v9  ;;  %11265 = vmatprep.mubr.msk.bf16.mxu0 %vm1725_vm2, %v3147_v27  ;;  %v18254_v33 = vmov %v18251_v3 }
  0x71   : > { %18252 = vst [vmem:[#allocation83_spill] sm:$0xff] %v13810_v30  ;;  %11109 = vmatprep.mubr.msk.bf16.mxu1 %vm1725_vm2, %v18253_v38  ;;  %v3132_v15 = vmul.f32 %v13810_v30, %v13802_v63  ;;  %v18255_v45 = vrot.slane %v12896_v20, 1  ;;  %v667_v38 = vand.u32 15, %v443_v55  ;;  %v681_v3 = vand.u32 15, %v457_v37  ;;  %v18259_v63 = vld [vmem:[#allocation19_spill] sm:$0xff] }
  0x72   : > { %v303_v40 = vadd.s32 176, %v12853_v6  ;;  %v305_v27 = vadd.s32 192, %v12853_v6  ;;  %v13846_v20 = vmul.f32 %v13737_v48, %v13721_v61  ;;  %v18258_v53 = vpack.c.bf16 %v13572_v47, %v13659_v34 }
  0x73   : > { %v13835_v49 = vsel %vm2186_vm3, %v18255_v45, %v18254_v33  ;;  %v18257_v33 = vld [vmem:[#allocation18_spill] sm:$0xff]  ;;  %v1579_v55 = vrot.slane %v13115_v43, 7  ;;  %vm779_vm1 = vcmp.ge.s32.totalorder %v667_v38, 1  ;;  %vm781_vm5 = vcmp.ge.s32.totalorder %v681_v3, 1 }
  0x74   : > { %18256 = vst [vmem:[#allocation84_spill] sm:$0xff] %v13835_v49  ;;  %v3148_v21 = vpack.c.bf16 %v3132_v15, %v13835_v49  ;;  %v1577_v45 = vrot.slane %v18257_v33, 7  ;;  %v471_v15 = vand.u32 255, %v303_v40  ;;  %v485_v1 = vand.u32 255, %v305_v27  ;;  %v18260_v33 = vld [vmem:[#allocation25_spill] sm:$0xff]  ;;  %v18264_v27 = vld [vmem:[#allocation28_spill] sm:$0xff] }
  0x75   : > { %v1578_v51 = vrot.slane %v18259_v63, 7  ;;  %v1580_v42 = vrot.slane %v18260_v33, 7  ;;  %v18261_v34 = vrot.slane %v13039_v60, 7  ;;  %v13871_v40 = vsel %vm781_vm5, 1.0, %v18121_v24  ;;  %v10159_v60 = vld [vmem:[%s17486_s1 + $0x6] sm:$0x3] }
  0x76   : > { %11266 = vmatmul.mubr.msk.bf16.gmra.mrb[28].mxu0 %vm1725_vm2, %v3148_v21  ;;  %18263 = vst [vmem:[#allocation19_spill] sm:$0xff] %v13871_v40  ;;  %v709_v38 = vand.u32 15, %v485_v1  ;;  %v309_v3 = vadd.s32 224, %v12853_v6  ;;  %v1581_v21 = vrot.slane %v18264_v27, 7  ;;  %v1583_v33 = vrot.slane %v13195_v62, 7 }
  0x77   : > { %11110 = vmatmul.mubr.msk.bf16.gmra.mrb[8].mxu1 %vm1725_vm2, %v18258_v53  ;;  %11271 = vmatprep.mubr.msk.bf16.mxu0 %vm1725_vm2, %v3427_v31  ;;  %v13865_v43 = vsel %vm1593_vm4, %v18261_v34, %v1577_v45  ;;  %v13875_v63 = vsel %vm1593_vm4, %v1578_v51, %v1579_v55  ;;  %v307_v53 = vadd.s32 208, %v12853_v6  ;;  %v695_v31 = vand.u32 15, %v471_v15  ;;  %v18265_v15 = vld [vmem:[#allocation29_spill] sm:$0xff] }
  0x78   : > { %11113 = vmatprep.mubr.msk.bf16.mxu1 %vm1725_vm2, %v1664_v23  ;;  %v13868_v23 = vsel %vm779_vm1, 1.0, %v18121_v24  ;;  %v1646_v37 = vmul.f32 %v13875_v63, %v13871_v40  ;;  %v13890_v56 = vand.u32 %v10159_v60, %v12849_v5  ;;  %v13895_v1 = vsel %vm1593_vm4, %v1577_v45, %v1578_v51 }
  0x79   : > { %18262 = vst [vmem:[#allocation18_spill] sm:$0xff] %v13868_v23  ;;  %v1644_v34 = vmul.f32 %v13865_v43, %v13868_v23  ;;  %v13899_v62 = vsel %vm1593_vm4, %v1579_v55, %v1580_v42  ;;  %v1582_v27 = vrot.slane %v18265_v15, 7  ;;  %vm783_vm6 = vcmp.ge.s32.totalorder %v695_v31, 1 }
  0x7a   : > { %vm785_vm7 = vcmp.ge.s32.totalorder %v709_v38, 1  ;;  %v513_v36 = vand.u32 255, %v309_v3  ;;  %11167 = vmatprep.subr.bf16.mxu1 %v13890_v56  ;;  %v18266_v60 = vpack.c.bf16 %v13476_v8, %v13507_v19  ;;  %v13909_v51 = vsel %vm1593_vm4, %v1580_v42, %v1581_v21 }
  0x7b   : > { %v1667_v45 = vpack.c.bf16 %v13895_v1, %v1644_v34  ;;  %v18267_v55 = vpack.c.bf16 %v13548_v41, %v13772_v35  ;;  %v13921_v19 = vsel %vm1593_vm4, %v1582_v27, %v1583_v33  ;;  %v13924_v42 = vsel %vm783_vm6, 1.0, %v18121_v24  ;;  %v10244_v35 = vld [vmem:[%s17486_s1 + $0x10] sm:$0x3] }
  0x7c   : > { %18268 = vst [vmem:[#allocation25_spill] sm:$0xff] %v13924_v42  ;;  %v737_v38 = vand.u32 15, %v513_v36  ;;  %v1587_v3 = vrot.slane %v13306_v26, 7  ;;  %v1648_v34 = vmul.f32 %v13909_v51, %v13924_v42  ;;  %v13946_v36 = vsel %vm1593_vm4, %v1581_v21, %v1582_v27 }
  0x7e   : > { %11272 = vmatmul.mubr.msk.bf16.vlgmr.msra.gmra.mrb[0].mxu0 %vm1725_vm2, %v18266_v60  ;;  %v1586_v60 = vrot.slane %v13207_v11, 7  ;;  %vm789_vm9 = vcmp.ge.s32.totalorder %v737_v38, 1  ;;  %v18271_v11 = vpack.c.bf16 %v13676_v44, %v13819_v59  ;;  %v13986_v59 = vmul.f32 %v13562_v28, %v13523_v13 }
  0x7f   : > { %11114 = vmatmul.mubr.msk.bf16.gmra.mrb[12].mxu1 %vm1725_vm2, %v1665_v2  ;;  %v499_v2 = vand.u32 255, %v307_v53  ;;  %11304 = vmatpush3.bf16.msra.mxu0 %v13758_v16  ;;  %v1668_v53 = vpack.c.bf16 %v13899_v62, %v1646_v37  ;;  %v311_v16 = vadd.s32 240, %v12853_v6  ;;  %v1585_v37 = vrot.slane %v13204_v10, 7 }
  0x80   : > { %11117 = vmatprep.mubr.msk.bf16.mxu1 %vm1725_vm2, %v1666_v32  ;;  %v1584_v32 = vrot.slane %v13198_v12, 7  ;;  %11275 = vmatprep.mubr.msk.bf16.mxu0 %vm1725_vm2, %v18267_v55  ;;  %v13927_v12 = vsel %vm785_vm7, 1.0, %v18121_v24  ;;  %v18270_v55 = vpack.c.bf16 %v13572_v47, %v13780_v0  ;;  %v13975_v0 = vsel %vm1593_vm4, %v1586_v60, %v1587_v3 }
  0x81   : > { %18269 = vst [vmem:[#allocation28_spill] sm:$0xff] %v13927_v12  ;;  %v723_v31 = vand.u32 15, %v499_v2  ;;  %v1650_v15 = vmul.f32 %v13921_v19, %v13927_v12  ;;  %v13941_v2 = vand.u32 %v10244_v35, %v12849_v5  ;;  %v527_v26 = vand.u32 255, %v311_v16 }
  0x82   : > { %v13950_v10 = vsel %vm1593_vm4, %v1583_v33, %v1584_v32  ;;  %v1589_v5 = vrot.slane %v13316_v25, 7  ;;  %v13962_v21 = vsel %vm1593_vm4, %v1584_v32, %v1585_v37  ;;  %v1669_v33 = vpack.c.bf16 %v13946_v36, %v1648_v34 }
  0x83   : > { %vm787_vm8 = vcmp.ge.s32.totalorder %v723_v31, 1  ;;  %11337 = vmatprep.subr.bf16.mxu0 %v13941_v2  ;;  %v13978_v27 = vsel %vm789_vm9, 1.0, %v18121_v24  ;;  %v751_v32 = vand.u32 15, %v527_v26  ;;  %v13990_v31 = vsel %vm1593_vm4, %v1585_v37, %v1586_v60  ;;  %v18283_v37 = vld [vmem:[#allocation13_spill] sm:$0xff] }
  0x84   : > { %v13971_v25 = vsel %vm787_vm8, 1.0, %v18121_v24  ;;  %18273 = vst [vmem:[#allocation85_spill] sm:$0xff] %v13978_v27  ;;  %v13998_v35 = vmul.f32 %v13589_v54, %v13621_v22  ;;  %v1654_v54 = vmul.f32 %v13975_v0, %v13978_v27  ;;  %v14030_v26 = vmul.f32 %v13865_v43, %v13783_v46  ;;  %v18289_v22 = vld [vmem:[#allocation21_spill] sm:$0xff] }
  0x85   : > { %18272 = vst [vmem:[#allocation29_spill] sm:$0xff] %v13971_v25  ;;  %v1652_v28 = vmul.f32 %v13962_v21, %v13971_v25  ;;  %vm791_vm10 = vcmp.ge.s32.totalorder %v751_v32, 1  ;;  %v14034_v60 = vmul.f32 %v13875_v63, %v13868_v23  ;;  %v3411_v32 = vmul.f32 %v13875_v63, %v13783_v46  ;;  %v18298_v46 = vld [vmem:[#allocation49_spill] sm:$0xff] }
  0x86   : > { %11276 = vmatmul.mubr.msk.bf16.gmra.mrb[4].mxu0 %vm1725_vm2, %v18270_v55  ;;  %v3409_v55 = vmul.f32 %v13865_v43, %v13764_v14  ;;  %v14052_v43 = vmul.f32 %v13909_v51, %v13871_v40 }
  0x87   : > { %11118 = vmatmul.mubr.msk.bf16.gmra.mrb[16].mxu1 %vm1725_vm2, %v1667_v45  ;;  %v1588_v45 = vrot.slane %v13309_v7, 7  ;;  %11279 = vmatprep.mubr.msk.bf16.mxu0 %vm1725_vm2, %v18271_v11  ;;  %v1670_v7 = vpack.c.bf16 %v13950_v10, %v1650_v15  ;;  %v14023_v15 = vmul.f32 %v13737_v48, %v13764_v14  ;;  %v18275_v11 = vpack.c.bf16 %v13701_v50, %v13826_v4  ;;  %v18302_v14 = vld [vmem:[#allocation35_spill] sm:$0xff] }
  0x88   : > { %11121 = vmatprep.mubr.msk.bf16.mxu1 %vm1725_vm2, %v1668_v53  ;;  %v13982_v53 = vmul.f32 %v13490_v52, %v13513_v39  ;;  %v14002_v52 = vmul.f32 %v13684_v29, %v13652_v9  ;;  %v18276_v4 = vpack.c.bf16 %v13729_v58, %v13846_v20  ;;  %v14079_v20 = vmul.f32 %v13975_v0, %v13971_v25 }
  0x89   : > { %v13994_v16 = vsel %vm1593_vm4, %v1587_v3, %v1588_v45  ;;  %v14012_v3 = vmul.f32 %v13709_v17, %v13721_v61  ;;  %v1597_v48 = vsel %vm1593_vm4, %v1588_v45, %v1589_v5  ;;  %v14056_v45 = vmul.f32 %v13921_v19, %v13924_v42  ;;  %v18292_v61 = vld [vmem:[#allocation3_spill] sm:$0xff] }
  0x8a   : > { %18274 = vst [vmem:[#allocation86_spill] sm:$0xff] %v13994_v16  ;;  %18278 = vst [vmem:[#allocation88_spill] sm:$0xff] %v14079_v20  ;;  %v3435_v34 = vpack.c.bf16 %v13899_v62, %v3411_v32  ;;  %v18279_v17 = vrot.slane %v13319_v57, 7  ;;  %v14102_v63 = vmul.f32 %v1597_v48, %v13978_v27  ;;  %v3415_v57 = vmul.f32 %v13921_v19, %v13871_v40  ;;  %v18297_v40 = vld [vmem:[#allocation34_spill] sm:$0xff]  ;;  %v18322_v20 = vld [vmem:[#allocation61_spill] sm:$0xff] }
  0x8b   : > { %v3417_v19 = vmul.f32 %v13962_v21, %v13924_v42  ;;  %v18296_v42 = vld [vmem:[#allocation38_spill] sm:$0xff] }
  0x8c   : > { %v14094_v29 = vsel %vm1593_vm4, %v1589_v5, %v18279_v17  ;;  %18281 = vst [vmem:[#allocation90_spill] sm:$0xff] %v14102_v63  ;;  %v18314_v63 = vld [vmem:[#allocation53_spill] sm:$0xff] }
  0x8d   : > { %18280 = vst [vmem:[#allocation89_spill] sm:$0xff] %v14094_v29 }
  0x8e   : > { %11280 = vmatmul.mubr.msk.bf16.gmra.mrb[8].mxu0 %vm1725_vm2, %v18275_v11  ;;  %v1672_v11 = vpack.c.bf16 %v13994_v16, %v1654_v54  ;;  %v2220_v54 = vmul.f32 0.0, %v13810_v30  ;;  %v18308_v30 = vld [vmem:[#allocation42_spill] sm:$0xff] }
  0x8f   : > { %11122 = vmatmul.mubr.msk.bf16.gmra.mrb[20].mxu1 %vm1725_vm2, %v1669_v33  ;;  %v1671_v33 = vpack.c.bf16 %v13990_v31, %v1652_v28  ;;  %11283 = vmatprep.mubr.msk.bf16.mxu0 %vm1725_vm2, %v18276_v4  ;;  %v14075_v28 = vmul.f32 %v13962_v21, %v13927_v12  ;;  %v18290_v21 = vld [vmem:[#allocation33_spill] sm:$0xff] }
  0x90   : > { %11125 = vmatprep.mubr.msk.bf16.mxu1 %vm1725_vm2, %v1670_v7  ;;  %v14065_v7 = vsel %vm791_vm10, 1.0, %v18121_v24  ;;  %v3434_v24 = vpack.c.bf16 %v13895_v1, %v3409_v55  ;;  %v2219_v55 = vmul.f32 0.0, %v13835_v49 }
  0x91   : > { %18277 = vst [vmem:[#allocation87_spill] sm:$0xff] %v14065_v7  ;;  %v1656_v4 = vmul.f32 %v1597_v48, %v14065_v7  ;;  %v18320_v7 = vld [vmem:[#allocation57_spill] sm:$0xff] }
  0x92   : > { %v2251_v5 = vpack.c.bf16 %v2220_v54, %v2219_v55  ;;  %v18286_v54 = vld [vmem:[#allocation17_spill] sm:$0xff] }
  0x93   : > { %v1673_v32 = vpack.c.bf16 %v14094_v29, %v1656_v4  ;;  %v18284_v4 = vld [vmem:[#allocation22_spill] sm:$0xff] }
  0x96   : > { %11284 = vmatmul.mubr.msk.bf16.gmra.mrb[12].mxu0 %vm1725_vm2, %v3434_v24  ;;  %v18282_v24 = vld [vmem:[#allocation10_spill] sm:$0xff] }
  0x97   : > { %11126 = vmatmul.mubr.msk.bf16.gmra.mrb[24].mxu1 %vm1725_vm2, %v1671_v33  ;;  %v3413_v33 = vmul.f32 %v13909_v51, %v13868_v23  ;;  %11287 = vmatprep.mubr.msk.bf16.mxu0 %vm1725_vm2, %v3435_v34  ;;  %v2222_v38 = vmul.f32 %v18283_v37, %v18282_v24  ;;  %v3437_v51 = vpack.c.bf16 %v13950_v10, %v3415_v57  ;;  %v18285_v34 = vld [vmem:[#allocation15_spill] sm:$0xff] }
  0x98   : > { %11129 = vmatprep.mubr.msk.bf16.mxu1 %vm1725_vm2, %v1672_v11  ;;  %v2224_v9 = vmul.f32 %v18285_v34, %v18284_v4  ;;  %v3438_v57 = vpack.c.bf16 %v13990_v31, %v3417_v19  ;;  %v2230_v23 = vmul.f32 %v18297_v40, %v18296_v42 }
  0x99   : > { %v3436_v11 = vpack.c.bf16 %v13946_v36, %v3413_v33  ;;  %v2252_v55 = vpack.c.bf16 %v2222_v38, %v18286_v54  ;;  %v3419_v33 = vmul.f32 %v13975_v0, %v13927_v12  ;;  %v18291_v38 = vld [vmem:[#allocation24_spill] sm:$0xff]  ;;  %v18293_v0 = vld [vmem:[#allocation27_spill] sm:$0xff]  ;;  %v18295_v12 = vld [vmem:[#allocation30_spill] sm:$0xff] }
  0x9a   : > { %v18306_v54 = vld [vmem:[#allocation56_spill] sm:$0xff] }
  0x9e   : > { %11288 = vmatmul.mubr.msk.bf16.gmra.mrb[16].mxu0 %vm1725_vm2, %v3436_v11  ;;  %v3439_v11 = vpack.c.bf16 %v13994_v16, %v3419_v33 }
  0x9f   : > { %11130 = vmatmul.mubr.msk.bf16.gmra.mrb[28].mxu1 %vm1725_vm2, %v1673_v32  ;;  %11291 = vmatprep.mubr.msk.bf16.mxu0 %vm1725_vm2, %v3437_v51  ;;  %v18287_v32 = vld [vmem:[#allocation12_spill] sm:$0xff]  ;;  %v2228_v51 = vmul.f32 %v18291_v38, %v18290_v21 }
  0xa0   : > { %11135 = vmatprep.mubr.msk.bf16.mxu1 %vm1725_vm2, %v2251_v5  ;;  %v2253_v17 = vpack.c.bf16 %v2224_v9, %v18287_v32  ;;  %v18288_v5 = vld [vmem:[#allocation23_spill] sm:$0xff]  ;;  %v3421_v9 = vmul.f32 %v1597_v48, %v13971_v25  ;;  %v18299_v48 = vld [vmem:[#allocation44_spill] sm:$0xff] }
  0xa1   : > { %v2226_v13 = vmul.f32 %v18289_v22, %v18288_v5 }
  0xa3   : > { %v2254_v19 = vpack.c.bf16 %v2226_v13, %v18293_v0  ;;  %v18300_v13 = vld [vmem:[#allocation36_spill] sm:$0xff] }
  0xa4   : > { %v2232_v25 = vmul.f32 %v18300_v13, %v18299_v48 }
  0xa6   : > { %11292 = vmatmul.mubr.msk.bf16.gmra.mrb[20].mxu0 %vm1725_vm2, %v3438_v57 }
  0xa7   : > { %11136 = vmatmul.mubr.msk.bf16.vlgmr.msra.gmra.mrb[0].mxu1 %vm1725_vm2, %v2252_v55  ;;  %11295 = vmatprep.mubr.msk.bf16.mxu0 %vm1725_vm2, %v3439_v11  ;;  %v18294_v55 = vld [vmem:[#allocation50_spill] sm:$0xff] }
  0xa8   : > { %11168 = vmatpush3.bf16.msra.mxu1 %v13890_v56  ;;  %11139 = vmatprep.mubr.msk.bf16.mxu1 %vm1725_vm2, %v2253_v17  ;;  %v3423_v33 = vmul.f32 %v18294_v55, %v13978_v27  ;;  %v2255_v56 = vpack.c.bf16 %v2228_v51, %v18295_v12  ;;  %v3440_v17 = vpack.c.bf16 %v14094_v29, %v3421_v9  ;;  %v18301_v11 = vld [vmem:[#allocation14_spill] sm:$0xff]  ;;  %v3426_v51 = vmul.f32 0.0, %v13143_v18  ;;  %v18315_v55 = vld [vmem:[#allocation5_spill] sm:$0xff] }
  0xa9   : > { %11983 = vmatprep.subr.bf16.mxu1 %v18292_v61  ;;  %v3425_v27 = vmul.f32 0.0, %v18301_v11  ;;  %v2256_v9 = vpack.c.bf16 %v2230_v23, %v18302_v14  ;;  %v18309_v23 = vld [vmem:[#allocation4_spill] sm:$0xff] }
  0xaa   : > { %v3441_v57 = vpack.c.bf16 %v18298_v46, %v3423_v33  ;;  %v18304_v33 = vld [vmem:[#allocation45_spill] sm:$0xff] }
  0xab   : > { %v3442_v6 = vpack.c.bf16 %v3426_v51, %v3425_v27  ;;  %v18311_v27 = vld [vmem:[#allocation59_spill] sm:$0xff] }
  0xac   : > { %v18312_v51 = vld [vmem:[#allocation51_spill] sm:$0xff] }
  0xae   : > { %11296 = vmatmul.mubr.msk.bf16.gmra.mrb[24].mxu0 %vm1725_vm2, %v3440_v17  ;;  %v18307_v17 = vld [vmem:[#allocation43_spill] sm:$0xff] }
  0xaf   : > { %11140 = vmatmul.mubr.msk.bf16.gmra.mrb[4].mxu1 %vm1725_vm2, %v2254_v19  ;;  %11299 = vmatprep.mubr.msk.bf16.mxu0 %vm1725_vm2, %v3441_v57  ;;  %v18303_v19 = vld [vmem:[#allocation37_spill] sm:$0xff]  ;;  %v2236_v49 = vmul.f32 %v18307_v17, %v18306_v54  ;;  %v18310_v57 = vld [vmem:[#allocation46_spill] sm:$0xff] }
  0xb0   : > { %11143 = vmatprep.mubr.msk.bf16.mxu1 %vm1725_vm2, %v2255_v56  ;;  %v2257_v39 = vpack.c.bf16 %v2232_v25, %v18303_v19  ;;  %v18305_v56 = vld [vmem:[#allocation41_spill] sm:$0xff] }
  0xb1   : > { %v2234_v37 = vmul.f32 %v18305_v56, %v18304_v33  ;;  %v2259_v25 = vpack.c.bf16 %v2236_v49, %v18310_v57  ;;  %v18318_v49 = vld [vmem:[#allocation54_spill] sm:$0xff] }
  0xb3   : > { %v2258_v46 = vpack.c.bf16 %v2234_v37, %v18308_v30 }
  0xb6   : > { %11300 = vmatmul.mubr.msk.bf16.gmra.mrb[28].mxu0 %vm1725_vm2, %v3442_v6  ;;  %v18316_v6 = vld [vmem:[#allocation52_spill] sm:$0xff] }
  0xb7   : > { %11144 = vmatmul.mubr.msk.bf16.gmra.mrb[8].mxu1 %vm1725_vm2, %v2256_v9  ;;  %11305 = vmatprep.mubr.msk.bf16.mxu0 %vm1725_vm2, %v18309_v23  ;;  %v2238_v9 = vmul.f32 %v18312_v51, %v18311_v27  ;;  %v18317_v23 = vld [vmem:[#allocation6_spill] sm:$0xff]  ;;  %v18319_v27 = vld [vmem:[#allocation64_spill] sm:$0xff] }
  0xb8   : > { %11147 = vmatprep.mubr.msk.bf16.mxu1 %vm1725_vm2, %v2257_v39  ;;  %v18313_v39 = vld [vmem:[#allocation62_spill] sm:$0xff] }
  0xb9   : > { %v2240_v29 = vmul.f32 %v18314_v63, %v18313_v39  ;;  %v2260_v37 = vpack.c.bf16 %v2238_v9, %v18316_v6  ;;  %v18321_v39 = vld [vmem:[#allocation67_spill] sm:$0xff]  ;;  %v18324_v9 = vld [vmem:[#allocation60_spill] sm:$0xff]  ;;  %v18325_v6 = vld [vmem:[#allocation9_spill] sm:$0xff] }
  0xba   : > { %v2244_v16 = vmul.f32 %v18322_v20, %v18321_v39  ;;  %v18331_v20 = vld [vmem:[#allocation11_spill] sm:$0xff] }
  0xbe   : > { %11306 = vmatmul.mubr.msk.bf16.vlgmr.msra.gmra.mrb[0].mxu0 %vm1725_vm2, %v18315_v55  ;;  %v18323_v55 = vld [vmem:[#allocation7_spill] sm:$0xff] }
  0xbf   : > { %11148 = vmatmul.mubr.msk.bf16.gmra.mrb[12].mxu1 %vm1725_vm2, %v2258_v46  ;;  %11338 = vmatpush3.bf16.msra.mxu0 %v13941_v2  ;;  %v2261_v46 = vpack.c.bf16 %v2240_v29, %v18318_v49  ;;  %v18328_v49 = vld [vmem:[#allocation68_spill] sm:$0xff] }
  0xc0   : > { %11151 = vmatprep.mubr.msk.bf16.mxu1 %vm1725_vm2, %v2259_v25  ;;  %11309 = vmatprep.mubr.msk.bf16.mxu0 %vm1725_vm2, %v18317_v23  ;;  %v2242_v25 = vmul.f32 %v18320_v7, %v18319_v27  ;;  %v18326_v23 = vld [vmem:[#allocation66_spill] sm:$0xff]  ;;  %v18330_v7 = vld [vmem:[#allocation72_spill] sm:$0xff] }
  0xc1   : > { %v2263_v29 = vpack.c.bf16 %v2244_v16, %v18326_v23  ;;  %v18336_v23 = vld [vmem:[#allocation75_spill] sm:$0xff] }
  0xc2   : > { %v2262_v2 = vpack.c.bf16 %v2242_v25, %v18324_v9  ;;  %v18333_v9 = vld [vmem:[#allocation20_spill] sm:$0xff] }
  0xc6   : > { %11310 = vmatmul.mubr.msk.bf16.gmra.mrb[4].mxu0 %vm1725_vm2, %v18323_v55  ;;  %v18332_v55 = vld [vmem:[#allocation69_spill] sm:$0xff] }
  0xc7   : > { %11152 = vmatmul.mubr.msk.bf16.gmra.mrb[16].mxu1 %vm1725_vm2, %v2260_v37  ;;  %11313 = vmatprep.mubr.msk.bf16.mxu0 %vm1725_vm2, %v18325_v6  ;;  %v18327_v37 = vld [vmem:[#allocation71_spill] sm:$0xff]  ;;  %v18334_v6 = vld [vmem:[#allocation73_spill] sm:$0xff] }
  0xc8   : > { %11155 = vmatprep.mubr.msk.bf16.mxu1 %vm1725_vm2, %v2261_v46  ;;  %v2246_v27 = vmul.f32 %v18328_v49, %v18327_v37  ;;  %v18329_v46 = vld [vmem:[#allocation76_spill] sm:$0xff] }
  0xc9   : > { %v2248_v39 = vmul.f32 %v18330_v7, %v18329_v46  ;;  %v18338_v7 = vld [vmem:[#allocation26_spill] sm:$0xff] }
  0xca   : > { %v2264_v25 = vpack.c.bf16 %v2246_v27, %v18332_v55 }
  0xcb   : > { %v2265_v16 = vpack.c.bf16 %v2248_v39, %v18334_v6 }
  0xce   : > { %11314 = vmatmul.mubr.msk.bf16.gmra.mrb[8].mxu0 %vm1725_vm2, %v18331_v20  ;;  %v18339_v20 = vld [vmem:[#allocation78_spill] sm:$0xff] }
  0xcf   : > { %11156 = vmatmul.mubr.msk.bf16.gmra.mrb[20].mxu1 %vm1725_vm2, %v2262_v2  ;;  %11317 = vmatprep.mubr.msk.bf16.mxu0 %vm1725_vm2, %v18333_v9  ;;  %v18335_v2 = vld [vmem:[#allocation82_spill] sm:$0xff]  ;;  %v18340_v9 = vld [vmem:[#allocation31_spill] sm:$0xff] }
  0xd0   : > { %11159 = vmatprep.mubr.msk.bf16.mxu1 %vm1725_vm2, %v2263_v29  ;;  %v2250_v37 = vmul.f32 %v18336_v23, %v18335_v2  ;;  %v18337_v29 = vld [vmem:[#allocation80_spill] sm:$0xff]  ;;  %v18344_v2 = vld [vmem:[#allocation58_spill] sm:$0xff] }
  0xd1   : > { %v2513_v46 = vmul.f32 %v18301_v11, %v18337_v29  ;;  %v18342_v11 = vld [vmem:[#allocation39_spill] sm:$0xff] }
  0xd2   : > { %v2266_v27 = vpack.c.bf16 %v2250_v37, %v18339_v20  ;;  %v12784_v29 = vld [vmem:[%s12875_s14 + $0x8] sm:$0xff] }
  0xd3   : > { %v2545_v39 = vpack.c.bf16 %v13143_v18, %v2513_v46  ;;  %v18346_v18 = vpack.c.bf16 %v13476_v8, %v13982_v53  ;;  %v18347_v46 = vld [vmem:[#allocation40_spill] sm:$0xff]  ;;  %v18350_v8 = vpack.c.bf16 %v13572_v47, %v13998_v35  ;;  %v12783_v53 = vld [vmem:[%s12875_s14] sm:$0xff]  ;;  %v18354_v35 = vpack.c.bf16 %v13701_v50, %v14012_v3 }
  0xd4   : > { %v18356_v3 = vpack.c.bf16 %v13895_v1, %v14030_v26  ;;  %v18359_v26 = vpack.c.bf16 %v13950_v10, %v14056_v45  ;;  %v18361_v10 = vld [vmem:[#allocation52_spill] sm:$0xff] }
  0xd6   : > { %11318 = vmatmul.mubr.msk.bf16.gmra.mrb[12].mxu0 %vm1725_vm2, %v18338_v7 }
  0xd7   : > { %11160 = vmatmul.mubr.msk.bf16.gmra.mrb[24].mxu1 %vm1725_vm2, %v2264_v25  ;;  %11321 = vmatprep.mubr.msk.bf16.mxu0 %vm1725_vm2, %v18340_v9  ;;  %v18341_v25 = vld [vmem:[#allocation32_spill] sm:$0xff] }
  0xd8   : > { %11163 = vmatprep.mubr.msk.bf16.mxu1 %vm1725_vm2, %v2265_v16  ;;  %v18343_v16 = vld [vmem:[#allocation55_spill] sm:$0xff] }
  0xd9   : > { %v18345_v37 = vpack.c.bf16 %v18343_v16, %v18344_v2  ;;  %v12781_v2 = vld [vmem:[%s12875_s14 + $0xf0] sm:$0xff]  ;;  %v12782_v16 = vld [vmem:[%s12875_s14 + $0xf8] sm:$0xff] }
  0xde   : > { %11322 = vmatmul.mubr.msk.bf16.gmra.mrb[16].mxu0 %vm1725_vm2, %v18341_v25 }
  0xdf   : > { %11164 = vmatmul.mubr.msk.bf16.gmra.mrb[28].mxu1 %vm1725_vm2, %v2266_v27  ;;  %11325 = vmatprep.mubr.msk.bf16.mxu0 %vm1725_vm2, %v18342_v11  ;;  %v18348_v27 = vld [vmem:[#allocation47_spill] sm:$0xff] }
  0xe0   : > { %11169 = vmatprep.mubr.msk.bf16.mxu1 %vm1725_vm2, %v2545_v39  ;;  %v18349_v39 = vpack.c.bf16 %v13548_v41, %v13986_v59  ;;  %v18352_v41 = vld [vmem:[#allocation16_spill] sm:$0xff] }
  0xe1   : > { %v3984_v59 = vmul.f32 %v18285_v34, %v18352_v41  ;;  %v3988_v34 = vmul.f32 %v18291_v38, %v18284_v4  ;;  %v18362_v38 = vld [vmem:[#allocation86_spill] sm:$0xff] }
  0xe3   : > { %v4015_v47 = vpack.c.bf16 %v3984_v59, %v18287_v32  ;;  %v4017_v50 = vpack.c.bf16 %v3988_v34, %v18295_v12  ;;  %v3992_v32 = vmul.f32 %v18300_v13, %v18290_v21  ;;  %v18357_v12 = vpack.c.bf16 %v13899_v62, %v14034_v60  ;;  %v18374_v59 = vld [vmem:[#allocation62_spill] sm:$0xff] }
  0xe4   : > { %v18360_v60 = vpack.c.bf16 %v13990_v31, %v14075_v28  ;;  %v18365_v31 = vld [vmem:[#allocation87_spill] sm:$0xff]  ;;  %v18366_v28 = vld [vmem:[#allocation50_spill] sm:$0xff] }
  0xe5   : > { %v4019_v1 = vpack.c.bf16 %v3992_v32, %v18303_v19  ;;  %v2543_v19 = vmul.f32 %v18366_v28, %v18365_v31 }
  0xe6   : > { %11326 = vmatmul.mubr.msk.bf16.gmra.mrb[20].mxu0 %vm1725_vm2, %v18347_v46 }
  0xe7   : > { %11170 = vmatmul.mubr.msk.bf16.vlgmr.msra.gmra.mrb[0].mxu1 %vm1725_vm2, %v18345_v37  ;;  %11329 = vmatprep.mubr.msk.bf16.mxu0 %vm1725_vm2, %v18348_v27  ;;  %v14242_v37 = vpack.c.bf16 %v12782_v16, %v12781_v2  ;;  %v3720_v27 = vmul.f32 0.0, %v12784_v29  ;;  %v18353_v2 = vpack.c.bf16 %v13676_v44, %v14002_v52  ;;  %v3986_v29 = vmul.f32 %v18289_v22, %v18282_v24  ;;  %v18372_v16 = vld [vmem:[#allocation57_spill] sm:$0xff] }
  0xe8   : > { %11984 = vmatpush3.bf16.msra.mxu1 %v18292_v61  ;;  %11173 = vmatprep.mubr.msk.bf16.mxu1 %vm1725_vm2, %v18346_v18  ;;  %v18351_v61 = vld [vmem:[#allocation48_spill] sm:$0xff]  ;;  %v3719_v18 = vmul.f32 0.0, %v12783_v53  ;;  %v18355_v52 = vpack.c.bf16 %v13729_v58, %v14023_v15  ;;  %v3990_v22 = vmul.f32 %v18297_v40, %v18288_v5  ;;  %v18358_v15 = vpack.c.bf16 %v13946_v36, %v14052_v43  ;;  %v18373_v53 = vld [vmem:[#allocation49_spill] sm:$0xff] }
  0xe9   : > { %v4016_v44 = vpack.c.bf16 %v3986_v29, %v18293_v0  ;;  %v3994_v40 = vmul.f32 %v18305_v56, %v18296_v42  ;;  %v3998_v43 = vmul.f32 %v18312_v51, %v18304_v33  ;;  %v18363_v0 = vld [vmem:[#allocation88_spill] sm:$0xff]  ;;  %v18367_v56 = vld [vmem:[#allocation54_spill] sm:$0xff] }
  0xea   : > { %v4018_v58 = vpack.c.bf16 %v3990_v22, %v18302_v14  ;;  %v3996_v14 = vmul.f32 %v18307_v17, %v18299_v48  ;;  %v18364_v13 = vpack.c.bf16 %v18362_v38, %v18363_v0  ;;  %v18377_v29 = vld [vmem:[#allocation66_spill] sm:$0xff] }
  0xeb   : > { %v4020_v62 = vpack.c.bf16 %v3994_v40, %v18308_v30  ;;  %v4000_v30 = vmul.f32 %v18314_v63, %v18306_v54  ;;  %v4022_v45 = vpack.c.bf16 %v3998_v43, %v18361_v10  ;;  %v18371_v63 = vld [vmem:[#allocation59_spill] sm:$0xff] }
  0xec   : > { %v4021_v36 = vpack.c.bf16 %v3996_v14, %v18310_v57  ;;  %v18368_v57 = vld [vmem:[#allocation89_spill] sm:$0xff] }
  0xed   : > { %v4023_v17 = vpack.c.bf16 %v4000_v30, %v18367_v56 }
  0xee   : > { %11330 = vmatmul.mubr.msk.bf16.gmra.mrb[24].mxu0 %vm1725_vm2, %v18351_v61 }
  0xef   : > { %11174 = vmatmul.mubr.msk.bf16.gmra.mrb[4].mxu1 %vm1725_vm2, %v18349_v39  ;;  %11333 = vmatprep.mubr.msk.bf16.mxu0 %vm1725_vm2, %v14242_v37  ;;  %v3736_v39 = vpack.c.bf16 %v3720_v27, %v3719_v18  ;;  %v18369_v27 = vld [vmem:[#allocation90_spill] sm:$0xff]  ;;  %v2560_v18 = vpack.c.bf16 %v18373_v53, %v2543_v19 }
  0xf0   : > { %11177 = vmatprep.mubr.msk.bf16.mxu1 %vm1725_vm2, %v18350_v8  ;;  %v18370_v51 = vpack.c.bf16 %v18368_v57, %v18369_v27  ;;  %v4002_v8 = vmul.f32 %v18372_v16, %v18371_v63 }
  0xf6   : > { %11334 = vmatmul.mubr.msk.bf16.gmra.mrb[28].mxu0 %vm1725_vm2, %v3736_v39  ;;  %v18375_v39 = vld [vmem:[#allocation61_spill] sm:$0xff] }
  0xf7   : > { %11178 = vmatmul.mubr.msk.bf16.gmra.mrb[8].mxu1 %vm1725_vm2, %v18353_v2  ;;  %11339 = vmatprep.mubr.msk.bf16.mxu0 %vm1725_vm2, %v4015_v47  ;;  %v4004_v2 = vmul.f32 %v18375_v39, %v18374_v59  ;;  %v18376_v47 = vld [vmem:[#allocation60_spill] sm:$0xff] }
  0xf8   : > { %11181 = vmatprep.mubr.msk.bf16.mxu1 %vm1725_vm2, %v18354_v35  ;;  %v4024_v35 = vpack.c.bf16 %v4002_v8, %v18376_v47 }
  0xf9   : > { %v4025_v34 = vpack.c.bf16 %v4004_v2, %v18377_v29  ;;  %v14394_v2 = vld [vmem:[%s17487_s2] ss:$0 sm:$0xff] }
  0xfe   : > { %11340 = vmatmul.mubr.msk.bf16.vlgmr.msra.gmra.mrb[0].mxu0 %vm1725_vm2, %v4016_v44  ;;  %v18378_v44 = vld [vmem:[#allocation64_spill] sm:$0xff] }
  0xff   : > { %11182 = vmatmul.mubr.msk.bf16.gmra.mrb[12].mxu1 %vm1725_vm2, %v18355_v52  ;;  %11343 = vmatprep.mubr.msk.bf16.mxu0 %vm1725_vm2, %v4017_v50  ;;  %v4006_v52 = vmul.f32 %v18328_v49, %v18378_v44  ;;  %v18379_v50 = vld [vmem:[#allocation67_spill] sm:$0xff] }
 0x100   : > { %11185 = vmatprep.mubr.msk.bf16.mxu1 %vm1725_vm2, %v18356_v3  ;;  %v18380_v3 = vld [vmem:[#allocation72_spill] sm:$0xff] }
 0x101   : > { %v4008_v22 = vmul.f32 %v18380_v3, %v18379_v50  ;;  %v4026_v32 = vpack.c.bf16 %v4006_v52, %v18332_v55  ;;  %v14666_v50 = vld [vmem:[%s17488_s3 + $0x10] sm:$0xff]  }
 0x102   : > { %18441 = vst [vmem:[#allocation61_spill] sm:$0xff] %v14666_v50 }
 0x106   : > { %11344 = vmatmul.mubr.msk.bf16.gmra.mrb[4].mxu0 %vm1725_vm2, %v4018_v58  ;;  %v4027_v58 = vpack.c.bf16 %v4008_v22, %v18334_v6 }
 0x107   : > { %11186 = vmatmul.mubr.msk.bf16.gmra.mrb[16].mxu1 %vm1725_vm2, %v18357_v12  ;;  %11347 = vmatprep.mubr.msk.bf16.mxu0 %vm1725_vm2, %v4019_v1  ;;  %v18382_v12 = vld [vmem:[#allocation76_spill] sm:$0xff]  ;;  %v18383_v1 = vld [vmem:[#allocation83_spill] sm:$0xff] }
 0x108   : > { %11189 = vmatprep.mubr.msk.bf16.mxu1 %vm1725_vm2, %v18358_v15  ;;  %v4012_v15 = vmul.f32 %v18383_v1, %v18382_v12 }
 0x10e   : > { %11348 = vmatmul.mubr.msk.bf16.gmra.mrb[8].mxu0 %vm1725_vm2, %v4020_v62 }
 0x10f   : > { %11190 = vmatmul.mubr.msk.bf16.gmra.mrb[20].mxu1 %vm1725_vm2, %v18359_v26  ;;  %11351 = vmatprep.mubr.msk.bf16.mxu0 %vm1725_vm2, %v4021_v36  ;;  %v18387_v26 = vld [vmem:[#allocation47_spill] sm:$0xff] }
 0x110   : > { %11193 = vmatprep.mubr.msk.bf16.mxu1 %vm1725_vm2, %v18360_v60 }
 0x116   : > { %11352 = vmatmul.mubr.msk.bf16.gmra.mrb[12].mxu0 %vm1725_vm2, %v4022_v45 }
 0x117   : > { %11194 = vmatmul.mubr.msk.bf16.gmra.mrb[24].mxu1 %vm1725_vm2, %v18364_v13  ;;  %11355 = vmatprep.mubr.msk.bf16.mxu0 %vm1725_vm2, %v4023_v17 }
 0x118   : > { %11197 = vmatprep.mubr.msk.bf16.mxu1 %vm1725_vm2, %v18370_v51 }
 0x11e   : > { %11356 = vmatmul.mubr.msk.bf16.gmra.mrb[16].mxu0 %vm1725_vm2, %v4024_v35 }
 0x11f   : > { %11198 = vmatmul.mubr.msk.bf16.gmra.mrb[28].mxu1 %vm1725_vm2, %v2560_v18  ;;  %11359 = vmatprep.mubr.msk.bf16.mxu0 %vm1725_vm2, %v4025_v34 }
 0x120   : > { %11219 = vmatprep.mubr.msk.bf16.mxu1 %vm1725_vm2, %v18338_v7  ;;  %v18381_v7 = vld [vmem:[#allocation71_spill] sm:$0xff] }
 0x121   : > { %v4010_v49 = vmul.f32 %v18336_v23, %v18381_v7  ;;  %v18386_v23 = vld [vmem:[#allocation13_spill] sm:$0xff] }
 0x122   : > { %v4014_v14 = vmul.f32 0.0, %v18386_v23 }
 0x123   : > { %v4028_v55 = vpack.c.bf16 %v4010_v49, %v18339_v20  ;;  %v12763_v20 = vld [vmem:[%s17488_s3 + $0x8] sm:$0xff]  }
 0x124   : > { %11371 = vmatprep.subr.bf16.mxu1 %v12763_v20 }
 0x126   : > { %11360 = vmatmul.mubr.msk.bf16.gmra.mrb[20].mxu0 %vm1725_vm2, %v4026_v32 }
 0x127   : > { %11220 = vmatmul.mubr.msk.bf16.vlgmr.msra.gmra.mrb[16].mxu1 %vm1725_vm2, %v18340_v9  ;;  %11363 = vmatprep.mubr.msk.bf16.mxu0 %vm1725_vm2, %v4027_v58  ;;  %v18384_v9 = vld [vmem:[#allocation84_spill] sm:$0xff] }
 0x128   : > { %11223 = vmatprep.mubr.msk.bf16.mxu1 %vm1725_vm2, %v18341_v25  ;;  %v4029_v6 = vpack.c.bf16 %v4012_v15, %v18384_v9  ;;  %v18385_v25 = vld [vmem:[#allocation17_spill] sm:$0xff]  ;;  %11372 = vmatpush3.bf16.msra.mxu1 %v12763_v20 }
 0x129   : > { %v4013_v40 = vmul.f32 0.0, %v18385_v25 }
 0x12b   : > { %v4030_v62 = vpack.c.bf16 %v4014_v14, %v4013_v40 }
 0x12e   : > { %11364 = vmatmul.mubr.msk.bf16.gmra.mrb[24].mxu0 %vm1725_vm2, %v4028_v55 }
 0x12f   : > { %11224 = vmatmul.mubr.msk.bf16.gmra.mrb[20].mxu1 %vm1725_vm2, %v18342_v11  ;;  %11367 = vmatprep.mubr.msk.bf16.mxu0 %vm1725_vm2, %v4029_v6  ;;  %v14384_v11 = vld [vmem:[%s17488_s3] sm:$0xff]  }
 0x130   : > { %11227 = vmatprep.mubr.msk.bf16.mxu1 %vm1725_vm2, %v18347_v46  ;;  %11405 = vmatprep.subr.bf16.mxu1 %v14384_v11 }
 0x136   : > { %11368 = vmatmul.mubr.msk.bf16.gmra.mrb[28].mxu0 %vm1725_vm2, %v4030_v62 }
 0x137   : > { %11228 = vmatmul.mubr.msk.bf16.gmra.mrb[24].mxu1 %vm1725_vm2, %v18387_v26 }
 0x138   : > { %11231 = vmatprep.mubr.msk.bf16.mxu1 %vm1725_vm2, %v18351_v61 }
 0x13f   : > { %11232 = vmatmul.mubr.msk.bf16.gmra.mrb[28].mxu1 %vm1725_vm2, %v14242_v37  ;;  %vm4519_vm2 = vcmask 130048  }
 0x1ba   : > { %v11171_v46 = vpop.f32.mrb[0].mxu1 }
 0x1bb   : > { %v2648_v61 = vpop.f32.mrb[1].mxu1 }
 0x1bc   : > { %v11172_v36 = vpop.f32.mrb[2].mxu1 }
 0x1bd   : > { %v2651_v60 = vpop.f32.mrb[3].mxu1 }
 0x1c2   : > { %v11175_v43 = vpop.f32.mrb[4].mxu1 }
 0x1c3   : > { %v2664_v30 = vpop.f32.mrb[5].mxu1 }
 0x1c4   : > { %v11176_v37 = vpop.f32.mrb[6].mxu1 }
 0x1c5   : > { %v2667_v10 = vpop.f32.mrb[7].mxu1 }
 0x1ca   : > { %v11179_v45 = vpop.f32.mrb[8].mxu1 }
 0x1cb   : > { %v2680_v38 = vpop.f32.mrb[9].mxu1 }
 0x1cc   : > { %v11180_v0 = vpop.f32.mrb[10].mxu1 }
 0x1cd   : > { %v2683_v13 = vpop.f32.mrb[11].mxu1 }
 0x1d1   : > { %v11341_v57 = vpop.f32.mrb[0].mxu0 }
 0x1d2   : > { %v11183_v28 = vpop.f32.mrb[12].mxu1  ;;  %v14387_v27 = vadd.f32 %v11341_v57, %v11171_v46  ;;  %v4118_v51 = vpop.f32.mrb[1].mxu0 }
 0x1d3   : > { %v2696_v19 = vpop.f32.mrb[13].mxu1  ;;  %v14389_v16 = vadd.f32 %v4118_v51, %v2648_v61  ;;  %v11342_v8 = vpop.f32.mrb[2].mxu0 }
 0x1d4   : > { %v11184_v56 = vpop.f32.mrb[14].mxu1  ;;  %v11987_v53 = vadd.f32 %v11342_v8, %v11172_v36  ;;  %v4121_v18 = vpop.f32.mrb[3].mxu0 }
 0x1d5   : > { %v2699_v17 = vpop.f32.mrb[15].mxu1  ;;  %v11988_v39 = vadd.f32 %v4121_v18, %v2651_v60 }
 0x1d6   : > { %v4287_v35 = vadd.f32 %v11987_v53, %v14394_v2 }
 0x1d8   : > { %v14400_v1 = vmax.f32 %v4287_v35, 0.0 }
 0x1d9   : > { %v11345_v47 = vpop.f32.mrb[4].mxu0 }
 0x1da   : > { %v11989_v29 = vadd.f32 %v11345_v47, %v11175_v43  ;;  %v4134_v34 = vpop.f32.mrb[5].mxu0  ;;  %18388 = vst [vmem:[#allocation15_spill] sm:$0xff] %v14400_v1  ;;  %v17670_v40 = vrot.slane %v14400_v1, 7 }
 0x1db   : > { %v11990_v52 = vadd.f32 %v4134_v34, %v2664_v30  ;;  %v11346_v3 = vpop.f32.mrb[6].mxu0 }
 0x1dc   : > { %v14397_v22 = vadd.f32 %v11346_v3, %v11176_v37  ;;  %v4137_v32 = vpop.f32.mrb[7].mxu0  ;;  %v18394_v37 = vld [vmem:[#allocation8_spill] sm:$0xff]  ;;  %v4290_v51 = vadd.f32 %v11989_v29, %v14394_v2 }
 0x1dd   : > { %v4288_v58 = vadd.f32 %v11990_v52, %v14394_v2  ;;  %v11992_v49 = vadd.f32 %v4137_v32, %v2667_v10 }
 0x1de   : > { %v14433_v35 = vmax.f32 %v4290_v51, 0.0  ;;  %v4285_v51 = vadd.f32 %v11988_v39, %v14394_v2  ;;  %v4291_v39 = vadd.f32 %v14397_v22, %v14394_v2 }
 0x1df   : > { %v14402_v15 = vmax.f32 %v4288_v58, 0.0  ;;  %v4289_v55 = vadd.f32 %v11992_v49, %v14394_v2 }
 0x1e0   : > { %18396 = vst [vmem:[#allocation30_spill] sm:$0xff] %v14433_v35  ;;  %v17667_v32 = vrot.slane %v14433_v35, 1 }
 0x1e1   : > { %18389 = vst [vmem:[#allocation12_spill] sm:$0xff] %v14402_v15  ;;  %v4352_v9 = vrot.slane %v14402_v15, 7  ;;  %v14406_v6 = vmax.f32 %v4289_v55, 0.0  ;;  %v11349_v25 = vpop.f32.mrb[8].mxu0 }
 0x1e2   : > { %v11993_v23 = vadd.f32 %v11349_v25, %v11179_v45  ;;  %v4150_v14 = vpop.f32.mrb[9].mxu0 }
 0x1e3   : > { %18390 = vst [vmem:[#allocation21_spill] sm:$0xff] %v14406_v6  ;;  %v17669_v62 = vrot.slane %v14406_v6, 7  ;;  %v14410_v26 = vadd.f32 %v4150_v14, %v2680_v38  ;;  %v11350_v20 = vpop.f32.mrb[10].mxu0  ;;  %v14416_v60 = vsel %vm1593_vm4, %v17670_v40, %v4352_v9  ;;  %v4949_v34 = vrot.slane %v14406_v6, 1 }
 0x1e4   : > { %v11995_v46 = vadd.f32 %v11350_v20, %v11180_v0  ;;  %v4153_v61 = vpop.f32.mrb[11].mxu0  ;;  %18392 = vst [vmem:[#allocation24_spill] sm:$0xff] %v14416_v60  ;;  %v14428_v10 = vmul.f32 %v14416_v60, %v18394_v37  ;;  %v14488_v40 = vmax.f32 %v4291_v39, 0.0 }
 0x1e5   : > { %v14418_v43 = vadd.f32 %v4153_v61, %v2683_v13  ;;  %v14424_v30 = vsel %vm1593_vm4, %v4352_v9, %v17669_v62  ;;  %v4294_v62 = vadd.f32 %v11993_v23, %v14394_v2 }
 0x1e6   : > { %18393 = vst [vmem:[#allocation3_spill] sm:$0xff] %v14424_v30  ;;  %18395 = vst [vmem:[#allocation27_spill] sm:$0xff] %v14428_v10  ;;  %v4295_v22 = vadd.f32 %v11995_v46, %v14394_v2  ;;  %v18483_v30 = vld [vmem:[#allocation19_spill] sm:$0xff] }
 0x1e7   : > { %18403 = vst [vmem:[#allocation43_spill] sm:$0xff] %v14488_v40  ;;  %v4293_v46 = vadd.f32 %v14418_v43, %v14394_v2 }
 0x1e8   : > { %v14516_v43 = vmax.f32 %v4295_v22, 0.0 }
 0x1e9   : > { %v11353_v38 = vpop.f32.mrb[12].mxu0 }
 0x1ea   : > { %v11997_v0 = vadd.f32 %v11353_v38, %v11183_v28  ;;  %v4166_v57 = vpop.f32.mrb[13].mxu0  ;;  %v14441_v28 = vsel %vm2186_vm3, %v4949_v34, %v17667_v32  ;;  %18410 = vst [vmem:[#allocation5_spill] sm:$0xff] %v14516_v43 }
 0x1eb   : > { %v11998_v13 = vadd.f32 %v4166_v57, %v2696_v19  ;;  %v11354_v8 = vpop.f32.mrb[14].mxu0  ;;  %18397 = vst [vmem:[#allocation34_spill] sm:$0xff] %v14441_v28  ;;  %v17668_v19 = vrot.slane %v14402_v15, 1  ;;  %v14446_v55 = vmul.f32 %v14441_v28, %v18282_v24 }
 0x1ec   : > { %v11999_v53 = vadd.f32 %v11354_v8, %v11184_v56  ;;  %v4169_v18 = vpop.f32.mrb[15].mxu0  ;;  %v4298_v23 = vadd.f32 %v11997_v0, %v14394_v2 }
 0x1ed   : > { %v12000_v47 = vadd.f32 %v4169_v18, %v2699_v17  ;;  %18398 = vst [vmem:[#allocation36_spill] sm:$0xff] %v14446_v55  ;;  %v14452_v14 = vsel %vm2186_vm3, %v17668_v19, %v4949_v34 }
 0x1ee   : > { %18399 = vst [vmem:[#allocation14_spill] sm:$0xff] %v14452_v14  ;;  %v18522_v14 = vld [vmem:[#allocation64_spill] sm:$0xff] }
 0x1f1   : > { %v11357_v52 = vpop.f32.mrb[16].mxu0 }
 0x1f2   : > { %v4182_v3 = vpop.f32.mrb[17].mxu0 }
 0x1f3   : > { %v11358_v58 = vpop.f32.mrb[18].mxu0 }
 0x1f4   : > { %v4185_v49 = vpop.f32.mrb[19].mxu0 }
 0x1f9   : > { %v11361_v38 = vpop.f32.mrb[20].mxu0 }
 0x1fa   : > { %v11221_v56 = vpop.f32.mrb[16].mxu1  ;;  %v4198_v18 = vpop.f32.mrb[21].mxu0 }
 0x1fb   : > { %v12001_v17 = vadd.f32 %v11357_v52, %v11221_v56  ;;  %v3006_v29 = vpop.f32.mrb[17].mxu1  ;;  %v11362_v52 = vpop.f32.mrb[22].mxu0 }
 0x1fc   : > { %v12002_v9 = vadd.f32 %v4182_v3, %v3006_v29  ;;  %v11222_v25 = vpop.f32.mrb[18].mxu1  ;;  %v4284_v3 = vadd.f32 %v14389_v16, %v14394_v2  ;;  %v4201_v56 = vpop.f32.mrb[23].mxu0  ;;  %v14463_v29 = vmax.f32 %v4285_v51, 0.0 }
 0x1fd   : > { %v14454_v20 = vadd.f32 %v11358_v58, %v11222_v25  ;;  %v3009_v61 = vpop.f32.mrb[19].mxu1  ;;  %v4286_v58 = vadd.f32 %v14387_v27, %v14394_v2  ;;  %v4299_v27 = vadd.f32 %v11999_v53, %v14394_v2  ;;  %v4302_v41 = vadd.f32 %v12001_v17, %v14394_v2 }
 0x1fe   : > { %v14459_v8 = vadd.f32 %v4185_v49, %v3009_v61  ;;  %18400 = vst [vmem:[#allocation35_spill] sm:$0xff] %v14463_v29  ;;  %v14469_v57 = vmax.f32 %v4284_v3, 0.0  ;;  %v4300_v22 = vadd.f32 %v12002_v9, %v14394_v2 }
 0x1ff   : > { %v14506_v0 = vmax.f32 %v4299_v27, 0.0  ;;  %v14524_v27 = vmax.f32 %v4298_v23, 0.0  ;;  %v14550_v23 = vmax.f32 %v4302_v41, 0.0 }
 0x200   : > { %18401 = vst [vmem:[#allocation37_spill] sm:$0xff] %v14469_v57 }
 0x201   : > { %v11365_v51 = vpop.f32.mrb[24].mxu0  ;;  %18407 = vst [vmem:[#allocation51_spill] sm:$0xff] %v14506_v0  ;;  %18413 = vst [vmem:[#allocation9_spill] sm:$0xff] %v14524_v27 }
 0x202   : > { %v11225_v34 = vpop.f32.mrb[20].mxu1  ;;  %v4214_v3 = vpop.f32.mrb[25].mxu0  ;;  %18419 = vst [vmem:[#allocation75_spill] sm:$0xff] %v14550_v23 }
 0x203   : > { %v14467_v25 = vadd.f32 %v11361_v38, %v11225_v34  ;;  %v3022_v45 = vpop.f32.mrb[21].mxu1  ;;  %v14482_v34 = vmax.f32 %v4286_v58, 0.0  ;;  %v4292_v58 = vadd.f32 %v14410_v26, %v14394_v2 }
 0x204   : > { %v14473_v49 = vadd.f32 %v4198_v18, %v3022_v45  ;;  %v11226_v61 = vpop.f32.mrb[22].mxu1  ;;  %v4296_v45 = vadd.f32 %v11998_v13, %v14394_v2  ;;  %v4297_v18 = vadd.f32 %v12000_v47, %v14394_v2  ;;  %v14502_v47 = vmax.f32 %v4294_v62, 0.0 }
 0x205   : > { %v14475_v32 = vadd.f32 %v11362_v52, %v11226_v61  ;;  %v3025_v16 = vpop.f32.mrb[23].mxu1  ;;  %18402 = vst [vmem:[#allocation41_spill] sm:$0xff] %v14482_v34  ;;  %v11366_v52 = vpop.f32.mrb[26].mxu0  ;;  %v17677_v61 = vrot.slane %v14469_v57, 7  ;;  %v14500_v13 = vpack.c.bf16 %v14400_v1, %v14482_v34  ;;  %v14529_v1 = vpack.c.bf16 %v14488_v40, %v14433_v35 }
 0x206   : > { %v14480_v38 = vadd.f32 %v4201_v56, %v3025_v16  ;;  %v4217_v19 = vpop.f32.mrb[27].mxu0  ;;  %v14494_v56 = vpack.c.bf16 %v14463_v29, %v14469_v57  ;;  %18406 = vst [vmem:[#allocation46_spill] sm:$0xff] %v14502_v47  ;;  %v18408_v16 = vrot.slane %v14463_v29, 7  ;;  %v14518_v55 = vmax.f32 %v4296_v45, 0.0 }
 0x207   : > { %18405 = vst [vmem:[#allocation4_spill] sm:$0xff] %v14500_v13  ;;  %v14520_v62 = vmax.f32 %v4297_v18, 0.0  ;;  %18414 = vst [vmem:[#allocation68_spill] sm:$0xff] %v14529_v1  ;;  %v14539_v17 = vmax.f32 %v4292_v58, 0.0  ;;  %v4303_v58 = vadd.f32 %v14454_v20, %v14394_v2  ;;  %v18426_v29 = vrot.slane %v14502_v47, 1 }
 0x208   : > { %18404 = vst [vmem:[#allocation42_spill] sm:$0xff] %v14494_v56  ;;  %v14514_v53 = vsel %vm1593_vm4, %v17677_v61, %v18408_v16  ;;  %18411 = vst [vmem:[#allocation6_spill] sm:$0xff] %v14518_v55  ;;  %v14531_v16 = vmax.f32 %v4293_v46, 0.0  ;;  %v4955_v46 = vrot.slane %v14516_v43, 1 }
 0x209   : > { %18409 = vst [vmem:[#allocation53_spill] sm:$0xff] %v14514_v53  ;;  %18412 = vst [vmem:[#allocation7_spill] sm:$0xff] %v14520_v62  ;;  %v11369_v61 = vpop.f32.mrb[28].mxu0  ;;  %v14567_v20 = vpack.c.bf16 %v14520_v62, %v14518_v55 }
 0x20a   : > { %v11229_v39 = vpop.f32.mrb[24].mxu1  ;;  %18415 = vst [vmem:[#allocation11_spill] sm:$0xff] %v14531_v16  ;;  %18417 = vst [vmem:[#allocation20_spill] sm:$0xff] %v14539_v17  ;;  %v14593_v34 = vsel %vm2186_vm3, %v18426_v29, %v4955_v46 }
 0x20b   : > { %v14522_v10 = vadd.f32 %v11365_v51, %v11229_v39  ;;  %v3038_v26 = vpop.f32.mrb[25].mxu1  ;;  %v14536_v51 = vpack.c.bf16 %v14406_v6, %v14402_v15  ;;  %v4362_v15 = vrot.slane %v14524_v27, 7  ;;  %v14558_v6 = vmax.f32 %v4300_v22, 0.0  ;;  %18422 = vst [vmem:[#allocation31_spill] sm:$0xff] %v14567_v20  ;;  %18427 = vst [vmem:[#allocation39_spill] sm:$0xff] %v14593_v34 }
 0x20c   : > { %v12010_v5 = vadd.f32 %v4214_v3, %v3038_v26  ;;  %v11230_v24 = vpop.f32.mrb[26].mxu1  ;;  %v4363_v3 = vrot.slane %v14506_v0, 7  ;;  %v4230_v26 = vpop.f32.mrb[29].mxu0 }
 0x20d   : > { %v12011_v45 = vadd.f32 %v11366_v52, %v11230_v24  ;;  %v3041_v18 = vpop.f32.mrb[27].mxu1  ;;  %18416 = vst [vmem:[#allocation69_spill] sm:$0xff] %v14536_v51  ;;  %v11370_v9 = vpop.f32.mrb[30].mxu0  ;;  %v14547_v52 = vpack.c.bf16 %v14516_v43, %v14502_v47  ;;  %18420 = vst [vmem:[#allocation26_spill] sm:$0xff] %v14558_v6  ;;  %v14562_v43 = vpack.c.bf16 %v14531_v16, %v14539_v17  ;;  %v18424_v16 = vrot.slane %v14520_v62, 7 }
 0x20e   : > { %v12012_v39 = vadd.f32 %v4217_v19, %v3041_v18  ;;  %v4301_v19 = vadd.f32 %v14459_v8, %v14394_v2  ;;  %v4233_v18 = vpop.f32.mrb[31].mxu0  ;;  %v14571_v8 = vpack.c.bf16 %v14506_v0, %v14524_v27  ;;  %v14575_v24 = vsel %vm1593_vm4, %v4362_v15, %v4363_v3 }
 0x20f   : > { %18418 = vst [vmem:[#allocation73_spill] sm:$0xff] %v14547_v52  ;;  %18421 = vst [vmem:[#allocation78_spill] sm:$0xff] %v14562_v43  ;;  %v14581_v41 = vsel %vm1593_vm4, %v18424_v16, %v4362_v15  ;;  %v18425_v17 = vrot.slane %v14518_v55, 1 }
 0x210   : > { %18423 = vst [vmem:[#allocation32_spill] sm:$0xff] %v14571_v8  ;;  %v14598_v21 = vmax.f32 %v4301_v19, 0.0  ;;  %v4364_v8 = vrot.slane %v14558_v6, 7  ;;  %v4306_v19 = vadd.f32 %v14467_v25, %v14394_v2 }
 0x211   : > { %v14587_v37 = vsel %vm2186_vm3, %v4955_v46, %v18425_v17  ;;  %v4304_v17 = vadd.f32 %v14473_v49, %v14394_v2  ;;  %v4307_v46 = vadd.f32 %v14475_v32, %v14394_v2 }
 0x212   : > { %v11233_v35 = vpop.f32.mrb[28].mxu1  ;;  %18429 = vst [vmem:[#allocation58_spill] sm:$0xff] %v14598_v21  ;;  %v14626_v25 = vsel %vm1593_vm4, %v4363_v3, %v4364_v8 }
 0x213   : > { %v12013_v22 = vadd.f32 %v11369_v61, %v11233_v35  ;;  %v3054_v40 = vpop.f32.mrb[29].mxu1  ;;  %v4366_v35 = vrot.slane %v14550_v23, 7  ;;  %v14596_v61 = vmax.f32 %v4303_v58, 0.0  ;;  %v4305_v58 = vadd.f32 %v14480_v38, %v14394_v2  ;;  %18433 = vst [vmem:[#allocation86_spill] sm:$0xff] %v14626_v25 }
 0x214   : > { %v12014_v15 = vadd.f32 %v4230_v26, %v3054_v40  ;;  %v11234_v16 = vpop.f32.mrb[30].mxu1  ;;  %v14619_v29 = vmax.f32 %v4304_v17, 0.0  ;;  %v14634_v26 = vmax.f32 %v4306_v19, 0.0  ;;  %v4310_v17 = vadd.f32 %v14522_v10, %v14394_v2 }
 0x215   : > { %18428 = vst [vmem:[#allocation55_spill] sm:$0xff] %v14596_v61  ;;  %v4314_v47 = vadd.f32 %v12013_v22, %v14394_v2  ;;  %v12015_v20 = vadd.f32 %v11370_v9, %v11234_v16  ;;  %v3057_v12 = vpop.f32.mrb[31].mxu1  ;;  %v4367_v9 = vrot.slane %v14596_v61, 7  ;;  %v4365_v16 = vrot.slane %v14598_v21, 7 }
 0x216   : > { %v12016_v40 = vadd.f32 %v4233_v18, %v3057_v12  ;;  %18431 = vst [vmem:[#allocation48_spill] sm:$0xff] %v14619_v29  ;;  %v4308_v12 = vadd.f32 %v12010_v5, %v14394_v2  ;;  %v14630_v18 = vmax.f32 %v4305_v58, 0.0  ;;  %v4309_v22 = vadd.f32 %v12012_v39, %v14394_v2  ;;  %18436 = vst [vmem:[#allocation54_spill] sm:$0xff] %v14634_v26 }
 0x217   : > { %v14612_v7 = vmax.f32 %v4314_v47, 0.0  ;;  %v4315_v49 = vadd.f32 %v12015_v20, %v14394_v2  ;;  %v14628_v47 = vmax.f32 %v4307_v46, 0.0  ;;  %v4311_v20 = vadd.f32 %v12011_v45, %v14394_v2 }
 0x218   : > { %18435 = vst [vmem:[#allocation50_spill] sm:$0xff] %v14630_v18  ;;  %v4312_v3 = vadd.f32 %v12014_v15, %v14394_v2  ;;  %v4313_v46 = vadd.f32 %v12016_v40, %v14394_v2  ;;  %v14644_v58 = vsel %vm1593_vm4, %v4364_v8, %v4365_v16  ;;  %v14648_v45 = vsel %vm1593_vm4, %v4366_v35, %v4367_v9 }
 0x219   : > { %18430 = vst [vmem:[#allocation40_spill] sm:$0xff] %v14612_v7  ;;  %v14622_v38 = vmax.f32 %v4315_v49, 0.0  ;;  %18434 = vst [vmem:[#allocation88_spill] sm:$0xff] %v14628_v47  ;;  %v4462_v5 = vmul.f32 0.0, %v14612_v7  ;;  %v4368_v39 = vrot.slane %v14619_v29, 7  ;;  %v14651_v19 = vmax.f32 %v4308_v12, 0.0 }
 0x21a   : > { %v14655_v32 = vsel %vm1593_vm4, %v4365_v16, %v4366_v35  ;;  %v4371_v15 = vrot.slane %v14628_v47, 7  ;;  %v4369_v2 = vrot.slane %v14630_v18, 7  ;;  %v14659_v40 = vmax.f32 %v4311_v20, 0.0 }
 0x21b   : > { %18432 = vst [vmem:[#allocation52_spill] sm:$0xff] %v14622_v38  ;;  %v4463_v49 = vmul.f32 0.0, %v14622_v38  ;;  %18437 = vst [vmem:[#allocation89_spill] sm:$0xff] %v14651_v19  ;;  %v14661_v8 = vmax.f32 %v4309_v22, 0.0  ;;  %v4370_v12 = vrot.slane %v14634_v26, 7  ;;  %v18443_v35 = vrot.slane %v14524_v27, 1 }
 0x21c   : > { %18438 = vst [vmem:[#allocation90_spill] sm:$0xff] %v14655_v32  ;;  %18439 = vst [vmem:[#allocation57_spill] sm:$0xff] %v14659_v40  ;;  %v18444_v16 = vrot.slane %v14520_v62, 1  ;;  %v4964_v20 = vrot.slane %v14619_v29, 1  ;;  %v14683_v59 = vmax.f32 %v4312_v3, 0.0  ;;  %v14685_v63 = vmax.f32 %v4313_v46, 0.0 }
 0x21d   : > { %v4494_v10 = vpack.c.bf16 %v4463_v49, %v4462_v5  ;;  %18440 = vst [vmem:[#allocation49_spill] sm:$0xff] %v14661_v8  ;;  %v14670_v49 = vmax.f32 %v4310_v17, 0.0  ;;  %v4965_v17 = vrot.slane %v14630_v18, 1  ;;  %v4379_v5 = vrot.slane %v14622_v38, 7 }
 0x21e   : > { %v14679_v22 = vsel %vm2186_vm3, %v18444_v16, %v18443_v35  ;;  %18445 = vst [vmem:[#allocation66_spill] sm:$0xff] %v14683_v59  ;;  %18446 = vst [vmem:[#allocation72_spill] sm:$0xff] %v14685_v63  ;;  %v14697_v3 = vsel %vm1593_vm4, %v4367_v9, %v4368_v39  ;;  %v4375_v46 = vrot.slane %v14659_v40, 7  ;;  %v4373_v35 = vrot.slane %v14661_v8, 7 }
 0x21f   : > { %18442 = vst [vmem:[#allocation60_spill] sm:$0xff] %v14670_v49  ;;  %11373 = vmatprep.mubr.msk.bf16.mxu1 %vm4519_vm2, %v4494_v10  ;;  %v4372_v10 = vrot.slane %v14651_v19, 7  ;;  %18447 = vst [vmem:[#allocation83_spill] sm:$0xff] %v14697_v3  ;;  %v14704_v16 = vsel %vm1593_vm4, %v4368_v39, %v4369_v2  ;;  %v4374_v44 = vrot.slane %v14670_v49, 7  ;;  %v14714_v9 = vsel %vm1593_vm4, %v4369_v2, %v4370_v12 }
 0x220   : > { %11374 = vmatmul.mubr.msk.bf16.vlgmr.msra.gmra.mrb[32].mxu1 %vm4519_vm2, %v14494_v56  ;;  %18448 = vst [vmem:[#allocation84_spill] sm:$0xff] %v14704_v16  ;;  %18449 = vst [vmem:[#allocation17_spill] sm:$0xff] %v14714_v9  ;;  %v18450_v56 = vrot.slane %v14520_v62, 1  ;;  %v4968_v18 = vrot.slane %v14651_v19, 1  ;;  %v4376_v34 = vrot.slane %v14683_v59, 7  ;;  %v4969_v54 = vrot.slane %v14661_v8, 1 }
 0x221   : > { %11406 = vmatpush3.bf16.msra.mxu1 %v14384_v11  ;;  %11377 = vmatprep.mubr.msk.bf16.mxu1 %vm4519_vm2, %v14500_v13  ;;  %v14708_v11 = vsel %vm1593_vm4, %v4370_v12, %v4371_v15  ;;  %v4377_v13 = vrot.slane %v14685_v63, 7  ;;  %v18453_v2 = vrot.slane %v14469_v57, 7  ;;  %v4975_v62 = vrot.slane %v14622_v38, 1  ;;  %v18461_v8 = vld [vmem:[#allocation80_spill] sm:$0xff]  ;;  %v18559_v16 = vld [vmem:[#allocation55_spill] sm:$0xff] }
 0x222   : > { %11439 = vmatprep.subr.bf16.mxu1 %v14666_v50  ;;  %v18451_v50 = vrot.slane %v14518_v55, 1  ;;  %v14743_v29 = vsel %vm1593_vm4, %v4372_v10, %v4373_v35  ;;  %v14747_v55 = vsel %vm1593_vm4, %v4374_v44, %v4375_v46  ;;  %v4974_v38 = vrot.slane %v14612_v7, 1 }
 0x223   : > { %v14733_v12 = vsel %vm1593_vm4, %v4379_v5, %v18453_v2  ;;  %v14751_v2 = vsel %vm1593_vm4, %v4373_v35, %v4374_v44  ;;  %v18457_v19 = vrot.slane %v14558_v6, 1  ;;  %v14870_v53 = vmul.f32 %v14697_v3, %v18483_v30 }
 0x224   : > { %v14722_v39 = vsel %vm2186_vm3, %v18451_v50, %v18450_v56  ;;  %18454 = vst [vmem:[#allocation47_spill] sm:$0xff] %v14733_v12  ;;  %v14738_v50 = vsel %vm1593_vm4, %v4371_v15, %v4372_v10  ;;  %v4378_v56 = vrot.slane %v14612_v7, 7  ;;  %18456 = vst [vmem:[#allocation92_spill] sm:$0xff] %v14751_v2  ;;  %v14776_v15 = vsel %vm1593_vm4, %v4375_v46, %v4376_v34 }
 0x225   : > { %18452 = vst [vmem:[#allocation13_spill] sm:$0xff] %v14722_v39  ;;  %18455 = vst [vmem:[#allocation91_spill] sm:$0xff] %v14738_v50  ;;  %v18458_v39 = vrot.slane %v14506_v0, 1  ;;  %v14780_v7 = vmul.f32 %v14733_v12, %v18461_v8 }
 0x226   : > { %v14768_v44 = vsel %vm1593_vm4, %v4378_v56, %v4379_v5  ;;  %v14772_v35 = vsel %vm1593_vm4, %v4377_v13, %v4378_v56  ;;  %18460 = vst [vmem:[#allocation94_spill] sm:$0xff] %v14776_v15  ;;  %v14790_v5 = vsel %vm2186_vm3, %v4974_v38, %v4975_v62  ;;  %v18464_v56 = vld [vmem:[#allocation63_spill] sm:$0xff]  ;;  %18484 = vst [vmem:[#allocation102_spill] sm:$0xff] %v14870_v53 }
 0x227   : > { %v14762_v10 = vsel %vm2186_vm3, %v18458_v39, %v18457_v19  ;;  %18459 = vst [vmem:[#allocation93_spill] sm:$0xff] %v14768_v44  ;;  %18462 = vst [vmem:[#allocation95_spill] sm:$0xff] %v14780_v7  ;;  %v14786_v19 = vsel %vm1593_vm4, %v4376_v34, %v4377_v13  ;;  %v18463_v39 = vrot.slane %v14469_v57, 1  ;;  %v14800_v8 = vmul.f32 %v14416_v60, %v18464_v56 }
 0x228   : > { %11378 = vmatmul.mubr.msk.bf16.gmra.mrb[36].mxu1 %vm4519_vm2, %v14536_v51  ;;  %v18467_v51 = vrot.slane %v14524_v27, 1  ;;  %v18468_v13 = vrot.slane %v14550_v23, 1  ;;  %v18469_v57 = vrot.slane %v14598_v21, 1  ;;  %v18471_v60 = vrot.slane %v14558_v6, 1  ;;  %v18479_v23 = vld [vmem:[#allocation81_spill] sm:$0xff] }
 0x229   : > { %11381 = vmatprep.mubr.msk.bf16.mxu1 %vm4519_vm2, %v14529_v1  ;;  %v14796_v46 = vsel %vm2186_vm3, %v4975_v62, %v18463_v39  ;;  %18465 = vst [vmem:[#allocation96_spill] sm:$0xff] %v14800_v8  ;;  %v18466_v1 = vrot.slane %v14506_v0, 1  ;;  %v18476_v7 = vrot.slane %v14634_v26, 1  ;;  %v14900_v12 = vmul.f32 %v14772_v35, %v18365_v31  ;;  %v18516_v31 = vld [vmem:[#allocation39_spill] sm:$0xff] }
 0x22a   : > { %v14816_v62 = vsel %vm2186_vm3, %v18469_v57, %v18468_v13  ;;  %v18470_v39 = vmov %v18469_v57  ;;  %v14932_v53 = vsel %vm2186_vm3, %v4968_v18, %v4969_v54 }
 0x22b   : > { %v14808_v34 = vsel %vm2186_vm3, %v18467_v51, %v18466_v1  ;;  %v14824_v0 = vsel %vm2186_vm3, %v18471_v60, %v18470_v39  ;;  %v18472_v51 = vrot.slane %v14596_v61, 1  ;;  %v18474_v39 = vld [vmem:[#allocation79_spill] sm:$0xff]  ;;  %v14856_v61 = vsel %vm2186_vm3, %v4964_v20, %v4965_v17  ;;  %18493 = vst [vmem:[#allocation107_spill] sm:$0xff] %v14900_v12  ;;  %18501 = vst [vmem:[#allocation111_spill] sm:$0xff] %v14932_v53 }
 0x22c   : > { %v14846_v1 = vmul.f32 %v14581_v41, %v18474_v39  ;;  %18478 = vst [vmem:[#allocation99_spill] sm:$0xff] %v14856_v61  ;;  %v18510_v12 = vrot.slane %v14670_v49, 1  ;;  %v18583_v61 = vld [vmem:[#allocation88_spill] sm:$0xff] }
 0x22d   : > { %v14832_v27 = vsel %vm2186_vm3, %v18472_v51, %v4964_v20  ;;  %v18473_v57 = vmov %v18472_v51  ;;  %v14852_v51 = vsel %vm2186_vm3, %v4965_v17, %v18476_v7  ;;  %v18485_v7 = vld [vmem:[#allocation25_spill] sm:$0xff]  ;;  %v18487_v20 = vld [vmem:[#allocation28_spill] sm:$0xff] }
 0x22e   : > { %v14840_v56 = vsel %vm2186_vm3, %v18468_v13, %v18473_v57  ;;  %18475 = vst [vmem:[#allocation97_spill] sm:$0xff] %v14846_v1  ;;  %18477 = vst [vmem:[#allocation98_spill] sm:$0xff] %v14852_v51  ;;  %v14860_v57 = vmul.f32 %v14626_v25, %v18479_v23  ;;  %v18481_v13 = vld [vmem:[#allocation18_spill] sm:$0xff]  ;;  %v14874_v21 = vmul.f32 %v14714_v9, %v18485_v7  ;;  %v18491_v1 = vld [vmem:[#allocation85_spill] sm:$0xff] }
 0x22f   : > { %v14864_v60 = vmul.f32 %v14655_v32, %v18481_v13  ;;  %v14878_v17 = vmul.f32 %v14738_v50, %v18487_v20  ;;  %v18489_v13 = vld [vmem:[#allocation29_spill] sm:$0xff]  ;;  %v14890_v30 = vmul.f32 %v14776_v15, %v18491_v1  ;;  %v18497_v20 = vrot.slane %v14634_v26, 1  ;;  %v18530_v26 = vld [vmem:[#allocation82_spill] sm:$0xff] }
 0x230   : > { %18480 = vst [vmem:[#allocation100_spill] sm:$0xff] %v14860_v57  ;;  %18486 = vst [vmem:[#allocation103_spill] sm:$0xff] %v14874_v21  ;;  %v14886_v8 = vmul.f32 %v14751_v2, %v18489_v13  ;;  %11382 = vmatmul.mubr.msk.bf16.gmra.mrb[40].mxu1 %vm4519_vm2, %v14562_v43  ;;  %v18503_v43 = vrot.slane %v14683_v59, 1 }
 0x231   : > { %18482 = vst [vmem:[#allocation101_spill] sm:$0xff] %v14864_v60  ;;  %18488 = vst [vmem:[#allocation104_spill] sm:$0xff] %v14878_v17  ;;  %v18494_v60 = vrot.slane %v14628_v47, 1  ;;  %11385 = vmatprep.mubr.msk.bf16.mxu1 %vm4519_vm2, %v14547_v52  ;;  %v18504_v17 = vrot.slane %v14659_v40, 1  ;;  %v18518_v47 = vld [vmem:[#allocation59_spill] sm:$0xff] }
 0x232   : > { %18490 = vst [vmem:[#allocation105_spill] sm:$0xff] %v14886_v8  ;;  %18492 = vst [vmem:[#allocation106_spill] sm:$0xff] %v14890_v30  ;;  %v18520_v8 = vld [vmem:[#allocation62_spill] sm:$0xff] }
 0x233   : > { %v14908_v57 = vsel %vm2186_vm3, %v18494_v60, %v4968_v18  ;;  %v18496_v7 = vmov %v18494_v60  ;;  %v18499_v60 = vrot.slane %v14670_v49, 1  ;;  %v14946_v52 = vsel %vm2186_vm3, %v18504_v17, %v18503_v43  ;;  %v18517_v49 = vld [vmem:[#allocation13_spill] sm:$0xff] }
 0x234   : > { %18495 = vst [vmem:[#allocation108_spill] sm:$0xff] %v14908_v57  ;;  %v14916_v6 = vsel %vm2186_vm3, %v18497_v20, %v18496_v7  ;;  %v14938_v20 = vmul.f32 %v14441_v28, %v18284_v4  ;;  %18505 = vst [vmem:[#allocation113_spill] sm:$0xff] %v14946_v52  ;;  %v14958_v18 = vmul.f32 %v14762_v10, %v18304_v33  ;;  %v18509_v7 = vmov %v18504_v17  ;;  %v18514_v28 = vld [vmem:[#allocation56_spill] sm:$0xff] }
 0x235   : > { %18498 = vst [vmem:[#allocation109_spill] sm:$0xff] %v14916_v6  ;;  %v14928_v21 = vsel %vm2186_vm3, %v4969_v54, %v18499_v60  ;;  %v14950_v60 = vmul.f32 %v14587_v37, %v18296_v42  ;;  %v14954_v54 = vmul.f32 %v14679_v22, %v18299_v48  ;;  %v14966_v43 = vsel %vm2186_vm3, %v18510_v12, %v18509_v7  ;;  %v18537_v7 = vld [vmem:[#allocation77_spill] sm:$0xff] }
 0x236   : > { %18500 = vst [vmem:[#allocation110_spill] sm:$0xff] %v14928_v21  ;;  %18502 = vst [vmem:[#allocation112_spill] sm:$0xff] %v14938_v20  ;;  %v18512_v17 = vrot.slane %v14685_v63, 1  ;;  %v14978_v4 = vmul.f32 %v14816_v62, %v18514_v28  ;;  %v14994_v20 = vmul.f32 %v14852_v51, %v18520_v8  ;;  %v14998_v40 = vmul.f32 %v14908_v57, %v18522_v14 }
 0x237   : > { %18506 = vst [vmem:[#allocation114_spill] sm:$0xff] %v14950_v60  ;;  %18507 = vst [vmem:[#allocation115_spill] sm:$0xff] %v14954_v54  ;;  %v18524_v60 = vld [vmem:[#allocation67_spill] sm:$0xff]  ;;  %v15016_v8 = vmul.f32 %v14796_v46, %v18530_v26  ;;  %v18532_v14 = vrot.slane %v14685_v63, 1  ;;  %v15052_v26 = vmul.f32 %v14655_v32, %v18479_v23 }
 0x238   : > { %18508 = vst [vmem:[#allocation116_spill] sm:$0xff] %v14958_v18  ;;  %18511 = vst [vmem:[#allocation117_spill] sm:$0xff] %v14966_v43  ;;  %v14972_v30 = vsel %vm2186_vm3, %v18512_v17, %v4974_v38  ;;  %v14988_v38 = vmul.f32 %v14832_v27, %v18518_v47  ;;  %v15002_v12 = vmul.f32 %v14928_v21, %v18524_v60  ;;  %v18526_v18 = vld [vmem:[#allocation71_spill] sm:$0xff]  ;;  %v18528_v17 = vld [vmem:[#allocation76_spill] sm:$0xff]  ;;  %v18533_v60 = vrot.slane %v14683_v59, 1 }
 0x239   : > { %18513 = vst [vmem:[#allocation118_spill] sm:$0xff] %v14972_v30  ;;  %18515 = vst [vmem:[#allocation119_spill] sm:$0xff] %v14978_v4  ;;  %v15008_v54 = vmul.f32 %v14946_v52, %v18526_v18  ;;  %v15012_v4 = vmul.f32 %v14972_v30, %v18528_v17  ;;  %v18535_v30 = vld [vmem:[#allocation31_spill] sm:$0xff]  ;;  %v15048_v17 = vmul.f32 %v14626_v25, %v18474_v39  ;;  %v18549_v25 = vld [vmem:[#allocation28_spill] sm:$0xff] }
 0x23a   : > { %18519 = vst [vmem:[#allocation39_spill] sm:$0xff] %v14988_v38  ;;  %18521 = vst [vmem:[#allocation13_spill] sm:$0xff] %v14994_v20  ;;  %v15024_v21 = vsel %vm2186_vm3, %v18533_v60, %v18532_v14  ;;  %11386 = vmatmul.mubr.msk.bf16.gmra.mrb[44].mxu1 %vm4519_vm2, %v18535_v30  ;;  %v18536_v60 = vld [vmem:[#allocation32_spill] sm:$0xff]  ;;  %v15044_v38 = vmul.f32 %v14581_v41, %v18537_v7  ;;  %v18543_v14 = vld [vmem:[#allocation47_spill] sm:$0xff]  ;;  %v15093_v30 = vmul.f32 %v14772_v35, %v18491_v1 }
 0x23b   : > { %18523 = vst [vmem:[#allocation120_spill] sm:$0xff] %v14998_v40  ;;  %18525 = vst [vmem:[#allocation121_spill] sm:$0xff] %v15002_v12  ;;  %11389 = vmatprep.mubr.msk.bf16.mxu1 %vm4519_vm2, %v18536_v60  ;;  %v18545_v20 = vld [vmem:[#allocation19_spill] sm:$0xff]  ;;  %v15083_v12 = vmul.f32 %v14776_v15, %v18489_v13  ;;  %v18552_v40 = vld [vmem:[#allocation26_spill] sm:$0xff] }
 0x23c   : > { %18527 = vst [vmem:[#allocation122_spill] sm:$0xff] %v15008_v54  ;;  %18529 = vst [vmem:[#allocation123_spill] sm:$0xff] %v15012_v4  ;;  %v18541_v54 = vld [vmem:[#allocation18_spill] sm:$0xff]  ;;  %v15069_v60 = vmul.f32 %v14714_v9, %v18545_v20  ;;  %v15079_v4 = vmul.f32 %v14751_v2, %v18549_v25  ;;  %v18558_v2 = vld [vmem:[#allocation75_spill] sm:$0xff] }
 0x23d   : > { %18531 = vst [vmem:[#allocation124_spill] sm:$0xff] %v15016_v8  ;;  %18534 = vst [vmem:[#allocation125_spill] sm:$0xff] %v15024_v21  ;;  %v15056_v36 = vmul.f32 %v14697_v3, %v18541_v54  ;;  %v15059_v8 = vmul.f32 0.0, %v18543_v14  ;;  %v18547_v3 = vld [vmem:[#allocation25_spill] sm:$0xff]  ;;  %v15100_v9 = vpack.c.bf16 %v18559_v16, %v18558_v2  ;;  %v18570_v2 = vld [vmem:[#allocation64_spill] sm:$0xff] }
 0x23e   : > { %18538 = vst [vmem:[#allocation126_spill] sm:$0xff] %v15044_v38  ;;  %18539 = vst [vmem:[#allocation127_spill] sm:$0xff] %v15048_v17  ;;  %v15075_v32 = vmul.f32 %v14738_v50, %v18547_v3  ;;  %v18561_v16 = vld [vmem:[#allocation33_spill] sm:$0xff]  ;;  %v15126_v38 = vmul.f32 %v14762_v10, %v18299_v48  ;;  %v18612_v21 = vld [vmem:[#allocation11_spill] sm:$0xff] }
 0x23f   : > { %18540 = vst [vmem:[#allocation128_spill] sm:$0xff] %v15052_v26  ;;  %18542 = vst [vmem:[#allocation129_spill] sm:$0xff] %v15056_v36  ;;  %v18553_v26 = vld [vmem:[#allocation58_spill] sm:$0xff]  ;;  %v18556_v36 = vld [vmem:[#allocation53_spill] sm:$0xff]  ;;  %v15118_v15 = vmul.f32 %v14587_v37, %v18561_v16  ;;  %v4357_v43 = vrot.slane %v18612_v21, 7 }
 0x240   : > { %18544 = vst [vmem:[#allocation47_spill] sm:$0xff] %v15059_v8  ;;  %18546 = vst [vmem:[#allocation130_spill] sm:$0xff] %v15069_v60  ;;  %v15087_v17 = vpack.c.bf16 %v18553_v26, %v18552_v40  ;;  %v15096_v50 = vmul.f32 0.0, %v18556_v36  ;;  %v15122_v26 = vmul.f32 %v14679_v22, %v18296_v42  ;;  %v15130_v40 = vmul.f32 %v14816_v62, %v18304_v33  ;;  %v18580_v8 = vld [vmem:[#allocation76_spill] sm:$0xff] }
 0x241   : > { %18548 = vst [vmem:[#allocation131_spill] sm:$0xff] %v15075_v32  ;;  %18550 = vst [vmem:[#allocation132_spill] sm:$0xff] %v15079_v4  ;;  %v15134_v60 = vmul.f32 %v14832_v27, %v18514_v28  ;;  %v18568_v32 = vld [vmem:[#allocation62_spill] sm:$0xff]  ;;  %v18577_v4 = vld [vmem:[#allocation48_spill] sm:$0xff] }
 0x242   : > { %18551 = vst [vmem:[#allocation133_spill] sm:$0xff] %v15083_v12  ;;  %18554 = vst [vmem:[#allocation134_spill] sm:$0xff] %v15087_v17  ;;  %11390 = vmatmul.mubr.msk.bf16.gmra.mrb[48].mxu1 %vm4519_vm2, %v15087_v17  ;;  %v18573_v17 = vld [vmem:[#allocation67_spill] sm:$0xff]  ;;  %v18575_v12 = vld [vmem:[#allocation118_spill] sm:$0xff] }
 0x243   : > { %18555 = vst [vmem:[#allocation135_spill] sm:$0xff] %v15093_v30  ;;  %18557 = vst [vmem:[#allocation136_spill] sm:$0xff] %v15096_v50  ;;  %11393 = vmatprep.mubr.msk.bf16.mxu1 %vm4519_vm2, %v15100_v9  ;;  %v15142_v50 = vmul.f32 %v14852_v51, %v18518_v47  ;;  %v15162_v30 = vmul.f32 %v14946_v52, %v18573_v17  ;;  %v18588_v52 = vld [vmem:[#allocation60_spill] sm:$0xff] }
 0x244   : > { %18560 = vst [vmem:[#allocation137_spill] sm:$0xff] %v15100_v9  ;;  %18562 = vst [vmem:[#allocation138_spill] sm:$0xff] %v15118_v15  ;;  %v15152_v9 = vmul.f32 %v14908_v57, %v18568_v32  ;;  %v4413_v57 = vmul.f32 0.0, %v14768_v44  ;;  %v18606_v44 = vld [vmem:[#allocation61_spill] sm:$0xff] }
 0x245   : > { %18563 = vst [vmem:[#allocation139_spill] sm:$0xff] %v15122_v26  ;;  %18564 = vst [vmem:[#allocation140_spill] sm:$0xff] %v15126_v38  ;;  %v18571_v26 = vld [vmem:[#allocation110_spill] sm:$0xff] }
 0x246   : > { %18565 = vst [vmem:[#allocation141_spill] sm:$0xff] %v15130_v40  ;;  %18566 = vst [vmem:[#allocation142_spill] sm:$0xff] %v15134_v60  ;;  %v15158_v15 = vmul.f32 %v18571_v26, %v18570_v2  ;;  %v15166_v40 = vmul.f32 %v18575_v12, %v18526_v18  ;;  %v18578_v60 = vld [vmem:[#allocation50_spill] sm:$0xff]  ;;  %v18591_v12 = vld [vmem:[#allocation41_spill] sm:$0xff] }
 0x247   : > { %18567 = vst [vmem:[#allocation143_spill] sm:$0xff] %v15142_v50  ;;  %18569 = vst [vmem:[#allocation144_spill] sm:$0xff] %v15152_v9  ;;  %v15170_v38 = vpack.c.bf16 %v18578_v60, %v18577_v4  ;;  %v15176_v50 = vmul.f32 %v14796_v46, %v18580_v8  ;;  %v18582_v26 = vld [vmem:[#allocation54_spill] sm:$0xff]  ;;  %v18586_v4 = vld [vmem:[#allocation49_spill] sm:$0xff]  ;;  %v4412_v60 = vmul.f32 0.0, %v14772_v35 }
 0x248   : > { %18572 = vst [vmem:[#allocation145_spill] sm:$0xff] %v15158_v15  ;;  %18574 = vst [vmem:[#allocation146_spill] sm:$0xff] %v15162_v30  ;;  %v15180_v51 = vpack.c.bf16 %v18583_v61, %v18582_v26  ;;  %v18585_v61 = vld [vmem:[#allocation89_spill] sm:$0xff]  ;;  %v18597_v35 = vld [vmem:[#allocation8_spill] sm:$0xff] }
 0x249   : > { %18576 = vst [vmem:[#allocation147_spill] sm:$0xff] %v15166_v40  ;;  %18579 = vst [vmem:[#allocation148_spill] sm:$0xff] %v15170_v38  ;;  %v15196_v26 = vpack.c.bf16 %v18586_v4, %v18585_v61  ;;  %v18589_v15 = vld [vmem:[#allocation57_spill] sm:$0xff]  ;;  %v15211_v4 = vpack.c.bf16 %v14685_v63, %v14683_v59  ;;  %v4444_v61 = vpack.c.bf16 %v4413_v57, %v4412_v60  ;;  %v18599_v63 = vld [vmem:[#allocation30_spill] sm:$0xff] }
 0x24a   : > { %18581 = vst [vmem:[#allocation149_spill] sm:$0xff] %v15176_v50  ;;  %18584 = vst [vmem:[#allocation150_spill] sm:$0xff] %v15180_v51  ;;  %11394 = vmatmul.mubr.msk.bf16.gmra.mrb[52].mxu1 %vm4519_vm2, %v15170_v38  ;;  %v15200_v9 = vpack.c.bf16 %v18589_v15, %v18588_v52  ;;  %v4350_v50 = vrot.slane %v18591_v12, 7  ;;  %v18593_v15 = vld [vmem:[#allocation35_spill] sm:$0xff]  ;;  %v4354_v59 = vrot.slane %v18599_v63, 7 }
 0x24b   : > { %11397 = vmatprep.mubr.msk.bf16.mxu1 %vm4519_vm2, %v15180_v51  ;;  %18587 = vst [vmem:[#allocation151_spill] sm:$0xff] %v15196_v26  ;;  %18592 = vst [vmem:[#allocation153_spill] sm:$0xff] %v15211_v4  ;;  %v18594_v52 = vrot.slane %v18593_v15, 7  ;;  %v18600_v60 = vld [vmem:[#allocation15_spill] sm:$0xff] }
 0x24c   : > { %18590 = vst [vmem:[#allocation152_spill] sm:$0xff] %v15200_v9  ;;  %v18614_v8 = vld [vmem:[#allocation3_spill] sm:$0xff] }
 0x24d   : > { %v15219_v30 = vsel %vm1593_vm4, %v18594_v52, %v4350_v50  ;;  %v15237_v52 = vld [vmem:[%s17488_s3 + $0x18] sm:$0xff]  }
 0x24e   : > { %18596 = vst [vmem:[#allocation154_spill] sm:$0xff] %v15219_v30 }
 0x252   : > { %11398 = vmatmul.mubr.msk.bf16.gmra.mrb[56].mxu1 %vm4519_vm2, %v15196_v26  ;;  %v18598_v26 = vld [vmem:[#allocation63_spill] sm:$0xff]  ;;  %v18702_v40 = vld [vmem:[#allocation153_spill] sm:$0xff] }
 0x253   : > { %11401 = vmatprep.mubr.msk.bf16.mxu1 %vm4519_vm2, %v15200_v9  ;;  %v4414_v9 = vmul.f32 %v18543_v14, %v18597_v35  ;;  %v4416_v51 = vmul.f32 %v15219_v30, %v18598_v26  ;;  %v18603_v14 = vld [vmem:[#allocation21_spill] sm:$0xff]  ;;  %v18609_v35 = vld [vmem:[#allocation24_spill] sm:$0xff] }
 0x254   : > { %v18604_v26 = vrot.slane %v18603_v14, 7  ;;  %v18608_v30 = vld [vmem:[#allocation65_spill] sm:$0xff] }
 0x255   : > { %v4445_v57 = vpack.c.bf16 %v18556_v36, %v4414_v9  ;;  %v4418_v36 = vmul.f32 %v18609_v35, %v18608_v30  ;;  %v18617_v30 = vld [vmem:[#allocation74_spill] sm:$0xff] }
 0x256   : > { %v15245_v9 = vsel %vm1593_vm4, %v18604_v26, %v4354_v59  ;;  %v18613_v26 = vld [vmem:[#allocation46_spill] sm:$0xff] }
 0x257   : > { %18605 = vst [vmem:[#allocation156_spill] sm:$0xff] %v15245_v9  ;;  %v4358_v53 = vrot.slane %v18613_v26, 7 }
 0x25a   : > { %11402 = vmatmul.mubr.msk.bf16.gmra.mrb[60].mxu1 %vm4519_vm2, %v15211_v4  ;;  %v18601_v4 = vrot.slane %v18600_v60, 7 }
 0x25b   : > { %11407 = vmatprep.mubr.msk.bf16.mxu1 %vm4519_vm2, %v4444_v61 }
 0x25c   : > { %v15232_v38 = vsel %vm1593_vm4, %v4350_v50, %v18601_v4  ;;  %v18607_v4 = vld [vmem:[#allocation43_spill] sm:$0xff] }
 0x25d   : > { %18602 = vst [vmem:[#allocation155_spill] sm:$0xff] %v15232_v38  ;;  %v4446_v61 = vpack.c.bf16 %v15232_v38, %v4416_v51  ;;  %v4355_v50 = vrot.slane %v18607_v4, 7  ;;  %v18610_v51 = vld [vmem:[#allocation20_spill] sm:$0xff] }
 0x25e   : > { %v4356_v38 = vrot.slane %v18610_v51, 7 }
 0x260   : > { %v15266_v35 = vsel %vm1593_vm4, %v4355_v50, %v4356_v38 }
 0x262   : > { %11408 = vmatmul.mubr.msk.bf16.vlgmr.msra.gmra.mrb[32].mxu1 %vm4519_vm2, %v4445_v57  ;;  %v18611_v57 = vld [vmem:[#allocation70_spill] sm:$0xff] }
 0x263   : > { %11440 = vmatpush3.bf16.msra.mxu1 %v18606_v44  ;;  %11411 = vmatprep.mubr.msk.bf16.mxu1 %vm4519_vm2, %v4446_v61  ;;  %v4420_v14 = vmul.f32 %v15245_v9, %v18611_v57  ;;  %v4447_v44 = vpack.c.bf16 %v18614_v8, %v4418_v36  ;;  %v15261_v61 = vsel %vm1593_vm4, %v4354_v59, %v4355_v50  ;;  %v18616_v9 = vld [vmem:[#allocation5_spill] sm:$0xff]  ;;  %v18618_v8 = vld [vmem:[#allocation6_spill] sm:$0xff] }
 0x264   : > { %11473 = vmatprep.subr.bf16.mxu1 %v15237_v52  ;;  %18615 = vst [vmem:[#allocation61_spill] sm:$0xff] %v15261_v61  ;;  %v15271_v57 = vsel %vm1593_vm4, %v4357_v43, %v4358_v53  ;;  %v4359_v36 = vrot.slane %v18616_v9, 7  ;;  %v4422_v59 = vmul.f32 %v15266_v35, %v18617_v30  ;;  %v4360_v6 = vrot.slane %v18618_v8, 7 }
 0x265   : > { %v4448_v18 = vpack.c.bf16 %v15261_v61, %v4420_v14  ;;  %v15280_v14 = vsel %vm1593_vm4, %v4356_v38, %v4357_v43  ;;  %v4424_v50 = vmul.f32 %v15271_v57, %v18537_v7  ;;  %v18619_v38 = vld [vmem:[#allocation7_spill] sm:$0xff] }
 0x266   : > { %v15287_v61 = vsel %vm1593_vm4, %v4358_v53, %v4359_v36  ;;  %v15292_v9 = vsel %vm1593_vm4, %v4359_v36, %v4360_v6  ;;  %v18620_v8 = vrot.slane %v18619_v38, 7  ;;  %v4428_v53 = vmul.f32 %v14581_v41, %v18479_v23  ;;  %v18622_v38 = vld [vmem:[#allocation90_spill] sm:$0xff]  ;;  %v18623_v41 = vld [vmem:[#allocation83_spill] sm:$0xff] }
 0x267   : > { %v4426_v43 = vmul.f32 %v15292_v9, %v18474_v39  ;;  %v4432_v39 = vmul.f32 %v18622_v38, %v18545_v20 }
 0x268   : > { %v4452_v36 = vpack.c.bf16 %v14575_v24, %v4428_v53  ;;  %v18624_v53 = vld [vmem:[#allocation17_spill] sm:$0xff] }
 0x26a   : > { %11412 = vmatmul.mubr.msk.bf16.gmra.mrb[36].mxu1 %vm4519_vm2, %v4447_v44  ;;  %v4449_v44 = vpack.c.bf16 %v15280_v14, %v4422_v59  ;;  %v15302_v59 = vsel %vm1593_vm4, %v4360_v6, %v18620_v8  ;;  %v4454_v8 = vpack.c.bf16 %v14648_v45, %v4432_v39  ;;  %v18626_v39 = vld [vmem:[#allocation91_spill] sm:$0xff] }
 0x26b   : > { %11415 = vmatprep.mubr.msk.bf16.mxu1 %vm4519_vm2, %v4448_v18  ;;  %v4450_v18 = vpack.c.bf16 %v15287_v61, %v4424_v50  ;;  %v4451_v50 = vpack.c.bf16 %v15302_v59, %v4426_v43  ;;  %v4434_v43 = vmul.f32 %v18623_v41, %v18547_v3  ;;  %v4438_v38 = vmul.f32 %v18626_v39, %v18489_v13 }
 0x26c   : > { %v5009_v39 = vmul.f32 0.0, %v14796_v46  ;;  %v4946_v13 = vrot.slane %v18591_v12, 1  ;;  %v18633_v46 = vld [vmem:[#allocation10_spill] sm:$0xff] }
 0x26d   : > { %v18634_v12 = vld [vmem:[#allocation22_spill] sm:$0xff] }
 0x272   : > { %11416 = vmatmul.mubr.msk.bf16.gmra.mrb[40].mxu1 %vm4519_vm2, %v4449_v44  ;;  %v18621_v44 = vld [vmem:[#allocation86_spill] sm:$0xff] }
 0x273   : > { %11419 = vmatprep.mubr.msk.bf16.mxu1 %vm4519_vm2, %v4450_v18  ;;  %v4430_v18 = vmul.f32 %v18621_v44, %v18541_v54  ;;  %v18699_v54 = vld [vmem:[#allocation150_spill] sm:$0xff] }
 0x275   : > { %v4453_v6 = vpack.c.bf16 %v14644_v58, %v4430_v18  ;;  %v18627_v18 = vld [vmem:[#allocation92_spill] sm:$0xff] }
 0x27a   : > { %11420 = vmatmul.mubr.msk.bf16.gmra.mrb[44].mxu1 %vm4519_vm2, %v4451_v50  ;;  %v4436_v50 = vmul.f32 %v18624_v53, %v18549_v25  ;;  %v18629_v53 = vld [vmem:[#allocation94_spill] sm:$0xff]  ;;  %v18635_v25 = vld [vmem:[#allocation37_spill] sm:$0xff] }
 0x27b   : > { %11423 = vmatprep.mubr.msk.bf16.mxu1 %vm4519_vm2, %v4452_v36  ;;  %v18625_v36 = vld [vmem:[#allocation84_spill] sm:$0xff] }
 0x27c   : > { %v4455_v23 = vpack.c.bf16 %v18625_v36, %v4434_v43  ;;  %v4456_v44 = vpack.c.bf16 %v14708_v11, %v4436_v50  ;;  %v18628_v43 = vld [vmem:[#allocation87_spill] sm:$0xff] }
 0x27d   : > { %v4442_v50 = vmul.f32 %v18629_v53, %v18628_v43 }
 0x282   : > { %11424 = vmatmul.mubr.msk.bf16.gmra.mrb[48].mxu1 %vm4519_vm2, %v4453_v6  ;;  %v4440_v6 = vmul.f32 %v18627_v18, %v18491_v1  ;;  %v4947_v18 = vrot.slane %v18600_v60, 1  ;;  %v4952_v1 = vrot.slane %v18610_v51, 1 }
 0x283   : > { %11427 = vmatprep.mubr.msk.bf16.mxu1 %vm4519_vm2, %v4454_v8  ;;  %v4457_v8 = vpack.c.bf16 %v14743_v29, %v4438_v38  ;;  %v4459_v38 = vpack.c.bf16 %v14786_v19, %v4442_v50 }
 0x284   : > { %v4458_v41 = vpack.c.bf16 %v14747_v55, %v4440_v6 }
 0x28a   : > { %11428 = vmatmul.mubr.msk.bf16.gmra.mrb[52].mxu1 %vm4519_vm2, %v4455_v23  ;;  %v4945_v23 = vrot.slane %v18593_v15, 1  ;;  %v18704_v15 = vld [vmem:[#allocation40_spill] sm:$0xff] }
 0x28b   : > { %11431 = vmatprep.mubr.msk.bf16.mxu1 %vm4519_vm2, %v4456_v44  ;;  %v5008_v44 = vmul.f32 0.0, %v14790_v5 }
 0x28c   : > { %v15344_v6 = vsel %vm2186_vm3, %v4945_v23, %v4946_v13 }
 0x28d   : > { %18630 = vst [vmem:[#allocation24_spill] sm:$0xff] %v15344_v6  ;;  %v5011_v60 = vmul.f32 %v15344_v6, %v18633_v46 }
 0x292   : > { %11432 = vmatmul.mubr.msk.bf16.gmra.mrb[56].mxu1 %vm4519_vm2, %v4457_v8  ;;  %v5040_v8 = vpack.c.bf16 %v5009_v39, %v5008_v44  ;;  %v18636_v44 = vrot.slane %v18635_v25, 1 }
 0x293   : > { %11435 = vmatprep.mubr.msk.bf16.mxu1 %vm4519_vm2, %v4458_v41  ;;  %v18631_v41 = vld [vmem:[#allocation12_spill] sm:$0xff] }
 0x294   : > { %v18632_v53 = vrot.slane %v18631_v41, 1  ;;  %v15363_v39 = vsel %vm2186_vm3, %v18636_v44, %v4945_v23  ;;  %v12767_v41 = vld [vmem:[%s17488_s3 + $0x20] sm:$0xff]  }
 0x295   : > { %18637 = vst [vmem:[#allocation74_spill] sm:$0xff] %v15363_v39  ;;  %v18639_v44 = vld [vmem:[#allocation34_spill] sm:$0xff] }
 0x296   : > { %v15351_v43 = vsel %vm2186_vm3, %v4947_v18, %v18632_v53  ;;  %v5041_v53 = vpack.c.bf16 %v5011_v60, %v15363_v39  ;;  %v18638_v60 = vld [vmem:[#allocation23_spill] sm:$0xff] }
 0x297   : > { %v5013_v50 = vmul.f32 %v15351_v43, %v18634_v12  ;;  %v18703_v12 = vld [vmem:[#allocation16_spill] sm:$0xff] }
 0x298   : > { %v5903_v25 = vmul.f32 %v15344_v6, %v18703_v12  ;;  %v12770_v6 = vld [vmem:[%s17488_s3 + $0x38] sm:$0xff]  }
 0x29a   : > { %11436 = vmatmul.mubr.msk.bf16.gmra.mrb[60].mxu1 %vm4519_vm2, %v4459_v38  ;;  %v4951_v38 = vrot.slane %v18607_v4, 1 }
 0x29b   : > { %11441 = vmatprep.mubr.msk.bf16.mxu1 %vm4519_vm2, %v5040_v8  ;;  %v15369_v8 = vsel %vm2186_vm3, %v4946_v13, %v4947_v18  ;;  %v5015_v13 = vmul.f32 %v18639_v44, %v18638_v60  ;;  %v4953_v18 = vrot.slane %v18612_v21, 1  ;;  %v5021_v21 = vmul.f32 %v14587_v37, %v18299_v48 }
 0x29c   : > { %v5042_v51 = vpack.c.bf16 %v5013_v50, %v15369_v8  ;;  %v15378_v23 = vsel %vm2186_vm3, %v4951_v38, %v4952_v1  ;;  %v18640_v50 = vld [vmem:[#allocation14_spill] sm:$0xff] }
 0x29d   : > { %v5017_v4 = vmul.f32 %v15378_v23, %v18561_v16  ;;  %v5043_v3 = vpack.c.bf16 %v5015_v13, %v18640_v50 }
 0x2a2   : > { %11442 = vmatmul.mubr.msk.bf16.vlgmr.msra.gmra.mrb[32].mxu1 %vm4519_vm2, %v5041_v53  ;;  %v18641_v53 = vrot.slane %v18599_v63, 1 }
 0x2a3   : > { %11474 = vmatpush3.bf16.msra.mxu1 %v15237_v52  ;;  %11445 = vmatprep.mubr.msk.bf16.mxu1 %vm4519_vm2, %v5042_v51  ;;  %v18642_v51 = vrot.slane %v18613_v26, 1  ;;  %v18651_v26 = vld [vmem:[#allocation111_spill] sm:$0xff] }
 0x2a4   : > { %11507 = vmatprep.subr.bf16.mxu1 %v12767_v41  ;;  %v15392_v20 = vsel %vm2186_vm3, %v18641_v53, %v4951_v38  ;;  %v15409_v38 = vsel %vm2186_vm3, %v4952_v1, %v4953_v18  ;;  %v5046_v53 = vpack.c.bf16 %v5021_v21, %v18516_v31  ;;  %v5027_v21 = vmul.f32 %v14816_v62, %v18518_v47  ;;  %v18646_v62 = vld [vmem:[#allocation109_spill] sm:$0xff] }
 0x2a5   : > { %v5044_v52 = vpack.c.bf16 %v5017_v4, %v15392_v20  ;;  %v15399_v44 = vsel %vm2186_vm3, %v4953_v18, %v18642_v51  ;;  %v5029_v1 = vmul.f32 %v14832_v27, %v18568_v32  ;;  %v18647_v27 = vld [vmem:[#allocation71_spill] sm:$0xff] }
 0x2a6   : > { %v5019_v13 = vmul.f32 %v15399_v44, %v18296_v42  ;;  %v5049_v18 = vpack.c.bf16 %v5027_v21, %v14824_v0  ;;  %v18698_v42 = vld [vmem:[#allocation148_spill] sm:$0xff] }
 0x2a8   : > { %v5045_v4 = vpack.c.bf16 %v5019_v13, %v15409_v38 }
 0x2aa   : > { %11446 = vmatmul.mubr.msk.bf16.gmra.mrb[36].mxu1 %vm4519_vm2, %v5043_v3  ;;  %v5023_v3 = vmul.f32 %v14679_v22, %v18304_v33  ;;  %v5050_v22 = vpack.c.bf16 %v5029_v1, %v14840_v56  ;;  %v18649_v1 = vld [vmem:[#allocation76_spill] sm:$0xff]  ;;  %v18673_v33 = vld [vmem:[#allocation101_spill] sm:$0xff] }
 0x2ab   : > { %11449 = vmatprep.mubr.msk.bf16.mxu1 %vm4519_vm2, %v5044_v52  ;;  %v5025_v52 = vmul.f32 %v14762_v10, %v18514_v28  ;;  %v18643_v10 = vld [vmem:[#allocation98_spill] sm:$0xff]  ;;  %v18674_v48 = vpack.c.bf16 %v14648_v45, %v18673_v33 }
 0x2ac   : > { %v5047_v37 = vpack.c.bf16 %v5023_v3, %v18517_v49  ;;  %v5031_v13 = vmul.f32 %v18643_v10, %v18570_v2  ;;  %v18645_v3 = vld [vmem:[#allocation99_spill] sm:$0xff]  ;;  %v18652_v10 = vld [vmem:[#allocation117_spill] sm:$0xff] }
 0x2ad   : > { %v5048_v51 = vpack.c.bf16 %v5025_v52, %v14808_v34 }
 0x2ae   : > { %v5051_v52 = vpack.c.bf16 %v5031_v13, %v18645_v3  ;;  %v18653_v13 = vld [vmem:[#allocation82_spill] sm:$0xff] }
 0x2b2   : > { %11450 = vmatmul.mubr.msk.bf16.gmra.mrb[40].mxu1 %vm4519_vm2, %v5045_v4  ;;  %v18644_v4 = vld [vmem:[#allocation108_spill] sm:$0xff] }
 0x2b3   : > { %11453 = vmatprep.mubr.msk.bf16.mxu1 %vm4519_vm2, %v5046_v53  ;;  %v5033_v53 = vmul.f32 %v18644_v4, %v18573_v17  ;;  %v18654_v4 = vld [vmem:[#allocation118_spill] sm:$0xff] }
 0x2ba   : > { %11454 = vmatmul.mubr.msk.bf16.gmra.mrb[44].mxu1 %vm4519_vm2, %v5047_v37  ;;  %v5052_v37 = vpack.c.bf16 %v5033_v53, %v18646_v62  ;;  %v5039_v53 = vmul.f32 %v18654_v4, %v18653_v13  ;;  %v18663_v4 = vld [vmem:[#allocation96_spill] sm:$0xff] }
 0x2bb   : > { %11457 = vmatprep.mubr.msk.bf16.mxu1 %vm4519_vm2, %v5048_v51  ;;  %v18648_v51 = vld [vmem:[#allocation110_spill] sm:$0xff] }
 0x2bc   : > { %v5035_v21 = vmul.f32 %v18648_v51, %v18647_v27  ;;  %v18657_v51 = vld [vmem:[#allocation95_spill] sm:$0xff] }
 0x2be   : > { %v5053_v63 = vpack.c.bf16 %v5035_v21, %v18651_v26  ;;  %v18660_v21 = vld [vmem:[#allocation154_spill] sm:$0xff] }
 0x2c2   : > { %11458 = vmatmul.mubr.msk.bf16.gmra.mrb[48].mxu1 %vm4519_vm2, %v5049_v18  ;;  %v18650_v18 = vld [vmem:[#allocation113_spill] sm:$0xff] }
 0x2c3   : > { %11461 = vmatprep.mubr.msk.bf16.mxu1 %vm4519_vm2, %v5050_v22  ;;  %v5037_v22 = vmul.f32 %v18650_v18, %v18649_v1  ;;  %v18659_v18 = vld [vmem:[#allocation8_spill] sm:$0xff] }
 0x2c4   : > { %v5308_v1 = vmul.f32 %v18660_v21, %v18659_v18  ;;  %v18701_v18 = vld [vmem:[#allocation152_spill] sm:$0xff] }
 0x2c5   : > { %v5054_v2 = vpack.c.bf16 %v5037_v22, %v18652_v10  ;;  %v18661_v22 = vld [vmem:[#allocation155_spill] sm:$0xff] }
 0x2c6   : > { %v5339_v32 = vpack.c.bf16 %v18661_v22, %v5308_v1  ;;  %v18668_v1 = vld [vmem:[#allocation61_spill] sm:$0xff] }
 0x2ca   : > { %11462 = vmatmul.mubr.msk.bf16.gmra.mrb[52].mxu1 %vm4519_vm2, %v5051_v52  ;;  %v18655_v52 = vld [vmem:[#allocation125_spill] sm:$0xff] }
 0x2cb   : > { %11465 = vmatprep.mubr.msk.bf16.mxu1 %vm4519_vm2, %v5052_v37  ;;  %v5055_v17 = vpack.c.bf16 %v5039_v53, %v18655_v52  ;;  %v18656_v37 = vld [vmem:[#allocation53_spill] sm:$0xff] }
 0x2cc   : > { %v18658_v27 = vpack.c.bf16 %v18656_v37, %v18657_v51  ;;  %v18665_v53 = vld [vmem:[#allocation65_spill] sm:$0xff]  ;;  %v18666_v37 = vld [vmem:[#allocation156_spill] sm:$0xff]  ;;  %v18667_v51 = vld [vmem:[#allocation70_spill] sm:$0xff] }
 0x2cd   : > { %v5314_v13 = vmul.f32 %v15266_v35, %v18667_v51 }
 0x2cf   : > { %v5342_v28 = vpack.c.bf16 %v15280_v14, %v5314_v13  ;;  %v18669_v13 = vld [vmem:[#allocation97_spill] sm:$0xff] }
 0x2d2   : > { %11466 = vmatmul.mubr.msk.bf16.gmra.mrb[56].mxu1 %vm4519_vm2, %v5053_v63  ;;  %v12768_v63 = vld [vmem:[%s17488_s3 + $0x28] sm:$0xff]  }
 0x2d3   : > { %11469 = vmatprep.mubr.msk.bf16.mxu1 %vm4519_vm2, %v5054_v2  ;;  %v18662_v2 = vld [vmem:[#allocation3_spill] sm:$0xff] }
 0x2da   : > { %11470 = vmatmul.mubr.msk.bf16.gmra.mrb[60].mxu1 %vm4519_vm2, %v5055_v17  ;;  %v18664_v17 = vpack.c.bf16 %v18662_v2, %v18663_v4 }
 0x2db   : > { %11475 = vmatprep.mubr.msk.bf16.mxu1 %vm4519_vm2, %v18658_v27  ;;  %v5312_v27 = vmul.f32 %v18666_v37, %v18665_v53 }
 0x2dd   : > { %v5341_v47 = vpack.c.bf16 %v18668_v1, %v5312_v27  ;;  %v18670_v27 = vpack.c.bf16 %v14575_v24, %v18669_v13  ;;  %v18679_v13 = vld [vmem:[#allocation104_spill] sm:$0xff] }
 0x2e2   : > { %11476 = vmatmul.mubr.msk.bf16.vlgmr.msra.gmra.mrb[32].mxu1 %vm4519_vm2, %v5339_v32  ;;  %v5316_v32 = vmul.f32 %v15271_v57, %v18617_v30 }
 0x2e3   : > { %11508 = vmatpush3.bf16.msra.mxu1 %v12767_v41  ;;  %11479 = vmatprep.mubr.msk.bf16.mxu1 %vm4519_vm2, %v18664_v17  ;;  %v5318_v41 = vmul.f32 %v15292_v9, %v18537_v7  ;;  %v18700_v7 = vld [vmem:[#allocation151_spill] sm:$0xff] }
 0x2e4   : > { %11541 = vmatprep.subr.bf16.mxu1 %v12768_v63  ;;  %v5343_v4 = vpack.c.bf16 %v15287_v61, %v5316_v32  ;;  %v18675_v32 = vld [vmem:[#allocation102_spill] sm:$0xff] }
 0x2e5   : > { %v5344_v17 = vpack.c.bf16 %v15302_v59, %v5318_v41  ;;  %v18676_v41 = vpack.c.bf16 %v18625_v36, %v18675_v32  ;;  %v18685_v32 = vld [vmem:[#allocation93_spill] sm:$0xff] }
 0x2ea   : > { %11480 = vmatmul.mubr.msk.bf16.gmra.mrb[36].mxu1 %vm4519_vm2, %v5341_v47 }
 0x2eb   : > { %11483 = vmatprep.mubr.msk.bf16.mxu1 %vm4519_vm2, %v5342_v28  ;;  %v18671_v28 = vld [vmem:[#allocation100_spill] sm:$0xff] }
 0x2ec   : > { %v18672_v47 = vpack.c.bf16 %v14644_v58, %v18671_v28  ;;  %v18681_v28 = vld [vmem:[#allocation105_spill] sm:$0xff] }
 0x2ed   : > { %v18682_v33 = vpack.c.bf16 %v14747_v55, %v18681_v28  ;;  %v18690_v28 = vld [vmem:[#allocation69_spill] sm:$0xff] }
 0x2f2   : > { %11484 = vmatmul.mubr.msk.bf16.gmra.mrb[40].mxu1 %vm4519_vm2, %v5343_v4  ;;  %v18677_v4 = vld [vmem:[#allocation103_spill] sm:$0xff] }
 0x2f3   : > { %11487 = vmatprep.mubr.msk.bf16.mxu1 %vm4519_vm2, %v5344_v17  ;;  %v18678_v17 = vpack.c.bf16 %v14708_v11, %v18677_v4 }
 0x2fa   : > { %11488 = vmatmul.mubr.msk.bf16.gmra.mrb[44].mxu1 %vm4519_vm2, %v18670_v27  ;;  %v18680_v27 = vpack.c.bf16 %v14743_v29, %v18679_v13  ;;  %v12769_v13 = vld [vmem:[%s17488_s3 + $0x30] sm:$0xff]  }
 0x2fb   : > { %11491 = vmatprep.mubr.msk.bf16.mxu1 %vm4519_vm2, %v18672_v47 }
 0x302   : > { %11492 = vmatmul.mubr.msk.bf16.gmra.mrb[48].mxu1 %vm4519_vm2, %v18674_v48  ;;  %v18683_v48 = vld [vmem:[#allocation106_spill] sm:$0xff] }
 0x303   : > { %11495 = vmatprep.mubr.msk.bf16.mxu1 %vm4519_vm2, %v18676_v41  ;;  %v18684_v47 = vpack.c.bf16 %v14786_v19, %v18683_v48  ;;  %v18686_v41 = vld [vmem:[#allocation107_spill] sm:$0xff]  ;;  %v18692_v48 = vld [vmem:[#allocation78_spill] sm:$0xff] }
 0x304   : > { %v18687_v4 = vpack.c.bf16 %v18685_v32, %v18686_v41  ;;  %v18694_v41 = vld [vmem:[#allocation31_spill] sm:$0xff] }
 0x30a   : > { %11496 = vmatmul.mubr.msk.bf16.gmra.mrb[52].mxu1 %vm4519_vm2, %v18678_v17  ;;  %v18688_v17 = vld [vmem:[#allocation42_spill] sm:$0xff] }
 0x30b   : > { %11499 = vmatprep.mubr.msk.bf16.mxu1 %vm4519_vm2, %v18680_v27  ;;  %v18689_v27 = vld [vmem:[#allocation4_spill] sm:$0xff] }
 0x312   : > { %11500 = vmatmul.mubr.msk.bf16.gmra.mrb[56].mxu1 %vm4519_vm2, %v18682_v33  ;;  %v18691_v33 = vld [vmem:[#allocation68_spill] sm:$0xff] }
 0x313   : > { %11503 = vmatprep.mubr.msk.bf16.mxu1 %vm4519_vm2, %v18684_v47  ;;  %v18693_v47 = vld [vmem:[#allocation73_spill] sm:$0xff] }
 0x31a   : > { %11504 = vmatmul.mubr.msk.bf16.gmra.mrb[60].mxu1 %vm4519_vm2, %v18687_v4  ;;  %v18695_v4 = vld [vmem:[#allocation32_spill] sm:$0xff] }
 0x31b   : > { %11509 = vmatprep.mubr.msk.bf16.mxu1 %vm4519_vm2, %v18688_v17  ;;  %v18697_v17 = vld [vmem:[#allocation137_spill] sm:$0xff] }
 0x322   : > { %11510 = vmatmul.mubr.msk.bf16.vlgmr.msra.gmra.mrb[32].mxu1 %vm4519_vm2, %v18689_v27 }
 0x323   : > { %11542 = vmatpush3.bf16.msra.mxu1 %v12768_v63  ;;  %11513 = vmatprep.mubr.msk.bf16.mxu1 %vm4519_vm2, %v18690_v28  ;;  %v18696_v63 = vld [vmem:[#allocation134_spill] sm:$0xff] }
 0x324   : > { %11575 = vmatprep.subr.bf16.mxu1 %v12769_v13 }
 0x32a   : > { %11514 = vmatmul.mubr.msk.bf16.gmra.mrb[36].mxu1 %vm4519_vm2, %v18691_v33 }
 0x32b   : > { %11517 = vmatprep.mubr.msk.bf16.mxu1 %vm4519_vm2, %v18692_v48 }
 0x332   : > { %11518 = vmatmul.mubr.msk.bf16.gmra.mrb[40].mxu1 %vm4519_vm2, %v18693_v47 }
 0x333   : > { %11521 = vmatprep.mubr.msk.bf16.mxu1 %vm4519_vm2, %v18694_v41 }
 0x33a   : > { %11522 = vmatmul.mubr.msk.bf16.gmra.mrb[44].mxu1 %vm4519_vm2, %v18695_v4 }
 0x33b   : > { %11525 = vmatprep.mubr.msk.bf16.mxu1 %vm4519_vm2, %v18696_v63 }
 0x342   : > { %11526 = vmatmul.mubr.msk.bf16.gmra.mrb[48].mxu1 %vm4519_vm2, %v18697_v17  ;;  %v18705_v17 = vld [vmem:[#allocation52_spill] sm:$0xff] }
 0x343   : > { %11529 = vmatprep.mubr.msk.bf16.mxu1 %vm4519_vm2, %v18698_v42  ;;  %v15555_v63 = vpack.c.bf16 %v18705_v17, %v18704_v15  ;;  %v5934_v42 = vpack.c.bf16 %v5903_v25, %v15363_v39  ;;  %v18706_v17 = vld [vmem:[#allocation112_spill] sm:$0xff]  ;;  %v5911_v15 = vmul.f32 %v15399_v44, %v18561_v16 }
 0x344   : > { %v18707_v25 = vpack.c.bf16 %v18706_v17, %v18640_v50  ;;  %v18710_v17 = vld [vmem:[#allocation115_spill] sm:$0xff]  ;;  %v18712_v39 = vld [vmem:[#allocation116_spill] sm:$0xff] }
 0x345   : > { %v18713_v16 = vpack.c.bf16 %v18712_v39, %v14808_v34 }
 0x34a   : > { %11530 = vmatmul.mubr.msk.bf16.gmra.mrb[52].mxu1 %vm4519_vm2, %v18699_v54 }
 0x34b   : > { %11533 = vmatprep.mubr.msk.bf16.mxu1 %vm4519_vm2, %v18700_v7 }
 0x352   : > { %11534 = vmatmul.mubr.msk.bf16.gmra.mrb[56].mxu1 %vm4519_vm2, %v18701_v18  ;;  %v5905_v18 = vmul.f32 %v15351_v43, %v18633_v46  ;;  %v5938_v46 = vpack.c.bf16 %v5911_v15, %v15409_v38  ;;  %v18714_v15 = vld [vmem:[#allocation119_spill] sm:$0xff] }
 0x353   : > { %11537 = vmatprep.mubr.msk.bf16.mxu1 %vm4519_vm2, %v18702_v40 }
 0x354   : > { %v5935_v7 = vpack.c.bf16 %v5905_v18, %v15369_v8 }
 0x35a   : > { %11538 = vmatmul.mubr.msk.bf16.gmra.mrb[60].mxu1 %vm4519_vm2, %v15555_v63 }
 0x35b   : > { %11543 = vmatprep.mubr.msk.bf16.mxu1 %vm4519_vm2, %v5934_v42  ;;  %v5909_v42 = vmul.f32 %v15378_v23, %v18638_v60 }
 0x35d   : > { %v5937_v18 = vpack.c.bf16 %v5909_v42, %v15392_v20  ;;  %v18715_v42 = vpack.c.bf16 %v18714_v15, %v14824_v0  ;;  %v18724_v15 = vld [vmem:[#allocation122_spill] sm:$0xff] }
 0x362   : > { %11544 = vmatmul.mubr.msk.bf16.vlgmr.msra.gmra.mrb[32].mxu1 %vm4519_vm2, %v5935_v7  ;;  %v18708_v7 = vld [vmem:[#allocation114_spill] sm:$0xff] }
 0x363   : > { %11576 = vmatpush3.bf16.msra.mxu1 %v12769_v13  ;;  %11547 = vmatprep.mubr.msk.bf16.mxu1 %vm4519_vm2, %v18707_v25  ;;  %v18709_v13 = vpack.c.bf16 %v18708_v7, %v18516_v31  ;;  %v18711_v25 = vpack.c.bf16 %v18710_v17, %v18517_v49  ;;  %v18718_v7 = vld [vmem:[#allocation13_spill] sm:$0xff]  ;;  %v18720_v17 = vld [vmem:[#allocation120_spill] sm:$0xff] }
 0x364   : > { %11609 = vmatprep.subr.bf16.mxu1 %v12770_v6  ;;  %v18721_v39 = vpack.c.bf16 %v18720_v17, %v18646_v62 }
 0x36a   : > { %11548 = vmatmul.mubr.msk.bf16.gmra.mrb[36].mxu1 %vm4519_vm2, %v5937_v18 }
 0x36b   : > { %11551 = vmatprep.mubr.msk.bf16.mxu1 %vm4519_vm2, %v5938_v46  ;;  %v18716_v46 = vld [vmem:[#allocation39_spill] sm:$0xff] }
 0x36c   : > { %v18717_v18 = vpack.c.bf16 %v18716_v46, %v14840_v56  ;;  %v18726_v46 = vld [vmem:[#allocation123_spill] sm:$0xff] }
 0x372   : > { %11552 = vmatmul.mubr.msk.bf16.gmra.mrb[40].mxu1 %vm4519_vm2, %v18709_v13  ;;  %v18719_v13 = vpack.c.bf16 %v18718_v7, %v18645_v3  ;;  %v18728_v7 = vld [vmem:[#allocation80_spill] sm:$0xff] }
 0x373   : > { %11555 = vmatprep.mubr.msk.bf16.mxu1 %vm4519_vm2, %v18711_v25 }
 0x37a   : > { %11556 = vmatmul.mubr.msk.bf16.gmra.mrb[44].mxu1 %vm4519_vm2, %v18713_v16  ;;  %v18722_v16 = vld [vmem:[#allocation121_spill] sm:$0xff] }
 0x37b   : > { %11559 = vmatprep.mubr.msk.bf16.mxu1 %vm4519_vm2, %v18715_v42  ;;  %v18723_v25 = vpack.c.bf16 %v18722_v16, %v18651_v26  ;;  %v18725_v42 = vpack.c.bf16 %v18724_v15, %v18652_v10 }
 0x382   : > { %11560 = vmatmul.mubr.msk.bf16.gmra.mrb[48].mxu1 %vm4519_vm2, %v18717_v18  ;;  %v18727_v18 = vpack.c.bf16 %v18726_v46, %v18655_v52 }
 0x383   : > { %11563 = vmatprep.mubr.msk.bf16.mxu1 %vm4519_vm2, %v18719_v13  ;;  %v6200_v13 = vmul.f32 %v18660_v21, %v18728_v7  ;;  %v18732_v21 = vld [vmem:[#allocation27_spill] sm:$0xff] }
 0x385   : > { %v6232_v17 = vpack.c.bf16 %v18661_v22, %v6200_v13  ;;  %v6206_v22 = vmul.f32 %v15266_v35, %v18665_v53  ;;  %v18734_v35 = vld [vmem:[#allocation126_spill] sm:$0xff] }
 0x387   : > { %v6235_v13 = vpack.c.bf16 %v15280_v14, %v6206_v22  ;;  %v18752_v22 = vld [vmem:[#allocation136_spill] sm:$0xff] }
 0x38a   : > { %11564 = vmatmul.mubr.msk.bf16.gmra.mrb[52].mxu1 %vm4519_vm2, %v18721_v39  ;;  %v18729_v39 = vld [vmem:[#allocation124_spill] sm:$0xff] }
 0x38b   : > { %11567 = vmatprep.mubr.msk.bf16.mxu1 %vm4519_vm2, %v18723_v25  ;;  %v18730_v16 = vpack.c.bf16 %v18729_v39, %v14790_v5  ;;  %v18731_v25 = vld [vmem:[#allocation63_spill] sm:$0xff] }
 0x38c   : > { %v6204_v15 = vmul.f32 %v18666_v37, %v18731_v25  ;;  %v6208_v37 = vmul.f32 %v15271_v57, %v18667_v51  ;;  %v18736_v57 = vld [vmem:[#allocation127_spill] sm:$0xff] }
 0x38d   : > { %v18737_v14 = vpack.c.bf16 %v14644_v58, %v18736_v57  ;;  %v18773_v57 = vld [vmem:[#allocation142_spill] sm:$0xff] }
 0x38e   : > { %v6234_v46 = vpack.c.bf16 %v18668_v1, %v6204_v15  ;;  %v18735_v1 = vpack.c.bf16 %v14575_v24, %v18734_v35  ;;  %v18744_v15 = vld [vmem:[#allocation131_spill] sm:$0xff] }
 0x38f   : > { %v18745_v58 = vpack.c.bf16 %v14743_v29, %v18744_v15 }
 0x392   : > { %11568 = vmatmul.mubr.msk.bf16.gmra.mrb[56].mxu1 %vm4519_vm2, %v18725_v42  ;;  %v12771_v42 = vld [vmem:[%s17488_s3 + $0x40] sm:$0xff]  }
 0x393   : > { %11571 = vmatprep.mubr.msk.bf16.mxu1 %vm4519_vm2, %v18727_v18  ;;  %v18733_v18 = vpack.c.bf16 %v18662_v2, %v18732_v21  ;;  %v18748_v21 = vld [vmem:[#allocation133_spill] sm:$0xff] }
 0x39a   : > { %11572 = vmatmul.mubr.msk.bf16.gmra.mrb[60].mxu1 %vm4519_vm2, %v18730_v16  ;;  %v18742_v16 = vld [vmem:[#allocation130_spill] sm:$0xff] }
 0x39b   : > { %11577 = vmatprep.mubr.msk.bf16.mxu1 %vm4519_vm2, %v6232_v17  ;;  %v6236_v17 = vpack.c.bf16 %v15287_v61, %v6208_v37  ;;  %v18738_v61 = vld [vmem:[#allocation128_spill] sm:$0xff]  ;;  %v18743_v24 = vpack.c.bf16 %v14708_v11, %v18742_v16  ;;  %v18753_v37 = vld [vmem:[#allocation47_spill] sm:$0xff]  ;;  %v18785_v16 = vld [vmem:[#allocation149_spill] sm:$0xff] }
 0x39c   : > { %v18739_v39 = vpack.c.bf16 %v14648_v45, %v18738_v61  ;;  %v18754_v29 = vpack.c.bf16 %v18752_v22, %v18753_v37  ;;  %v18777_v61 = vld [vmem:[#allocation144_spill] sm:$0xff] }
 0x3a2   : > { %11578 = vmatmul.mubr.msk.bf16.vlgmr.msra.gmra.mrb[32].mxu1 %vm4519_vm2, %v18733_v18  ;;  %v18750_v18 = vld [vmem:[#allocation135_spill] sm:$0xff] }
 0x3a3   : > { %11610 = vmatpush3.bf16.msra.mxu1 %v12770_v6  ;;  %11581 = vmatprep.mubr.msk.bf16.mxu1 %vm4519_vm2, %v6234_v46  ;;  %v6210_v6 = vmul.f32 %v15292_v9, %v18617_v30  ;;  %v18740_v9 = vld [vmem:[#allocation129_spill] sm:$0xff]  ;;  %v18746_v46 = vld [vmem:[#allocation132_spill] sm:$0xff]  ;;  %v18751_v11 = vpack.c.bf16 %v18685_v32, %v18750_v18 }
 0x3a4   : > { %11643 = vmatprep.subr.bf16.mxu1 %v12771_v42  ;;  %v18747_v45 = vpack.c.bf16 %v14747_v55, %v18746_v46  ;;  %v18755_v55 = vld [vmem:[#allocation134_spill] sm:$0xff]  ;;  %v18757_v32 = vld [vmem:[#allocation148_spill] sm:$0xff] }
 0x3a5   : > { %v6237_v2 = vpack.c.bf16 %v15302_v59, %v6210_v6  ;;  %v18741_v59 = vpack.c.bf16 %v18625_v36, %v18740_v9  ;;  %v18749_v36 = vpack.c.bf16 %v14786_v19, %v18748_v21  ;;  %v18756_v19 = vld [vmem:[#allocation137_spill] sm:$0xff]  ;;  %v18781_v9 = vld [vmem:[#allocation146_spill] sm:$0xff] }
 0x3aa   : > { %11582 = vmatmul.mubr.msk.bf16.gmra.mrb[36].mxu1 %vm4519_vm2, %v6235_v13  ;;  %v18762_v13 = vld [vmem:[#allocation22_spill] sm:$0xff] }
 0x3ab   : > { %11585 = vmatprep.mubr.msk.bf16.mxu1 %vm4519_vm2, %v6236_v17 }
 0x3b2   : > { %11586 = vmatmul.mubr.msk.bf16.gmra.mrb[40].mxu1 %vm4519_vm2, %v6237_v2  ;;  %v18765_v2 = vld [vmem:[#allocation138_spill] sm:$0xff] }
 0x3b3   : > { %11589 = vmatprep.mubr.msk.bf16.mxu1 %vm4519_vm2, %v18735_v1  ;;  %v18766_v35 = vpack.c.bf16 %v18765_v2, %v18516_v31  ;;  %v18774_v31 = vpack.c.bf16 %v18773_v57, %v14840_v56  ;;  %v18782_v56 = vpack.c.bf16 %v18781_v9, %v18652_v10  ;;  %v12772_v10 = vld [vmem:[%s17490_s5 + $0x8] sm:$0xff]  }
 0x3b4   : > { %11677 = vmatprep.subr.bf16.mxu0 %v12772_v10 }
 0x3b5   : > { %11678 = vmatpush3.bf16.msra.mxu0 %v12772_v10  ;;  %v18802_v10 = vld [vmem:[#allocation8_spill] sm:$0xff] }
 0x3ba   : > { %11590 = vmatmul.mubr.msk.bf16.gmra.mrb[44].mxu1 %vm4519_vm2, %v18737_v14  ;;  %v18775_v14 = vld [vmem:[#allocation143_spill] sm:$0xff] }
 0x3bb   : > { %11593 = vmatprep.mubr.msk.bf16.mxu1 %vm4519_vm2, %v18739_v39  ;;  %v18779_v39 = vld [vmem:[#allocation145_spill] sm:$0xff] }
 0x3c2   : > { %11594 = vmatmul.mubr.msk.bf16.gmra.mrb[48].mxu1 %vm4519_vm2, %v18741_v59  ;;  %v18783_v59 = vld [vmem:[#allocation147_spill] sm:$0xff] }
 0x3c3   : > { %11597 = vmatprep.mubr.msk.bf16.mxu1 %vm4519_vm2, %v18743_v24  ;;  %v18787_v24 = vld [vmem:[#allocation74_spill] sm:$0xff] }
 0x3c4   : > { %v6826_v15 = vmul.f32 0.0, %v18787_v24 }
 0x3ca   : > { %11598 = vmatmul.mubr.msk.bf16.gmra.mrb[52].mxu1 %vm4519_vm2, %v18745_v58 }
 0x3cb   : > { %11601 = vmatprep.mubr.msk.bf16.mxu1 %vm4519_vm2, %v18747_v45 }
 0x3d2   : > { %11602 = vmatmul.mubr.msk.bf16.gmra.mrb[56].mxu1 %vm4519_vm2, %v18749_v36 }
 0x3d3   : > { %11605 = vmatprep.mubr.msk.bf16.mxu1 %vm4519_vm2, %v18751_v11 }
 0x3da   : > { %11606 = vmatmul.mubr.msk.bf16.gmra.mrb[60].mxu1 %vm4519_vm2, %v18754_v29 }
 0x3db   : > { %11611 = vmatprep.mubr.msk.bf16.mxu1 %vm4519_vm2, %v18689_v27  ;;  %v18758_v27 = vld [vmem:[#allocation151_spill] sm:$0xff] }
 0x3e2   : > { %11612 = vmatmul.mubr.msk.bf16.vlgmr.msra.gmra.mrb[32].mxu1 %vm4519_vm2, %v18690_v28  ;;  %v18759_v28 = vld [vmem:[#allocation152_spill] sm:$0xff] }
 0x3e3   : > { %11644 = vmatpush3.bf16.msra.mxu1 %v12771_v42  ;;  %11615 = vmatprep.mubr.msk.bf16.mxu1 %vm4519_vm2, %v18691_v33  ;;  %v18760_v33 = vld [vmem:[#allocation35_spill] sm:$0xff] }
 0x3ea   : > { %11616 = vmatmul.mubr.msk.bf16.gmra.mrb[36].mxu1 %vm4519_vm2, %v18692_v48  ;;  %v6529_v48 = vmul.f32 0.0, %v18760_v33 }
 0x3eb   : > { %11619 = vmatprep.mubr.msk.bf16.mxu1 %vm4519_vm2, %v18693_v47  ;;  %v6797_v47 = vmul.f32 %v15351_v43, %v18703_v12  ;;  %v6803_v43 = vmul.f32 %v15399_v44, %v18638_v60  ;;  %v18771_v44 = vld [vmem:[#allocation141_spill] sm:$0xff] }
 0x3ed   : > { %v6828_v42 = vpack.c.bf16 %v6797_v47, %v15369_v8  ;;  %v6831_v8 = vpack.c.bf16 %v6803_v43, %v15409_v38  ;;  %v18772_v38 = vpack.c.bf16 %v18771_v44, %v14824_v0  ;;  %v18780_v0 = vpack.c.bf16 %v18779_v39, %v18651_v26  ;;  %v18788_v26 = vld [vmem:[#allocation24_spill] sm:$0xff] }
 0x3ee   : > { %v6827_v58 = vmul.f32 0.0, %v18788_v26 }
 0x3f0   : > { %v6843_v46 = vpack.c.bf16 %v6827_v58, %v6826_v15 }
 0x3f2   : > { %11620 = vmatmul.mubr.msk.bf16.gmra.mrb[40].mxu1 %vm4519_vm2, %v18694_v41  ;;  %v18761_v41 = vld [vmem:[#allocation37_spill] sm:$0xff] }
 0x3f3   : > { %11623 = vmatprep.mubr.msk.bf16.mxu1 %vm4519_vm2, %v18695_v4  ;;  %v6528_v4 = vmul.f32 0.0, %v18761_v41 }
 0x3fa   : > { %11624 = vmatmul.mubr.msk.bf16.gmra.mrb[44].mxu1 %vm4519_vm2, %v18755_v55 }
 0x3fb   : > { %11627 = vmatprep.mubr.msk.bf16.mxu1 %vm4519_vm2, %v18756_v19 }
 0x402   : > { %11628 = vmatmul.mubr.msk.bf16.gmra.mrb[48].mxu1 %vm4519_vm2, %v18757_v32 }
 0x403   : > { %11631 = vmatprep.mubr.msk.bf16.mxu1 %vm4519_vm2, %v18699_v54  ;;  %v6545_v54 = vpack.c.bf16 %v6529_v48, %v6528_v4 }
 0x40a   : > { %11632 = vmatmul.mubr.msk.bf16.gmra.mrb[52].mxu1 %vm4519_vm2, %v18758_v27 }
 0x40b   : > { %11635 = vmatprep.mubr.msk.bf16.mxu1 %vm4519_vm2, %v18759_v28 }
 0x412   : > { %11636 = vmatmul.mubr.msk.bf16.gmra.mrb[56].mxu1 %vm4519_vm2, %v18702_v40  ;;  %v6801_v40 = vmul.f32 %v15378_v23, %v18762_v13 }
 0x413   : > { %11639 = vmatprep.mubr.msk.bf16.mxu1 %vm4519_vm2, %v15555_v63  ;;  %v18763_v63 = vld [vmem:[#allocation36_spill] sm:$0xff] }
 0x414   : > { %v6830_v17 = vpack.c.bf16 %v6801_v40, %v15392_v20  ;;  %v18764_v6 = vpack.c.bf16 %v18763_v63, %v18640_v50  ;;  %v18767_v20 = vld [vmem:[#allocation139_spill] sm:$0xff]  ;;  %v18769_v50 = vld [vmem:[#allocation140_spill] sm:$0xff] }
 0x415   : > { %v18768_v23 = vpack.c.bf16 %v18767_v20, %v18517_v49  ;;  %v18770_v1 = vpack.c.bf16 %v18769_v50, %v14808_v34  ;;  %v18776_v49 = vpack.c.bf16 %v18775_v14, %v18645_v3  ;;  %v18778_v34 = vpack.c.bf16 %v18777_v61, %v18646_v62 }
 0x416   : > { %v18784_v3 = vpack.c.bf16 %v18783_v59, %v18655_v52  ;;  %v18786_v62 = vpack.c.bf16 %v18785_v16, %v14790_v5  ;;  %v15793_v52 = vld [vmem:[%s17490_s5] sm:$0xff]  }
 0x417   : > { %11711 = vmatprep.subr.bf16.mxu0 %v15793_v52  ;;  %v15799_v5 = vld [vmem:[%s17489_s4] ss:$0 sm:$0xff] }
 0x41a   : > { %11640 = vmatmul.mubr.msk.bf16.gmra.mrb[60].mxu1 %vm4519_vm2, %v6545_v54 }
 0x41b   : > { %11645 = vmatprep.mubr.msk.bf16.mxu1 %vm4519_vm2, %v6828_v42 }
 0x422   : > { %11646 = vmatmul.mubr.msk.bf16.vlgmr.msra.gmra.mrb[32].mxu1 %vm4519_vm2, %v18764_v6 }
 0x423   : > { %11649 = vmatprep.mubr.msk.bf16.mxu1 %vm4519_vm2, %v6830_v17 }
 0x42a   : > { %11650 = vmatmul.mubr.msk.bf16.gmra.mrb[36].mxu1 %vm4519_vm2, %v6831_v8 }
 0x42b   : > { %11653 = vmatprep.mubr.msk.bf16.mxu1 %vm4519_vm2, %v18766_v35 }
 0x432   : > { %11654 = vmatmul.mubr.msk.bf16.gmra.mrb[40].mxu1 %vm4519_vm2, %v18768_v23 }
 0x433   : > { %11657 = vmatprep.mubr.msk.bf16.mxu1 %vm4519_vm2, %v18770_v1 }
 0x43a   : > { %11658 = vmatmul.mubr.msk.bf16.gmra.mrb[44].mxu1 %vm4519_vm2, %v18772_v38 }
 0x43b   : > { %11661 = vmatprep.mubr.msk.bf16.mxu1 %vm4519_vm2, %v18774_v31 }
 0x442   : > { %11662 = vmatmul.mubr.msk.bf16.gmra.mrb[48].mxu1 %vm4519_vm2, %v18776_v49 }
 0x443   : > { %11665 = vmatprep.mubr.msk.bf16.mxu1 %vm4519_vm2, %v18778_v34 }
 0x44a   : > { %11666 = vmatmul.mubr.msk.bf16.gmra.mrb[52].mxu1 %vm4519_vm2, %v18780_v0 }
 0x44b   : > { %11669 = vmatprep.mubr.msk.bf16.mxu1 %vm4519_vm2, %v18782_v56 }
 0x452   : > { %11670 = vmatmul.mubr.msk.bf16.gmra.mrb[56].mxu1 %vm4519_vm2, %v18784_v3 }
 0x453   : > { %11673 = vmatprep.mubr.msk.bf16.mxu1 %vm4519_vm2, %v18786_v62 }
 0x45a   : > { %11674 = vmatmul.mubr.msk.bf16.gmra.mrb[60].mxu1 %vm4519_vm2, %v6843_v46 }
 0x4f5   : > { %v11647_v45 = vpop.f32.mrb[32].mxu1 }
 0x4f6   : > { %v7103_v21 = vadd.f32 %v11647_v45, %v15799_v5  ;;  %v6935_v36 = vpop.f32.mrb[33].mxu1 }
 0x4f7   : > { %v7101_v18 = vadd.f32 %v15799_v5, %v6935_v36  ;;  %v11648_v11 = vpop.f32.mrb[34].mxu1 }
 0x4f8   : > { %v7135_v22 = vmax.f32 %v7103_v21, 0.0  ;;  %v7104_v37 = vadd.f32 %v11648_v11, %v15799_v5  ;;  %v6938_v29 = vpop.f32.mrb[35].mxu1 }
 0x4f9   : > { %v15804_v55 = vmax.f32 %v7101_v18, 0.0  ;;  %v7102_v19 = vadd.f32 %v15799_v5, %v6938_v29 }
 0x4fa   : > { %v7136_v32 = vmax.f32 %v7104_v37, 0.0  ;;  %v7167_v27 = vrot.slane %v7135_v22, 7  ;;  %v7762_v28 = vrot.slane %v7135_v22, 1 }
 0x4fb   : > { %v15807_v48 = vmax.f32 %v7102_v19, 0.0  ;;  %v17895_v47 = vrot.slane %v15804_v55, 7  ;;  %v17894_v40 = vrot.slane %v15804_v55, 1 }
 0x4fc   : > { %v7168_v4 = vrot.slane %v7136_v32, 7  ;;  %v15810_v54 = vpack.c.bf16 %v7136_v32, %v7135_v22  ;;  %v7763_v42 = vrot.slane %v7136_v32, 1 }
 0x4fd   : > { %18789 = vst [vmem:[#allocation86_spill] sm:$0xff] %v15807_v48  ;;  %v7166_v17 = vrot.slane %v15807_v48, 7  ;;  %v15816_v63 = vpack.c.bf16 %v15807_v48, %v15804_v55  ;;  %v7761_v6 = vrot.slane %v15807_v48, 1  ;;  %v11651_v43 = vpop.f32.mrb[36].mxu1 }
 0x4fe   : > { %18790 = vst [vmem:[#allocation90_spill] sm:$0xff] %v15810_v54  ;;  %v7107_v8 = vadd.f32 %v11651_v43, %v15799_v5  ;;  %v6951_v2 = vpop.f32.mrb[37].mxu1  ;;  %v15822_v20 = vsel %vm1593_vm4, %v7167_v27, %v7168_v4  ;;  %v15826_v23 = vsel %vm2186_vm3, %v7762_v28, %v7763_v42 }
 0x4ff   : > { %18791 = vst [vmem:[#allocation83_spill] sm:$0xff] %v15816_v63  ;;  %18793 = vst [vmem:[#allocation17_spill] sm:$0xff] %v15822_v20  ;;  %v15832_v50 = vsel %vm1593_vm4, %v17895_v47, %v7166_v17  ;;  %v15836_v1 = vsel %vm2186_vm3, %v7761_v6, %v7762_v28  ;;  %v15842_v44 = vsel %vm2186_vm3, %v17894_v40, %v7761_v6  ;;  %v11652_v57 = vpop.f32.mrb[38].mxu1  ;;  %v18833_v20 = vld [vmem:[#allocation81_spill] sm:$0xff] }
 0x500   : > { %18794 = vst [vmem:[#allocation84_spill] sm:$0xff] %v15826_v23  ;;  %18795 = vst [vmem:[#allocation91_spill] sm:$0xff] %v15832_v50  ;;  %v7105_v38 = vadd.f32 %v15799_v5, %v6951_v2  ;;  %v15845_v31 = vmax.f32 %v7107_v8, 0.0  ;;  %v7108_v14 = vadd.f32 %v11652_v57, %v15799_v5  ;;  %v6954_v49 = vpop.f32.mrb[39].mxu1  ;;  %v15850_v61 = vsel %vm1593_vm4, %v7166_v17, %v7167_v27 }
 0x501   : > { %18796 = vst [vmem:[#allocation92_spill] sm:$0xff] %v15836_v1  ;;  %18797 = vst [vmem:[#allocation94_spill] sm:$0xff] %v15842_v44  ;;  %v7106_v39 = vadd.f32 %v15799_v5, %v6954_v49 }
 0x502   : > { %18798 = vst [vmem:[#allocation34_spill] sm:$0xff] %v15850_v61  ;;  %v15852_v34 = vmax.f32 %v7105_v38, 0.0  ;;  %v15855_v0 = vmax.f32 %v7108_v14, 0.0  ;;  %v7171_v3 = vrot.slane %v15845_v31, 7  ;;  %v17897_v16 = vrot.slane %v15845_v31, 1 }
 0x503   : > { %v15859_v59 = vmax.f32 %v7106_v39, 0.0 }
 0x504   : > { %v7169_v9 = vrot.slane %v15852_v34, 7  ;;  %v17899_v56 = vrot.slane %v15852_v34, 1  ;;  %v15865_v62 = vpack.c.bf16 %v15855_v0, %v15845_v31  ;;  %v7172_v21 = vrot.slane %v15855_v0, 7 }
 0x505   : > { %v7170_v26 = vrot.slane %v15859_v59, 7  ;;  %v15880_v58 = vpack.c.bf16 %v15859_v59, %v15852_v34  ;;  %v11655_v46 = vpop.f32.mrb[40].mxu1  ;;  %v7765_v36 = vrot.slane %v15859_v59, 1  ;;  %v17898_v57 = vrot.slane %v15855_v0, 1 }
 0x506   : > { %18799 = vst [vmem:[#allocation14_spill] sm:$0xff] %v15865_v62  ;;  %v15869_v24 = vsel %vm1593_vm4, %v7168_v4, %v7169_v9  ;;  %v15875_v15 = vsel %vm2186_vm3, %v7763_v42, %v17899_v56  ;;  %v7111_v18 = vadd.f32 %v11655_v46, %v15799_v5  ;;  %v6967_v11 = vpop.f32.mrb[41].mxu1  ;;  %v15922_v38 = vsel %vm1593_vm4, %v7171_v3, %v7172_v21  ;;  %v18817_v56 = vld [vmem:[#allocation77_spill] sm:$0xff] }
 0x507   : > { %18800 = vst [vmem:[#allocation98_spill] sm:$0xff] %v15875_v15  ;;  %18801 = vst [vmem:[#allocation108_spill] sm:$0xff] %v15880_v58  ;;  %v15884_v45 = vmul.f32 %v15869_v24, %v18802_v10  ;;  %v15891_v22 = vsel %vm1593_vm4, %v7170_v26, %v7171_v3  ;;  %v7109_v37 = vadd.f32 %v15799_v5, %v6967_v11  ;;  %v11656_v29 = vpop.f32.mrb[42].mxu1  ;;  %v18825_v15 = vld [vmem:[#allocation79_spill] sm:$0xff] }
 0x508   : > { %18804 = vst [vmem:[#allocation109_spill] sm:$0xff] %v15891_v22  ;;  %v15896_v19 = vsel %vm1593_vm4, %v7169_v9, %v7170_v26  ;;  %v15900_v32 = vmul.f32 %v15869_v24, %v18665_v53  ;;  %v15906_v27 = vsel %vm2186_vm3, %v7765_v36, %v17897_v16  ;;  %v15908_v28 = vmax.f32 %v7111_v18, 0.0  ;;  %v6970_v42 = vpop.f32.mrb[43].mxu1  ;;  %18808 = vst [vmem:[#allocation117_spill] sm:$0xff] %v15922_v38 }
 0x509   : > { %18803 = vst [vmem:[#allocation99_spill] sm:$0xff] %v15884_v45  ;;  %18805 = vst [vmem:[#allocation110_spill] sm:$0xff] %v15896_v19  ;;  %v7112_v4 = vadd.f32 %v11656_v29, %v15799_v5  ;;  %v15913_v6 = vmax.f32 %v7109_v37, 0.0  ;;  %v7110_v43 = vadd.f32 %v15799_v5, %v6970_v42 }
 0x50a   : > { %18806 = vst [vmem:[#allocation113_spill] sm:$0xff] %v15900_v32  ;;  %18807 = vst [vmem:[#allocation111_spill] sm:$0xff] %v15906_v27  ;;  %v7175_v9 = vrot.slane %v15908_v28, 7  ;;  %v17900_v29 = vrot.slane %v15908_v28, 1 }
 0x50b   : > { %v15918_v2 = vmax.f32 %v7112_v4, 0.0  ;;  %v7173_v14 = vrot.slane %v15913_v6, 7  ;;  %v17896_v49 = vrot.slane %v15913_v6, 1  ;;  %v15927_v39 = vmax.f32 %v7110_v43, 0.0 }
 0x50d   : > { %v7176_v59 = vrot.slane %v15918_v2, 7  ;;  %v15933_v26 = vpack.c.bf16 %v15918_v2, %v15908_v28  ;;  %v15937_v3 = vsel %vm1593_vm4, %v7172_v21, %v7173_v14  ;;  %v15945_v46 = vsel %vm2186_vm3, %v17898_v57, %v17896_v49  ;;  %v11659_v37 = vpop.f32.mrb[44].mxu1  ;;  %v18815_v57 = vld [vmem:[#allocation10_spill] sm:$0xff] }
 0x50e   : > { %18810 = vst [vmem:[#allocation125_spill] sm:$0xff] %v15937_v3  ;;  %18811 = vst [vmem:[#allocation53_spill] sm:$0xff] %v15945_v46  ;;  %v7174_v18 = vrot.slane %v15927_v39, 7  ;;  %v15950_v11 = vpack.c.bf16 %v15927_v39, %v15913_v6  ;;  %v17901_v21 = vrot.slane %v15927_v39, 1  ;;  %v7115_v4 = vadd.f32 %v11659_v37, %v15799_v5  ;;  %v6983_v42 = vpop.f32.mrb[45].mxu1 }
 0x50f   : > { %18809 = vst [vmem:[#allocation118_spill] sm:$0xff] %v15933_v26  ;;  %v7113_v17 = vadd.f32 %v15799_v5, %v6983_v42  ;;  %v11660_v8 = vpop.f32.mrb[46].mxu1  ;;  %v15966_v47 = vsel %vm1593_vm4, %v7175_v9, %v7176_v59  ;;  %v18854_v13 = vrot.slane %v15927_v39, 1 }
 0x510   : > { %18812 = vst [vmem:[#allocation95_spill] sm:$0xff] %v15950_v11  ;;  %v15957_v43 = vsel %vm1593_vm4, %v7174_v18, %v7175_v9  ;;  %v15962_v40 = vsel %vm1593_vm4, %v7173_v14, %v7174_v18  ;;  %v15974_v37 = vsel %vm2186_vm3, %v17901_v21, %v17900_v29  ;;  %v15976_v49 = vmax.f32 %v7115_v4, 0.0  ;;  %v6986_v16 = vpop.f32.mrb[47].mxu1 }
 0x511   : > { %18813 = vst [vmem:[#allocation154_spill] sm:$0xff] %v15962_v40  ;;  %18814 = vst [vmem:[#allocation155_spill] sm:$0xff] %v15974_v37  ;;  %v7116_v42 = vadd.f32 %v11660_v8, %v15799_v5  ;;  %v15981_v14 = vmul.f32 %v15906_v27, %v18815_v57  ;;  %v15983_v18 = vmax.f32 %v7113_v17, 0.0  ;;  %v7114_v9 = vadd.f32 %v15799_v5, %v6986_v16 }
 0x512   : > { %v15988_v33 = vmul.f32 %v15957_v43, %v18817_v56  ;;  %v7179_v4 = vrot.slane %v15976_v49, 7  ;;  %v18822_v16 = vrot.slane %v15918_v2, 1  ;;  %v18830_v40 = vrot.slane %v15976_v49, 1 }
 0x513   : > { %18816 = vst [vmem:[#allocation3_spill] sm:$0xff] %v15981_v14  ;;  %v15993_v8 = vmax.f32 %v7116_v42, 0.0  ;;  %v7177_v41 = vrot.slane %v15983_v18, 7  ;;  %v17909_v45 = vrot.slane %v15983_v18, 1  ;;  %v15997_v17 = vmax.f32 %v7114_v9, 0.0 }
 0x514   : > { %18818 = vst [vmem:[#allocation96_spill] sm:$0xff] %v15988_v33  ;;  %v18820_v42 = vrot.slane %v15852_v34, 1 }
 0x515   : > { %v7180_v12 = vrot.slane %v15993_v8, 7  ;;  %v16004_v29 = vpack.c.bf16 %v15993_v8, %v15976_v49  ;;  %v16015_v9 = vsel %vm1593_vm4, %v7176_v59, %v7177_v41  ;;  %v16023_v23 = vsel %vm2186_vm3, %v18822_v16, %v17909_v45 }
 0x516   : > { %v16011_v21 = vsel %vm2186_vm3, %v18820_v42, %v7765_v36  ;;  %18823 = vst [vmem:[#allocation97_spill] sm:$0xff] %v16023_v23  ;;  %v7178_v53 = vrot.slane %v15997_v17, 7  ;;  %v16028_v34 = vpack.c.bf16 %v15997_v17, %v15983_v18  ;;  %v11663_v36 = vpop.f32.mrb[48].mxu1  ;;  %v16034_v1 = vmul.f32 %v16015_v9, %v18825_v15 }
 0x517   : > { %18819 = vst [vmem:[#allocation156_spill] sm:$0xff] %v16004_v29  ;;  %18821 = vst [vmem:[#allocation61_spill] sm:$0xff] %v16011_v21  ;;  %v7119_v59 = vadd.f32 %v11663_v36, %v15799_v5  ;;  %v6999_v44 = vpop.f32.mrb[49].mxu1  ;;  %v16038_v16 = vsel %vm1593_vm4, %v7179_v4, %v7180_v12  ;;  %v16051_v36 = vmul.f32 %v15906_v27, %v18638_v60  ;;  %v18831_v3 = vrot.slane %v15997_v17, 1 }
 0x518   : > { %18824 = vst [vmem:[#allocation100_spill] sm:$0xff] %v16028_v34  ;;  %18826 = vst [vmem:[#allocation101_spill] sm:$0xff] %v16034_v1  ;;  %v16042_v45 = vsel %vm1593_vm4, %v7178_v53, %v7179_v4  ;;  %v7117_v57 = vadd.f32 %v15799_v5, %v6999_v44  ;;  %v11664_v33 = vpop.f32.mrb[50].mxu1  ;;  %v16047_v42 = vsel %vm1593_vm4, %v7177_v41, %v7178_v53  ;;  %v18837_v53 = vrot.slane %v15845_v31, 1 }
 0x519   : > { %18827 = vst [vmem:[#allocation102_spill] sm:$0xff] %v16038_v16  ;;  %18828 = vst [vmem:[#allocation103_spill] sm:$0xff] %v16047_v42  ;;  %v16059_v32 = vsel %vm2186_vm3, %v18831_v3, %v18830_v40  ;;  %v16061_v4 = vmax.f32 %v7119_v59, 0.0  ;;  %v7120_v44 = vadd.f32 %v11664_v33, %v15799_v5  ;;  %v7002_v38 = vpop.f32.mrb[51].mxu1  ;;  %v16071_v61 = vmul.f32 %v16042_v45, %v18833_v20  ;;  %v18894_v42 = vld [vmem:[#allocation45_spill] sm:$0xff] }
 0x51a   : > { %18829 = vst [vmem:[#allocation104_spill] sm:$0xff] %v16051_v36  ;;  %18832 = vst [vmem:[#allocation105_spill] sm:$0xff] %v16059_v32  ;;  %v16066_v41 = vmax.f32 %v7117_v57, 0.0  ;;  %v7118_v22 = vadd.f32 %v15799_v5, %v7002_v38  ;;  %v18836_v59 = vrot.slane %v15855_v0, 1  ;;  %v18841_v14 = vrot.slane %v15993_v8, 1 }
 0x51b   : > { %18834 = vst [vmem:[#allocation106_spill] sm:$0xff] %v16071_v61  ;;  %v7183_v3 = vrot.slane %v16061_v4, 7  ;;  %v16077_v33 = vmax.f32 %v7120_v44, 0.0  ;;  %v18850_v21 = vrot.slane %v16061_v4, 1  ;;  %v16582_v35 = vmul.f32 %v16042_v45, %v18825_v15 }
 0x51c   : > { %v7181_v57 = vrot.slane %v16066_v41, 7  ;;  %v16083_v1 = vmax.f32 %v7118_v22, 0.0  ;;  %v16099_v38 = vsel %vm2186_vm3, %v18837_v53, %v18836_v59  ;;  %v18840_v29 = vrot.slane %v16066_v41, 1 }
 0x51d   : > { %v7184_v40 = vrot.slane %v16077_v33, 7  ;;  %v16090_v36 = vpack.c.bf16 %v16077_v33, %v16061_v4  ;;  %18838 = vst [vmem:[#allocation107_spill] sm:$0xff] %v16099_v38  ;;  %v11667_v53 = vpop.f32.mrb[52].mxu1 }
 0x51e   : > { %v16103_v22 = vsel %vm1593_vm4, %v7180_v12, %v7181_v57  ;;  %v16111_v61 = vsel %vm2186_vm3, %v18841_v14, %v18840_v29  ;;  %v7182_v0 = vrot.slane %v16083_v1, 7  ;;  %v16116_v31 = vpack.c.bf16 %v16083_v1, %v16066_v41  ;;  %v7015_v44 = vpop.f32.mrb[53].mxu1 }
 0x51f   : > { %18835 = vst [vmem:[#allocation93_spill] sm:$0xff] %v16090_v36  ;;  %18839 = vst [vmem:[#allocation42_spill] sm:$0xff] %v16103_v22  ;;  %v7123_v12 = vadd.f32 %v11667_v53, %v15799_v5  ;;  %v18843_v36 = vld [vmem:[#allocation18_spill] sm:$0xff]  ;;  %v16126_v29 = vsel %vm1593_vm4, %v7183_v3, %v7184_v40  ;;  %v11668_v34 = vpop.f32.mrb[54].mxu1  ;;  %v18848_v53 = vld [vmem:[#allocation33_spill] sm:$0xff]  ;;  %v18851_v26 = vrot.slane %v16083_v1, 1 }
 0x520   : > { %18842 = vst [vmem:[#allocation4_spill] sm:$0xff] %v16116_v31  ;;  %v16122_v48 = vmul.f32 %v16103_v22, %v18843_v36  ;;  %18845 = vst [vmem:[#allocation68_spill] sm:$0xff] %v16126_v29  ;;  %v16130_v14 = vsel %vm1593_vm4, %v7182_v0, %v7183_v3  ;;  %v7121_v31 = vadd.f32 %v15799_v5, %v7015_v44  ;;  %v7018_v60 = vpop.f32.mrb[55].mxu1 }
 0x521   : > { %18846 = vst [vmem:[#allocation78_spill] sm:$0xff] %v16130_v14  ;;  %v16135_v59 = vsel %vm1593_vm4, %v7181_v57, %v7182_v0  ;;  %v16139_v51 = vmul.f32 %v15945_v46, %v18848_v53  ;;  %v16147_v11 = vsel %vm2186_vm3, %v18851_v26, %v18850_v21  ;;  %v16149_v3 = vmax.f32 %v7123_v12, 0.0  ;;  %v18852_v46 = vld [vmem:[#allocation19_spill] sm:$0xff]  ;;  %v18858_v12 = vld [vmem:[#allocation38_spill] sm:$0xff] }
 0x522   : > { %18844 = vst [vmem:[#allocation69_spill] sm:$0xff] %v16122_v48  ;;  %18847 = vst [vmem:[#allocation73_spill] sm:$0xff] %v16135_v59  ;;  %v7124_v44 = vadd.f32 %v11668_v34, %v15799_v5  ;;  %v16154_v0 = vmax.f32 %v7121_v31, 0.0  ;;  %v7122_v53 = vadd.f32 %v15799_v5, %v7018_v60  ;;  %v16159_v27 = vmul.f32 %v16130_v14, %v18852_v46 }
 0x523   : > { %18849 = vst [vmem:[#allocation31_spill] sm:$0xff] %v16139_v51  ;;  %v7187_v21 = vrot.slane %v16149_v3, 7  ;;  %v18855_v31 = vrot.slane %v15913_v6, 1  ;;  %v18868_v16 = vrot.slane %v16149_v3, 1  ;;  %v18872_v14 = vrot.slane %v15918_v2, 1 }
 0x524   : > { %18853 = vst [vmem:[#allocation32_spill] sm:$0xff] %v16159_v27  ;;  %v16165_v34 = vmax.f32 %v7124_v44, 0.0  ;;  %v7185_v57 = vrot.slane %v16154_v0, 7  ;;  %v17946_v48 = vrot.slane %v16154_v0, 1  ;;  %v16177_v59 = vmax.f32 %v7122_v53, 0.0 }
 0x525   : > { %v16173_v60 = vsel %vm2186_vm3, %v18855_v31, %v18854_v13  ;;  %v16189_v13 = vmul.f32 %v15974_v37, %v18858_v12  ;;  %v18861_v53 = vrot.slane %v16077_v33, 1  ;;  %v11671_v27 = vpop.f32.mrb[56].mxu1  ;;  %v18863_v12 = vld [vmem:[#allocation25_spill] sm:$0xff] }
 0x526   : > { %18856 = vst [vmem:[#allocation150_spill] sm:$0xff] %v16173_v60  ;;  %v7188_v44 = vrot.slane %v16165_v34, 7  ;;  %v16184_v39 = vpack.c.bf16 %v16165_v34, %v16149_v3  ;;  %v16193_v31 = vsel %vm1593_vm4, %v7184_v40, %v7185_v57  ;;  %v7186_v51 = vrot.slane %v16177_v59, 7  ;;  %v7031_v38 = vpop.f32.mrb[57].mxu1 }
 0x527   : > { %18859 = vst [vmem:[#allocation112_spill] sm:$0xff] %v16189_v13  ;;  %18860 = vst [vmem:[#allocation114_spill] sm:$0xff] %v16193_v31  ;;  %v16201_v26 = vsel %vm2186_vm3, %v18861_v53, %v17946_v48  ;;  %v16206_v6 = vpack.c.bf16 %v16177_v59, %v16154_v0  ;;  %v7127_v40 = vadd.f32 %v11671_v27, %v15799_v5  ;;  %v11672_v29 = vpop.f32.mrb[58].mxu1  ;;  %v18870_v13 = vld [vmem:[#allocation28_spill] sm:$0xff] }
 0x528   : > { %18857 = vst [vmem:[#allocation153_spill] sm:$0xff] %v16184_v39  ;;  %v16212_v37 = vmul.f32 %v16193_v31, %v18863_v12  ;;  %v16216_v53 = vsel %vm1593_vm4, %v7187_v21, %v7188_v44  ;;  %v16220_v48 = vsel %vm1593_vm4, %v7186_v51, %v7187_v21  ;;  %v16225_v39 = vsel %vm1593_vm4, %v7185_v57, %v7186_v51  ;;  %v7034_v46 = vpop.f32.mrb[59].mxu1  ;;  %v18875_v51 = vld [vmem:[#allocation44_spill] sm:$0xff] }
 0x529   : > { %18862 = vst [vmem:[#allocation115_spill] sm:$0xff] %v16206_v6  ;;  %18865 = vst [vmem:[#allocation119_spill] sm:$0xff] %v16216_v53  ;;  %v7125_v6 = vadd.f32 %v15799_v5, %v7031_v38  ;;  %v18869_v12 = vrot.slane %v16177_v59, 1  ;;  %v16237_v21 = vmax.f32 %v7127_v40, 0.0  ;;  %v7128_v38 = vadd.f32 %v11672_v29, %v15799_v5  ;;  %v18968_v50 = vld [vmem:[#allocation68_spill] sm:$0xff] }
 0x52a   : > { %18864 = vst [vmem:[#allocation116_spill] sm:$0xff] %v16212_v37  ;;  %18866 = vst [vmem:[#allocation39_spill] sm:$0xff] %v16220_v48  ;;  %v7126_v27 = vadd.f32 %v15799_v5, %v7034_v46  ;;  %v16247_v60 = vmul.f32 %v16220_v48, %v18870_v13  ;;  %v16263_v46 = vmul.f32 %v16023_v23, %v18875_v51 }
 0x52b   : > { %18867 = vst [vmem:[#allocation13_spill] sm:$0xff] %v16225_v39  ;;  %v16235_v31 = vsel %vm2186_vm3, %v18869_v12, %v18868_v16  ;;  %v16242_v57 = vmax.f32 %v7125_v6, 0.0  ;;  %v18873_v16 = vrot.slane %v15908_v28, 1  ;;  %v7191_v29 = vrot.slane %v16237_v21, 7 }
 0x52c   : > { %18871 = vst [vmem:[#allocation120_spill] sm:$0xff] %v16247_v60  ;;  %v16259_v6 = vmax.f32 %v7128_v38, 0.0  ;;  %18876 = vst [vmem:[#allocation122_spill] sm:$0xff] %v16263_v46  ;;  %v16267_v39 = vmax.f32 %v7126_v27, 0.0  ;;  %v18879_v27 = vrot.slane %v16165_v34, 1  ;;  %v18889_v13 = vrot.slane %v16237_v21, 1 }
 0x52d   : > { %v16255_v12 = vsel %vm2186_vm3, %v18873_v16, %v18872_v14  ;;  %v7189_v37 = vrot.slane %v16242_v57, 7  ;;  %v17969_v2 = vrot.slane %v16242_v57, 1 }
 0x52e   : > { %18874 = vst [vmem:[#allocation121_spill] sm:$0xff] %v16255_v12  ;;  %v7192_v14 = vrot.slane %v16259_v6, 7  ;;  %v16274_v16 = vpack.c.bf16 %v16259_v6, %v16237_v21  ;;  %v7190_v60 = vrot.slane %v16267_v39, 7  ;;  %v16294_v38 = vpack.c.bf16 %v16267_v39, %v16242_v57  ;;  %v18881_v12 = vld [vmem:[#allocation29_spill] sm:$0xff] }
 0x52f   : > { %v16281_v51 = vsel %vm1593_vm4, %v7188_v44, %v7189_v37  ;;  %v16289_v28 = vsel %vm2186_vm3, %v18879_v27, %v17969_v2 }
 0x530   : > { %18877 = vst [vmem:[#allocation123_spill] sm:$0xff] %v16274_v16  ;;  %18878 = vst [vmem:[#allocation124_spill] sm:$0xff] %v16281_v51  ;;  %v11675_v16 = vpop.f32.mrb[60].mxu1  ;;  %v16300_v23 = vmul.f32 %v16281_v51, %v18881_v12  ;;  %v16304_v27 = vsel %vm1593_vm4, %v7191_v29, %v7192_v14  ;;  %v16308_v2 = vsel %vm1593_vm4, %v7190_v60, %v7191_v29  ;;  %v18887_v12 = vrot.slane %v15983_v18, 1 }
 0x531   : > { %18880 = vst [vmem:[#allocation27_spill] sm:$0xff] %v16294_v38  ;;  %v7131_v44 = vadd.f32 %v11675_v16, %v15799_v5  ;;  %v7047_v46 = vpop.f32.mrb[61].mxu1  ;;  %18883 = vst [vmem:[#allocation127_spill] sm:$0xff] %v16304_v27  ;;  %v16313_v40 = vsel %vm1593_vm4, %v7189_v37, %v7190_v60  ;;  %v18886_v16 = vrot.slane %v15997_v17, 1  ;;  %v18890_v29 = vrot.slane %v16267_v39, 1 }
 0x532   : > { %18882 = vst [vmem:[#allocation126_spill] sm:$0xff] %v16300_v23  ;;  %18884 = vst [vmem:[#allocation128_spill] sm:$0xff] %v16308_v2  ;;  %v7129_v38 = vadd.f32 %v15799_v5, %v7047_v46  ;;  %v11676_v53 = vpop.f32.mrb[62].mxu1  ;;  %v18899_v27 = vrot.slane %v15804_v55, 7 }
 0x533   : > { %18885 = vst [vmem:[#allocation129_spill] sm:$0xff] %v16313_v40  ;;  %v16321_v51 = vsel %vm2186_vm3, %v18887_v12, %v18886_v16  ;;  %v16329_v46 = vsel %vm2186_vm3, %v18890_v29, %v18889_v13  ;;  %v16331_v48 = vmax.f32 %v7131_v44, 0.0  ;;  %v7132_v37 = vadd.f32 %v11676_v53, %v15799_v5  ;;  %v7050_v60 = vpop.f32.mrb[63].mxu1  ;;  %v18892_v16 = vld [vmem:[#allocation85_spill] sm:$0xff] }
 0x534   : > { %18888 = vst [vmem:[#allocation130_spill] sm:$0xff] %v16321_v51  ;;  %v16336_v17 = vmax.f32 %v7129_v38, 0.0  ;;  %v7130_v12 = vadd.f32 %v15799_v5, %v7050_v60  ;;  %v16341_v36 = vmul.f32 %v16308_v2, %v18892_v16  ;;  %v16345_v13 = vmul.f32 %v16059_v32, %v18894_v42 }
 0x535   : > { %18891 = vst [vmem:[#allocation131_spill] sm:$0xff] %v16331_v48  ;;  %v7195_v44 = vrot.slane %v16331_v48, 7  ;;  %v7279_v53 = vmul.f32 0.0, %v16331_v48  ;;  %v7790_v29 = vrot.slane %v16331_v48, 1  ;;  %v16350_v22 = vmax.f32 %v7132_v37, 0.0 }
 0x536   : > { %18893 = vst [vmem:[#allocation132_spill] sm:$0xff] %v16341_v36  ;;  %18895 = vst [vmem:[#allocation133_spill] sm:$0xff] %v16345_v13  ;;  %v7193_v38 = vrot.slane %v16336_v17, 7  ;;  %v7788_v5 = vrot.slane %v16336_v17, 1  ;;  %v7162_v60 = vmax.f32 %v7130_v12, 0.0  ;;  %v18897_v48 = vrot.slane %v16259_v6, 1 }
 0x537   : > { %18896 = vst [vmem:[#allocation135_spill] sm:$0xff] %v16350_v22  ;;  %v7196_v23 = vrot.slane %v16350_v22, 7  ;;  %v7280_v42 = vmul.f32 0.0, %v16350_v22  ;;  %v7791_v32 = vrot.slane %v16350_v22, 1 }
 0x538   : > { %v16363_v37 = vsel %vm1593_vm4, %v7192_v14, %v7193_v38  ;;  %v16369_v12 = vsel %vm2186_vm3, %v18897_v48, %v7788_v5  ;;  %v7194_v18 = vrot.slane %v7162_v60, 7  ;;  %v16372_v36 = vpack.c.bf16 %v7162_v60, %v16336_v17 }
 0x539   : > { %v16378_v22 = vsel %vm1593_vm4, %v7196_v23, %v18899_v27  ;;  %v7789_v40 = vrot.slane %v7162_v60, 1  ;;  %v7311_v13 = vpack.c.bf16 %v7280_v42, %v7279_v53  ;;  %v16382_v14 = vsel %vm1593_vm4, %v7195_v44, %v7196_v23  ;;  %v16398_v27 = vld [vmem:[%s17490_s5 + $0x10] sm:$0xff]   ;;  %v18908_v53 = vld [vmem:[#allocation87_spill] sm:$0xff] }
 0x53a   : > { %18898 = vst [vmem:[#allocation136_spill] sm:$0xff] %v16372_v36  ;;  %18900 = vst [vmem:[#allocation47_spill] sm:$0xff] %v16378_v22  ;;  %v16386_v48 = vmul.f32 %v16378_v22, %v18802_v10  ;;  %v16390_v17 = vsel %vm1593_vm4, %v7194_v18, %v7195_v44  ;;  %v16393_v36 = vmul.f32 0.0, %v16382_v14  ;;  %v16402_v23 = vsel %vm1593_vm4, %v7193_v38, %v7194_v18 }
 0x53b   : > { %18901 = vst [vmem:[#allocation134_spill] sm:$0xff] %v16382_v14  ;;  %18903 = vst [vmem:[#allocation148_spill] sm:$0xff] %v16390_v17  ;;  %v16406_v42 = vsel %vm2186_vm3, %v7789_v40, %v7790_v29  ;;  %11679 = vmatprep.mubr.msk.bf16.mxu0 %vm4519_vm2, %v7311_v13  ;;  %v16410_v44 = vmul.f32 0.0, %v16390_v17  ;;  %v16414_v60 = vmul.f32 %v16363_v37, %v18908_v53  ;;  %v18910_v38 = vrot.slane %v15804_v55, 1 }
 0x53c   : > { %18902 = vst [vmem:[#allocation137_spill] sm:$0xff] %v16386_v48  ;;  %18904 = vst [vmem:[#allocation151_spill] sm:$0xff] %v16393_v36  ;;  %v16418_v10 = vsel %vm2186_vm3, %v7790_v29, %v7791_v32  ;;  %11680 = vmatmul.mubr.msk.bf16.vlgmr.msra.gmra.mrb[32].mxu0 %vm4519_vm2, %v15816_v63  ;;  %v18912_v14 = vrot.slane %v15993_v8, 1  ;;  %v18913_v29 = vrot.slane %v15976_v49, 1  ;;  %v18915_v8 = vld [vmem:[#allocation56_spill] sm:$0xff]  ;;  %v18922_v63 = vrot.slane %v16061_v4, 1 }
 0x53d   : > { %18905 = vst [vmem:[#allocation152_spill] sm:$0xff] %v16398_v27  ;;  %18906 = vst [vmem:[#allocation36_spill] sm:$0xff] %v16402_v23  ;;  %v16428_v13 = vsel %vm2186_vm3, %v7791_v32, %v18910_v38  ;;  %v16431_v51 = vmul.f32 0.0, %v16418_v10  ;;  %11712 = vmatpush3.bf16.msra.mxu0 %v15793_v52  ;;  %11683 = vmatprep.mubr.msk.bf16.mxu0 %vm4519_vm2, %v15810_v54  ;;  %v16453_v49 = vmul.f32 %v16111_v61, %v18915_v8  ;;  %v18919_v32 = vld [vmem:[#allocation59_spill] sm:$0xff] }
 0x53e   : > { %18907 = vst [vmem:[#allocation138_spill] sm:$0xff] %v16410_v44  ;;  %18909 = vst [vmem:[#allocation139_spill] sm:$0xff] %v16414_v60  ;;  %v16439_v17 = vsel %vm2186_vm3, %v18913_v29, %v18912_v14  ;;  %v16449_v18 = vmul.f32 0.0, %v16428_v13  ;;  %11745 = vmatprep.subr.bf16.mxu0 %v16398_v27  ;;  %v18917_v52 = vrot.slane %v16083_v1, 1  ;;  %v18918_v14 = vrot.slane %v16066_v41, 1  ;;  %v18923_v27 = vld [vmem:[#allocation62_spill] sm:$0xff] }
 0x53f   : > { %18911 = vst [vmem:[#allocation140_spill] sm:$0xff] %v16431_v51  ;;  %18916 = vst [vmem:[#allocation142_spill] sm:$0xff] %v16453_v49  ;;  %v16466_v38 = vmul.f32 %v16147_v11, %v18919_v32  ;;  %v18921_v54 = vrot.slane %v16077_v33, 1  ;;  %v16478_v1 = vmul.f32 %v16201_v26, %v18923_v27  ;;  %v18926_v33 = vrot.slane %v16154_v0, 1  ;;  %v18966_v44 = vld [vmem:[#allocation29_spill] sm:$0xff] }
 0x540   : > { %18914 = vst [vmem:[#allocation141_spill] sm:$0xff] %v16449_v18  ;;  %v16462_v29 = vsel %vm2186_vm3, %v18918_v14, %v18917_v52  ;;  %v18925_v14 = vrot.slane %v16177_v59, 1  ;;  %v18929_v52 = vrot.slane %v16165_v34, 1  ;;  %v18930_v59 = vrot.slane %v16149_v3, 1  ;;  %v18936_v3 = vld [vmem:[#allocation71_spill] sm:$0xff]  ;;  %18948 = vst [vmem:[#allocation87_spill] sm:$0xff] %v16582_v35 }
 0x541   : > { %18920 = vst [vmem:[#allocation143_spill] sm:$0xff] %v16466_v38  ;;  %v16474_v60 = vsel %vm2186_vm3, %v18922_v63, %v18921_v54  ;;  %18924 = vst [vmem:[#allocation144_spill] sm:$0xff] %v16478_v1  ;;  %v18927_v54 = vld [vmem:[#allocation64_spill] sm:$0xff]  ;;  %v18934_v48 = vrot.slane %v16267_v39, 1  ;;  %v18935_v38 = vrot.slane %v16242_v57, 1  ;;  %v16524_v41 = vmul.f32 %v16329_v46, %v18936_v3  ;;  %v18962_v18 = vld [vmem:[#allocation73_spill] sm:$0xff] }
 0x542   : > { %v16490_v4 = vsel %vm2186_vm3, %v18926_v33, %v18925_v14  ;;  %v16494_v63 = vmul.f32 %v16235_v31, %v18927_v54  ;;  %v16506_v0 = vsel %vm2186_vm3, %v18930_v59, %v18929_v52  ;;  %v18932_v14 = vld [vmem:[#allocation67_spill] sm:$0xff]  ;;  %v18938_v52 = vrot.slane %v16259_v6, 1  ;;  %v18940_v57 = vld [vmem:[#allocation76_spill] sm:$0xff]  ;;  %v18983_v35 = vld [vmem:[#allocation53_spill] sm:$0xff] }
 0x543   : > { %18931 = vst [vmem:[#allocation146_spill] sm:$0xff] %v16506_v0  ;;  %v16510_v33 = vmul.f32 %v16289_v28, %v18932_v14  ;;  %v16520_v34 = vsel %vm2186_vm3, %v18935_v38, %v18934_v48  ;;  %18937 = vst [vmem:[#allocation149_spill] sm:$0xff] %v16524_v41  ;;  %v18939_v59 = vrot.slane %v16237_v21, 1  ;;  %v16538_v49 = vmul.f32 %v16369_v12, %v18940_v57  ;;  %v18942_v38 = vld [vmem:[#allocation82_spill] sm:$0xff]  ;;  %v18991_v51 = vld [vmem:[#allocation97_spill] sm:$0xff] }
 0x544   : > { %18928 = vst [vmem:[#allocation145_spill] sm:$0xff] %v16494_v63  ;;  %v16542_v48 = vsel %vm2186_vm3, %v7788_v5, %v7789_v40  ;;  %v16546_v6 = vmul.f32 %v16406_v42, %v18942_v38  ;;  %11684 = vmatmul.mubr.msk.bf16.gmra.mrb[36].mxu0 %vm4519_vm2, %v15880_v58  ;;  %v16566_v5 = vmul.f32 %v15957_v43, %v18617_v30  ;;  %v18953_v21 = vld [vmem:[#allocation78_spill] sm:$0xff]  ;;  %v18958_v40 = vld [vmem:[#allocation25_spill] sm:$0xff]  ;;  %v18964_v58 = vld [vmem:[#allocation124_spill] sm:$0xff] }
 0x545   : > { %18933 = vst [vmem:[#allocation147_spill] sm:$0xff] %v16510_v33  ;;  %v16532_v1 = vsel %vm2186_vm3, %v18939_v59, %v18938_v52  ;;  %18941 = vst [vmem:[#allocation74_spill] sm:$0xff] %v16538_v49  ;;  %v16552_v52 = vmul.f32 %v16378_v22, %v18728_v7  ;;  %v16556_v59 = vmul.f32 %v15869_v24, %v18731_v25  ;;  %11687 = vmatprep.mubr.msk.bf16.mxu0 %vm4519_vm2, %v15865_v62  ;;  %v18949_v7 = vld [vmem:[#allocation42_spill] sm:$0xff]  ;;  %v18951_v24 = vld [vmem:[#allocation103_spill] sm:$0xff] }
 0x546   : > { %18943 = vst [vmem:[#allocation24_spill] sm:$0xff] %v16546_v6  ;;  %18946 = vst [vmem:[#allocation79_spill] sm:$0xff] %v16566_v5  ;;  %v16576_v39 = vmul.f32 %v16015_v9, %v18817_v56  ;;  %v16586_v62 = vmul.f32 %v18949_v7, %v18833_v20  ;;  %v18955_v6 = vld [vmem:[#allocation19_spill] sm:$0xff]  ;;  %v18956_v49 = vld [vmem:[#allocation114_spill] sm:$0xff]  ;;  %v16612_v36 = vmul.f32 %v16308_v2, %v18966_v44 }
 0x547   : > { %18944 = vst [vmem:[#allocation2_spill] sm:$0xff] %v16552_v52  ;;  %18945 = vst [vmem:[#allocation77_spill] sm:$0xff] %v16556_v59  ;;  %v18952_v52 = vld [vmem:[#allocation18_spill] sm:$0xff]  ;;  %v16596_v41 = vmul.f32 %v18956_v49, %v18955_v6  ;;  %v18959_v5 = vld [vmem:[#allocation39_spill] sm:$0xff]  ;;  %v16622_v19 = vmul.f32 %v16363_v37, %v18892_v16 }
 0x548   : > { %18947 = vst [vmem:[#allocation81_spill] sm:$0xff] %v16576_v39  ;;  %18950 = vst [vmem:[#allocation56_spill] sm:$0xff] %v16586_v62  ;;  %v16592_v59 = vmul.f32 %v18953_v21, %v18952_v52  ;;  %v16600_v33 = vmul.f32 %v18959_v5, %v18958_v40  ;;  %v18961_v63 = vld [vmem:[#allocation102_spill] sm:$0xff]  ;;  %v18963_v25 = vld [vmem:[#allocation28_spill] sm:$0xff] }
 0x549   : > { %18957 = vst [vmem:[#allocation62_spill] sm:$0xff] %v16596_v41  ;;  %v16608_v39 = vmul.f32 %v18964_v58, %v18963_v25  ;;  %18967 = vst [vmem:[#allocation71_spill] sm:$0xff] %v16612_v36  ;;  %v18969_v40 = vld [vmem:[#allocation13_spill] sm:$0xff]  ;;  %v18974_v2 = vld [vmem:[#allocation148_spill] sm:$0xff]  ;;  %v16704_v36 = vmul.f32 %v16369_v12, %v18936_v3 }
 0x54a   : > { %18954 = vst [vmem:[#allocation59_spill] sm:$0xff] %v16592_v59  ;;  %18960 = vst [vmem:[#allocation64_spill] sm:$0xff] %v16600_v33  ;;  %v16630_v58 = vmul.f32 %v18974_v2, %v18908_v53  ;;  %v18976_v22 = vld [vmem:[#allocation131_spill] sm:$0xff]  ;;  %v18979_v33 = vld [vmem:[#allocation22_spill] sm:$0xff] }
 0x54b   : > { %18965 = vst [vmem:[#allocation67_spill] sm:$0xff] %v16608_v39  ;;  %18971 = vst [vmem:[#allocation76_spill] sm:$0xff] %v16622_v19  ;;  %v18977_v59 = vld [vmem:[#allocation135_spill] sm:$0xff]  ;;  %v18987_v25 = vld [vmem:[#allocation33_spill] sm:$0xff] }
 0x54c   : > { %18975 = vst [vmem:[#allocation82_spill] sm:$0xff] %v16630_v58  ;;  %v16634_v5 = vpack.c.bf16 %v18977_v59, %v18976_v22  ;;  %v18980_v41 = vld [vmem:[#allocation111_spill] sm:$0xff]  ;;  %v18999_v58 = vld [vmem:[#allocation45_spill] sm:$0xff]  ;;  %v19014_v53 = vld [vmem:[#allocation100_spill] sm:$0xff] }
 0x54d   : > { %v16640_v6 = vmul.f32 %v18980_v41, %v18979_v33  ;;  %v18982_v16 = vld [vmem:[#allocation23_spill] sm:$0xff]  ;;  %v18993_v41 = vld [vmem:[#allocation44_spill] sm:$0xff]  ;;  %v18994_v33 = vld [vmem:[#allocation105_spill] sm:$0xff]  ;;  %19009 = vst [vmem:[#allocation111_spill] sm:$0xff] %v16704_v36 }
 0x54e   : > { %18978 = vst [vmem:[#allocation42_spill] sm:$0xff] %v16634_v5  ;;  %v16644_v39 = vmul.f32 %v18983_v35, %v18982_v16  ;;  %v18985_v44 = vld [vmem:[#allocation95_spill] sm:$0xff]  ;;  %v18990_v5 = vld [vmem:[#allocation38_spill] sm:$0xff]  ;;  %v16660_v23 = vmul.f32 %v18994_v33, %v18993_v41  ;;  %v16694_v41 = vmul.f32 %v16289_v28, %v18927_v54  ;;  %v16744_v35 = vmul.f32 %v18949_v7, %v18825_v15 }
 0x54f   : > { %18981 = vst [vmem:[#allocation103_spill] sm:$0xff] %v16640_v6  ;;  %11688 = vmatmul.mubr.msk.bf16.gmra.mrb[40].mxu0 %vm4519_vm2, %v18985_v44  ;;  %v18988_v22 = vld [vmem:[#allocation155_spill] sm:$0xff]  ;;  %v16656_v19 = vmul.f32 %v18991_v51, %v18990_v5  ;;  %v18996_v16 = vld [vmem:[#allocation118_spill] sm:$0xff]  ;;  %v19002_v51 = vld [vmem:[#allocation121_spill] sm:$0xff]  ;;  %v16686_v44 = vmul.f32 %v16201_v26, %v18919_v32  ;;  %v16690_v5 = vmul.f32 %v16235_v31, %v18923_v27 }
 0x550   : > { %18984 = vst [vmem:[#allocation18_spill] sm:$0xff] %v16644_v39  ;;  %v16652_v59 = vmul.f32 %v18988_v22, %v18987_v25  ;;  %18995 = vst [vmem:[#allocation102_spill] sm:$0xff] %v16660_v23  ;;  %11691 = vmatprep.mubr.msk.bf16.mxu0 %vm4519_vm2, %v18996_v16  ;;  %v18998_v62 = vld [vmem:[#allocation107_spill] sm:$0xff]  ;;  %v16670_v25 = vmul.f32 %v16111_v61, %v18999_v58  ;;  %v19001_v22 = vld [vmem:[#allocation150_spill] sm:$0xff]  ;;  %v16680_v16 = vmul.f32 %v16147_v11, %v18915_v8 }
 0x551   : > { %18992 = vst [vmem:[#allocation114_spill] sm:$0xff] %v16656_v19  ;;  %v19003_v33 = vld [vmem:[#allocation130_spill] sm:$0xff]  ;;  %19005 = vst [vmem:[#allocation13_spill] sm:$0xff] %v16686_v44  ;;  %v16700_v23 = vmul.f32 %v16329_v46, %v18932_v14  ;;  %v16740_v6 = vmul.f32 %v16042_v45, %v18817_v56  ;;  %v16747_v19 = vmul.f32 0.0, %v15804_v55  ;;  %v16758_v56 = vmul.f32 %v18953_v21, %v18833_v20  ;;  %v19027_v21 = vld [vmem:[#allocation25_spill] sm:$0xff] }
 0x552   : > { %18989 = vst [vmem:[#allocation78_spill] sm:$0xff] %v16652_v59  ;;  %19000 = vst [vmem:[#allocation73_spill] sm:$0xff] %v16670_v25  ;;  %v16708_v25 = vmul.f32 %v16406_v42, %v18940_v57  ;;  %v19012_v59 = vld [vmem:[#allocation70_spill] sm:$0xff]  ;;  %v16768_v45 = vmul.f32 %v18956_v49, %v18952_v52  ;;  %v19031_v55 = vld [vmem:[#allocation128_spill] sm:$0xff] }
 0x553   : > { %19004 = vst [vmem:[#allocation68_spill] sm:$0xff] %v16680_v16  ;;  %19006 = vst [vmem:[#allocation148_spill] sm:$0xff] %v16690_v5  ;;  %v16718_v16 = vmul.f32 %v16428_v13, %v18942_v38  ;;  %v16730_v5 = vmul.f32 %v15957_v43, %v19012_v59  ;;  %v16736_v38 = vmul.f32 %v16015_v9, %v18617_v30  ;;  %v19019_v43 = vld [vmem:[#allocation86_spill] sm:$0xff]  ;;  %v19024_v9 = vld [vmem:[#allocation19_spill] sm:$0xff] }
 0x554   : > { %19007 = vst [vmem:[#allocation131_spill] sm:$0xff] %v16694_v41  ;;  %19008 = vst [vmem:[#allocation135_spill] sm:$0xff] %v16700_v23  ;;  %v16750_v39 = vmul.f32 0.0, %v19019_v43  ;;  %v19033_v49 = vld [vmem:[#allocation29_spill] sm:$0xff]  ;;  %v19046_v15 = vld [vmem:[#allocation23_spill] sm:$0xff] }
 0x555   : > { %19010 = vst [vmem:[#allocation107_spill] sm:$0xff] %v16708_v25  ;;  %19011 = vst [vmem:[#allocation45_spill] sm:$0xff] %v16718_v16  ;;  %v19021_v16 = vld [vmem:[#allocation156_spill] sm:$0xff]  ;;  %v16788_v52 = vmul.f32 %v16363_v37, %v19033_v49  ;;  %v19035_v43 = vld [vmem:[#allocation85_spill] sm:$0xff] }
 0x556   : > { %19013 = vst [vmem:[#allocation150_spill] sm:$0xff] %v16730_v5  ;;  %19015 = vst [vmem:[#allocation121_spill] sm:$0xff] %v16736_v38  ;;  %v19025_v5 = vld [vmem:[#allocation39_spill] sm:$0xff]  ;;  %v19028_v25 = vld [vmem:[#allocation124_spill] sm:$0xff] }
 0x557   : > { %11692 = vmatmul.mubr.msk.bf16.gmra.mrb[44].mxu0 %vm4519_vm2, %v19014_v53  ;;  %19016 = vst [vmem:[#allocation130_spill] sm:$0xff] %v16740_v6  ;;  %19017 = vst [vmem:[#allocation70_spill] sm:$0xff] %v16744_v35  ;;  %v16774_v20 = vmul.f32 %v19025_v5, %v19024_v9  ;;  %v16778_v7 = vmul.f32 %v19028_v25, %v19027_v21  ;;  %v19030_v38 = vld [vmem:[#allocation28_spill] sm:$0xff]  ;;  %v19036_v5 = vld [vmem:[#allocation47_spill] sm:$0xff] }
 0x558   : > { %19018 = vst [vmem:[#allocation100_spill] sm:$0xff] %v16747_v19  ;;  %19020 = vst [vmem:[#allocation86_spill] sm:$0xff] %v16750_v39  ;;  %11695 = vmatprep.mubr.msk.bf16.mxu0 %vm4519_vm2, %v19021_v16  ;;  %v16782_v6 = vmul.f32 %v19031_v55, %v19030_v38  ;;  %v16795_v9 = vmul.f32 0.0, %v19036_v5  ;;  %v19037_v25 = vld [vmem:[#allocation119_spill] sm:$0xff]  ;;  %v19038_v38 = vld [vmem:[#allocation129_spill] sm:$0xff] }
 0x559   : > { %19022 = vst [vmem:[#allocation156_spill] sm:$0xff] %v16758_v56  ;;  %19023 = vst [vmem:[#allocation157_spill] sm:$0xff] %v16768_v45  ;;  %v16792_v56 = vmul.f32 %v18974_v2, %v19035_v43  ;;  %v19039_v35 = vld [vmem:[#allocation127_spill] sm:$0xff]  ;;  %v19041_v37 = vld [vmem:[#allocation36_spill] sm:$0xff] }
 0x55a   : > { %19026 = vst [vmem:[#allocation19_spill] sm:$0xff] %v16774_v20  ;;  %19029 = vst [vmem:[#allocation39_spill] sm:$0xff] %v16778_v7  ;;  %v19040_v45 = vld [vmem:[#allocation91_spill] sm:$0xff]  ;;  %v19042_v2 = vld [vmem:[#allocation134_spill] sm:$0xff] }
 0x55b   : > { %19032 = vst [vmem:[#allocation25_spill] sm:$0xff] %v16782_v6  ;;  %19034 = vst [vmem:[#allocation124_spill] sm:$0xff] %v16788_v52  ;;  %v16804_v36 = vmul.f32 0.0, %v19040_v45  ;;  %v19043_v20 = vld [vmem:[#allocation22_spill] sm:$0xff]  ;;  %v19044_v55 = vld [vmem:[#allocation53_spill] sm:$0xff] }
 0x55c   : > { %v16816_v7 = vmul.f32 %v19044_v55, %v19043_v20  ;;  %v19047_v6 = vld [vmem:[#allocation155_spill] sm:$0xff]  ;;  %v19049_v41 = vld [vmem:[#allocation33_spill] sm:$0xff]  ;;  %v19052_v52 = vld [vmem:[#allocation4_spill] sm:$0xff]  ;;  %v16838_v55 = vmul.f32 %v16147_v11, %v18999_v58  ;;  %v16874_v11 = vmul.f32 %v16369_v12, %v18932_v14 }
 0x55d   : > { %v16820_v23 = vmul.f32 %v19047_v6, %v19046_v15  ;;  %v19050_v44 = vld [vmem:[#allocation97_spill] sm:$0xff]  ;;  %v19053_v43 = vld [vmem:[#allocation38_spill] sm:$0xff]  ;;  %v19056_v21 = vld [vmem:[#allocation44_spill] sm:$0xff] }
 0x55e   : > { %19045 = vst [vmem:[#allocation28_spill] sm:$0xff] %v16816_v7  ;;  %v16824_v49 = vmul.f32 %v19050_v44, %v19049_v41  ;;  %v19054_v5 = vld [vmem:[#allocation105_spill] sm:$0xff]  ;;  %v16834_v39 = vmul.f32 %v16111_v61, %v19056_v21  ;;  %19058 = vst [vmem:[#allocation119_spill] sm:$0xff] %v16838_v55  ;;  %v16850_v61 = vmul.f32 %v16201_v26, %v18915_v8  ;;  %v19069_v14 = vld [vmem:[#allocation27_spill] sm:$0xff] }
 0x55f   : > { %19048 = vst [vmem:[#allocation128_spill] sm:$0xff] %v16820_v23  ;;  %11696 = vmatmul.mubr.msk.bf16.gmra.mrb[48].mxu0 %vm4519_vm2, %v19052_v52  ;;  %v16830_v19 = vmul.f32 %v19054_v5, %v19053_v43  ;;  %v19059_v6 = vld [vmem:[#allocation93_spill] sm:$0xff]  ;;  %v16860_v43 = vmul.f32 %v16235_v31, %v18919_v32  ;;  %v16866_v26 = vmul.f32 %v16289_v28, %v18923_v27  ;;  %19064 = vst [vmem:[#allocation134_spill] sm:$0xff] %v16874_v11  ;;  %v19072_v12 = vld [vmem:[#allocation151_spill] sm:$0xff] }
 0x560   : > { %19051 = vst [vmem:[#allocation29_spill] sm:$0xff] %v16824_v49  ;;  %19057 = vst [vmem:[#allocation47_spill] sm:$0xff] %v16834_v39  ;;  %11699 = vmatprep.mubr.msk.bf16.mxu0 %vm4519_vm2, %v19059_v6  ;;  %v16870_v8 = vmul.f32 %v16329_v46, %v18927_v54  ;;  %v16880_v31 = vmul.f32 %v16406_v42, %v18936_v3  ;;  %v16884_v32 = vmul.f32 %v16428_v13, %v18940_v57  ;;  %v19067_v54 = vld [vmem:[#allocation115_spill] sm:$0xff]  ;;  %v19068_v13 = vld [vmem:[#allocation153_spill] sm:$0xff] }
 0x561   : > { %19055 = vst [vmem:[#allocation85_spill] sm:$0xff] %v16830_v19  ;;  %19060 = vst [vmem:[#allocation129_spill] sm:$0xff] %v16850_v61  ;;  %v19070_v3 = vld [vmem:[#allocation123_spill] sm:$0xff]  ;;  %v19071_v57 = vld [vmem:[#allocation136_spill] sm:$0xff] }
 0x562   : > { %19061 = vst [vmem:[#allocation127_spill] sm:$0xff] %v16860_v43  ;;  %19062 = vst [vmem:[#allocation91_spill] sm:$0xff] %v16866_v26  ;;  %v19073_v27 = vld [vmem:[#allocation138_spill] sm:$0xff]  ;;  %v19075_v42 = vld [vmem:[#allocation63_spill] sm:$0xff] }
 0x563   : > { %19063 = vst [vmem:[#allocation36_spill] sm:$0xff] %v16870_v8  ;;  %19065 = vst [vmem:[#allocation22_spill] sm:$0xff] %v16880_v31  ;;  %v19074_v46 = vpack.c.bf16 %v19072_v12, %v19073_v27  ;;  %v19076_v28 = vld [vmem:[#allocation34_spill] sm:$0xff]  ;;  %v12775_v5 = vld [vmem:[%s17490_s5 + $0x18] sm:$0xff]  }
 0x564   : > { %19066 = vst [vmem:[#allocation53_spill] sm:$0xff] %v16884_v32  ;;  %v7233_v21 = vmul.f32 %v19076_v28, %v19075_v42  ;;  %v19077_v58 = vld [vmem:[#allocation17_spill] sm:$0xff]  ;;  %v19080_v32 = vld [vmem:[#allocation152_spill] sm:$0xff]  ;;  %v19083_v11 = vld [vmem:[#allocation110_spill] sm:$0xff] }
 0x565   : > { %v19078_v41 = vld [vmem:[#allocation137_spill] sm:$0xff]  ;;  %v19112_v55 = vld [vmem:[#allocation92_spill] sm:$0xff]  ;;  %v19114_v19 = vld [vmem:[#allocation94_spill] sm:$0xff] }
 0x566   : > { %v7263_v15 = vpack.c.bf16 %v19077_v58, %v7233_v21  ;;  %v19079_v44 = vpack.c.bf16 %v19040_v45, %v19078_v41  ;;  %v19082_v27 = vld [vmem:[#allocation117_spill] sm:$0xff]  ;;  %v19087_v21 = vld [vmem:[#allocation154_spill] sm:$0xff] }
 0x567   : > { %11700 = vmatmul.mubr.msk.bf16.gmra.mrb[52].mxu0 %vm4519_vm2, %v19067_v54  ;;  %v19084_v8 = vld [vmem:[#allocation113_spill] sm:$0xff] }
 0x568   : > { %11703 = vmatprep.mubr.msk.bf16.mxu0 %vm4519_vm2, %v19068_v13  ;;  %v19085_v26 = vpack.c.bf16 %v19083_v11, %v19084_v8  ;;  %v19086_v41 = vld [vmem:[#allocation125_spill] sm:$0xff] }
 0x569   : > { %v12779_v7 = vld [vmem:[%s17490_s5 + $0x38] sm:$0xff]  }
 0x56f   : > { %11704 = vmatmul.mubr.msk.bf16.gmra.mrb[56].mxu0 %vm4519_vm2, %v19069_v14 }
 0x570   : > { %11707 = vmatprep.mubr.msk.bf16.mxu0 %vm4519_vm2, %v19070_v3 }
 0x577   : > { %11708 = vmatmul.mubr.msk.bf16.gmra.mrb[60].mxu0 %vm4519_vm2, %v19071_v57 }
 0x578   : > { %11713 = vmatprep.mubr.msk.bf16.mxu0 %vm4519_vm2, %v19074_v46  ;;  %v19081_v46 = vld [vmem:[#allocation109_spill] sm:$0xff] }
 0x579   : > { %v7237_v12 = vmul.f32 %v19081_v46, %v19012_v59 }
 0x57b   : > { %v7265_v31 = vpack.c.bf16 %v19082_v27, %v7237_v12  ;;  %v19090_v12 = vld [vmem:[#allocation101_spill] sm:$0xff] }
 0x57c   : > { %v19091_v61 = vpack.c.bf16 %v18951_v24, %v19090_v12 }
 0x57f   : > { %11714 = vmatmul.mubr.msk.bf16.vlgmr.msra.gmra.mrb[32].mxu0 %vm4519_vm2, %v19079_v44  ;;  %v7239_v44 = vmul.f32 %v19086_v41, %v18617_v30  ;;  %v19094_v30 = vld [vmem:[#allocation69_spill] sm:$0xff] }
 0x580   : > { %11746 = vmatpush3.bf16.msra.mxu0 %v19080_v32  ;;  %11717 = vmatprep.mubr.msk.bf16.mxu0 %vm4519_vm2, %v7263_v15  ;;  %v19088_v15 = vld [vmem:[#allocation96_spill] sm:$0xff] }
 0x581   : > { %11779 = vmatprep.subr.bf16.mxu0 %v12775_v5  ;;  %v7266_v32 = vpack.c.bf16 %v19087_v21, %v7239_v44  ;;  %v19089_v43 = vpack.c.bf16 %v15966_v47, %v19088_v15  ;;  %v19096_v44 = vld [vmem:[#allocation32_spill] sm:$0xff] }
 0x587   : > { %11718 = vmatmul.mubr.msk.bf16.gmra.mrb[36].mxu0 %vm4519_vm2, %v19085_v26  ;;  %v19092_v26 = vld [vmem:[#allocation106_spill] sm:$0xff] }
 0x588   : > { %11721 = vmatprep.mubr.msk.bf16.mxu0 %vm4519_vm2, %v7265_v31  ;;  %v19093_v8 = vpack.c.bf16 %v18961_v63, %v19092_v26  ;;  %v19095_v31 = vpack.c.bf16 %v18962_v18, %v19094_v30  ;;  %v19102_v26 = vld [vmem:[#allocation126_spill] sm:$0xff]  ;;  %v19104_v30 = vld [vmem:[#allocation132_spill] sm:$0xff] }
 0x58f   : > { %11722 = vmatmul.mubr.msk.bf16.gmra.mrb[40].mxu0 %vm4519_vm2, %v7266_v32  ;;  %v19097_v32 = vpack.c.bf16 %v18968_v50, %v19096_v44  ;;  %v19106_v44 = vld [vmem:[#allocation139_spill] sm:$0xff] }
 0x590   : > { %11725 = vmatprep.mubr.msk.bf16.mxu0 %vm4519_vm2, %v19089_v43  ;;  %v19098_v43 = vld [vmem:[#allocation116_spill] sm:$0xff] }
 0x591   : > { %v19099_v15 = vpack.c.bf16 %v18969_v40, %v19098_v43  ;;  %v19108_v43 = vld [vmem:[#allocation141_spill] sm:$0xff] }
 0x597   : > { %11726 = vmatmul.mubr.msk.bf16.gmra.mrb[44].mxu0 %vm4519_vm2, %v19091_v61  ;;  %v19100_v61 = vld [vmem:[#allocation120_spill] sm:$0xff] }
 0x598   : > { %11729 = vmatprep.mubr.msk.bf16.mxu0 %vm4519_vm2, %v19093_v8  ;;  %v19101_v12 = vpack.c.bf16 %v19037_v25, %v19100_v61  ;;  %v19103_v8 = vpack.c.bf16 %v19038_v38, %v19102_v26 }
 0x59f   : > { %11730 = vmatmul.mubr.msk.bf16.gmra.mrb[48].mxu0 %vm4519_vm2, %v19095_v31  ;;  %v19105_v31 = vpack.c.bf16 %v19039_v35, %v19104_v30 }
 0x5a0   : > { %11733 = vmatprep.mubr.msk.bf16.mxu0 %vm4519_vm2, %v19097_v32  ;;  %v19107_v32 = vpack.c.bf16 %v19041_v37, %v19106_v44  ;;  %v19115_v44 = vld [vmem:[#allocation84_spill] sm:$0xff] }
 0x5a7   : > { %11734 = vmatmul.mubr.msk.bf16.gmra.mrb[52].mxu0 %vm4519_vm2, %v19099_v15  ;;  %v19109_v15 = vld [vmem:[#allocation140_spill] sm:$0xff] }
 0x5a8   : > { %11737 = vmatprep.mubr.msk.bf16.mxu0 %vm4519_vm2, %v19101_v12  ;;  %v19110_v61 = vpack.c.bf16 %v19108_v43, %v19109_v15  ;;  %v19111_v12 = vld [vmem:[#allocation10_spill] sm:$0xff]  ;;  %v19117_v43 = vld [vmem:[#allocation61_spill] sm:$0xff] }
 0x5a9   : > { %v7827_v26 = vmul.f32 %v19112_v55, %v19111_v12 }
 0x5ab   : > { %v7857_v30 = vpack.c.bf16 %v7827_v26, %v19114_v19  ;;  %v19121_v26 = vld [vmem:[#allocation112_spill] sm:$0xff] }
 0x5ac   : > { %v19122_v23 = vpack.c.bf16 %v19121_v26, %v19001_v22 }
 0x5af   : > { %11738 = vmatmul.mubr.msk.bf16.gmra.mrb[56].mxu0 %vm4519_vm2, %v19103_v8  ;;  %v19113_v8 = vld [vmem:[#allocation98_spill] sm:$0xff] }
 0x5b0   : > { %11741 = vmatprep.mubr.msk.bf16.mxu0 %vm4519_vm2, %v19105_v31  ;;  %v7829_v39 = vmul.f32 %v19113_v8, %v19043_v20  ;;  %v12776_v31 = vld [vmem:[%s17490_s5 + $0x20] sm:$0xff]   ;;  %v19119_v20 = vld [vmem:[#allocation31_spill] sm:$0xff] }
 0x5b2   : > { %v7858_v49 = vpack.c.bf16 %v7829_v39, %v19115_v44  ;;  %v19123_v39 = vld [vmem:[#allocation122_spill] sm:$0xff] }
 0x5b7   : > { %11742 = vmatmul.mubr.msk.bf16.gmra.mrb[60].mxu0 %vm4519_vm2, %v19107_v32  ;;  %v19116_v32 = vld [vmem:[#allocation104_spill] sm:$0xff] }
 0x5b8   : > { %11747 = vmatprep.mubr.msk.bf16.mxu0 %vm4519_vm2, %v19110_v61  ;;  %v19118_v15 = vpack.c.bf16 %v19116_v32, %v19117_v43  ;;  %v19120_v61 = vpack.c.bf16 %v19119_v20, %v18998_v62  ;;  %v19127_v32 = vld [vmem:[#allocation142_spill] sm:$0xff]  ;;  %v19129_v20 = vld [vmem:[#allocation143_spill] sm:$0xff] }
 0x5bf   : > { %11748 = vmatmul.mubr.msk.bf16.vlgmr.msra.gmra.mrb[32].mxu0 %vm4519_vm2, %v7857_v30 }
 0x5c0   : > { %11780 = vmatpush3.bf16.msra.mxu0 %v12775_v5  ;;  %11751 = vmatprep.mubr.msk.bf16.mxu0 %vm4519_vm2, %v7858_v49  ;;  %v19124_v5 = vpack.c.bf16 %v19123_v39, %v19002_v51  ;;  %v19125_v49 = vld [vmem:[#allocation133_spill] sm:$0xff] }
 0x5c1   : > { %11813 = vmatprep.subr.bf16.mxu0 %v12776_v31  ;;  %v19126_v30 = vpack.c.bf16 %v19125_v49, %v19003_v33  ;;  %v19133_v39 = vld [vmem:[#allocation145_spill] sm:$0xff]  ;;  %v19135_v49 = vld [vmem:[#allocation147_spill] sm:$0xff] }
 0x5c7   : > { %11752 = vmatmul.mubr.msk.bf16.gmra.mrb[36].mxu0 %vm4519_vm2, %v19118_v15  ;;  %v19128_v15 = vpack.c.bf16 %v19127_v32, %v16439_v17  ;;  %v19137_v32 = vld [vmem:[#allocation149_spill] sm:$0xff] }
 0x5c8   : > { %11755 = vmatprep.mubr.msk.bf16.mxu0 %vm4519_vm2, %v19120_v61  ;;  %v19130_v61 = vpack.c.bf16 %v19129_v20, %v16462_v29  ;;  %v19139_v20 = vld [vmem:[#allocation74_spill] sm:$0xff] }
 0x5cf   : > { %11756 = vmatmul.mubr.msk.bf16.gmra.mrb[40].mxu0 %vm4519_vm2, %v19122_v23  ;;  %v19131_v23 = vld [vmem:[#allocation144_spill] sm:$0xff] }
 0x5d0   : > { %11759 = vmatprep.mubr.msk.bf16.mxu0 %vm4519_vm2, %v19124_v5  ;;  %v19132_v26 = vpack.c.bf16 %v19131_v23, %v16474_v60  ;;  %v19134_v5 = vpack.c.bf16 %v19133_v39, %v16490_v4  ;;  %v19141_v23 = vld [vmem:[#allocation24_spill] sm:$0xff]  ;;  %v19143_v39 = vld [vmem:[#allocation2_spill] sm:$0xff] }
 0x5d7   : > { %11760 = vmatmul.mubr.msk.bf16.gmra.mrb[44].mxu0 %vm4519_vm2, %v19126_v30  ;;  %v19136_v30 = vpack.c.bf16 %v19135_v49, %v16506_v0  ;;  %v19145_v49 = vld [vmem:[#allocation8_spill] sm:$0xff] }
 0x5d8   : > { %11763 = vmatprep.mubr.msk.bf16.mxu0 %vm4519_vm2, %v19128_v15  ;;  %v19138_v15 = vpack.c.bf16 %v19137_v32, %v16520_v34 }
 0x5df   : > { %11764 = vmatmul.mubr.msk.bf16.gmra.mrb[48].mxu0 %vm4519_vm2, %v19130_v61  ;;  %v19140_v61 = vpack.c.bf16 %v19139_v20, %v16532_v1  ;;  %v19146_v20 = vld [vmem:[#allocation77_spill] sm:$0xff] }
 0x5e0   : > { %11767 = vmatprep.mubr.msk.bf16.mxu0 %vm4519_vm2, %v19132_v26  ;;  %v19142_v26 = vpack.c.bf16 %v19141_v23, %v16542_v48 }
 0x5e7   : > { %11768 = vmatmul.mubr.msk.bf16.gmra.mrb[52].mxu0 %vm4519_vm2, %v19134_v5  ;;  %v19144_v5 = vpack.c.bf16 %v19040_v45, %v19143_v39  ;;  %v19148_v45 = vld [vmem:[#allocation65_spill] sm:$0xff] }
 0x5e8   : > { %11771 = vmatprep.mubr.msk.bf16.mxu0 %vm4519_vm2, %v19136_v30  ;;  %v8124_v30 = vmul.f32 %v19076_v28, %v19145_v49  ;;  %v8128_v23 = vmul.f32 %v19081_v46, %v19148_v45 }
 0x5ea   : > { %v8155_v32 = vpack.c.bf16 %v19077_v58, %v8124_v30  ;;  %v8157_v39 = vpack.c.bf16 %v19082_v27, %v8128_v23  ;;  %v19151_v30 = vld [vmem:[#allocation81_spill] sm:$0xff] }
 0x5ef   : > { %11772 = vmatmul.mubr.msk.bf16.gmra.mrb[56].mxu0 %vm4519_vm2, %v19138_v15  ;;  %v12777_v15 = vld [vmem:[%s17490_s5 + $0x28] sm:$0xff]  }
 0x5f0   : > { %11775 = vmatprep.mubr.msk.bf16.mxu0 %vm4519_vm2, %v19140_v61  ;;  %v19147_v61 = vpack.c.bf16 %v19083_v11, %v19146_v20 }
 0x5f7   : > { %11776 = vmatmul.mubr.msk.bf16.gmra.mrb[60].mxu0 %vm4519_vm2, %v19142_v26  ;;  %v8130_v26 = vmul.f32 %v19086_v41, %v19012_v59  ;;  %v19153_v59 = vld [vmem:[#allocation87_spill] sm:$0xff] }
 0x5f8   : > { %11781 = vmatprep.mubr.msk.bf16.mxu0 %vm4519_vm2, %v19144_v5  ;;  %v19154_v20 = vpack.c.bf16 %v18961_v63, %v19153_v59 }
 0x5f9   : > { %v8158_v5 = vpack.c.bf16 %v19087_v21, %v8130_v26  ;;  %v19157_v26 = vld [vmem:[#allocation59_spill] sm:$0xff] }
 0x5ff   : > { %11782 = vmatmul.mubr.msk.bf16.vlgmr.msra.gmra.mrb[32].mxu0 %vm4519_vm2, %v8155_v32  ;;  %v19152_v32 = vpack.c.bf16 %v18951_v24, %v19151_v30 }
 0x600   : > { %11814 = vmatpush3.bf16.msra.mxu0 %v12776_v31  ;;  %11785 = vmatprep.mubr.msk.bf16.mxu0 %vm4519_vm2, %v19147_v61  ;;  %v19149_v31 = vld [vmem:[#allocation79_spill] sm:$0xff]  ;;  %v19155_v61 = vld [vmem:[#allocation56_spill] sm:$0xff] }
 0x601   : > { %11847 = vmatprep.subr.bf16.mxu0 %v12777_v15  ;;  %v19150_v49 = vpack.c.bf16 %v15966_v47, %v19149_v31  ;;  %v19156_v23 = vpack.c.bf16 %v18962_v18, %v19155_v61 }
 0x607   : > { %11786 = vmatmul.mubr.msk.bf16.gmra.mrb[36].mxu0 %vm4519_vm2, %v8157_v39  ;;  %v19158_v39 = vpack.c.bf16 %v18968_v50, %v19157_v26 }
 0x608   : > { %11789 = vmatprep.mubr.msk.bf16.mxu0 %vm4519_vm2, %v8158_v5  ;;  %v19159_v5 = vld [vmem:[#allocation62_spill] sm:$0xff] }
 0x609   : > { %v19160_v31 = vpack.c.bf16 %v18969_v40, %v19159_v5 }
 0x60f   : > { %11790 = vmatmul.mubr.msk.bf16.gmra.mrb[40].mxu0 %vm4519_vm2, %v19150_v49  ;;  %v19161_v49 = vld [vmem:[#allocation64_spill] sm:$0xff] }
 0x610   : > { %11793 = vmatprep.mubr.msk.bf16.mxu0 %vm4519_vm2, %v19152_v32  ;;  %v19162_v30 = vpack.c.bf16 %v19037_v25, %v19161_v49  ;;  %v19163_v32 = vld [vmem:[#allocation67_spill] sm:$0xff]  ;;  %v12778_v49 = vld [vmem:[%s17490_s5 + $0x30] sm:$0xff]  }
 0x611   : > { %v19164_v59 = vpack.c.bf16 %v19038_v38, %v19163_v32  ;;  %v19173_v32 = vld [vmem:[#allocation108_spill] sm:$0xff] }
 0x617   : > { %11794 = vmatmul.mubr.msk.bf16.gmra.mrb[44].mxu0 %vm4519_vm2, %v19154_v20  ;;  %v19165_v20 = vld [vmem:[#allocation71_spill] sm:$0xff] }
 0x618   : > { %11797 = vmatprep.mubr.msk.bf16.mxu0 %vm4519_vm2, %v19156_v23  ;;  %v19166_v61 = vpack.c.bf16 %v19039_v35, %v19165_v20  ;;  %v19167_v23 = vld [vmem:[#allocation76_spill] sm:$0xff]  ;;  %v19175_v20 = vld [vmem:[#allocation95_spill] sm:$0xff] }
 0x619   : > { %v19168_v26 = vpack.c.bf16 %v19041_v37, %v19167_v23 }
 0x61f   : > { %11798 = vmatmul.mubr.msk.bf16.gmra.mrb[48].mxu0 %vm4519_vm2, %v19158_v39  ;;  %v19169_v39 = vld [vmem:[#allocation82_spill] sm:$0xff] }
 0x620   : > { %11801 = vmatprep.mubr.msk.bf16.mxu0 %vm4519_vm2, %v19160_v31  ;;  %v19170_v5 = vpack.c.bf16 %v19042_v2, %v19169_v39  ;;  %v19171_v31 = vld [vmem:[#allocation83_spill] sm:$0xff]  ;;  %v19178_v39 = vld [vmem:[#allocation42_spill] sm:$0xff] }
 0x627   : > { %11802 = vmatmul.mubr.msk.bf16.gmra.mrb[52].mxu0 %vm4519_vm2, %v19162_v30  ;;  %v19172_v30 = vld [vmem:[#allocation90_spill] sm:$0xff] }
 0x628   : > { %11805 = vmatprep.mubr.msk.bf16.mxu0 %vm4519_vm2, %v19164_v59  ;;  %v19174_v59 = vld [vmem:[#allocation14_spill] sm:$0xff] }
 0x62f   : > { %11806 = vmatmul.mubr.msk.bf16.gmra.mrb[56].mxu0 %vm4519_vm2, %v19166_v61  ;;  %v19176_v61 = vld [vmem:[#allocation118_spill] sm:$0xff] }
 0x630   : > { %11809 = vmatprep.mubr.msk.bf16.mxu0 %vm4519_vm2, %v19168_v26 }
 0x637   : > { %11810 = vmatmul.mubr.msk.bf16.gmra.mrb[60].mxu0 %vm4519_vm2, %v19170_v5  ;;  %v8721_v5 = vmul.f32 %v19113_v8, %v19111_v12  ;;  %v19183_v12 = vld [vmem:[#allocation78_spill] sm:$0xff] }
 0x638   : > { %11815 = vmatprep.mubr.msk.bf16.mxu0 %vm4519_vm2, %v19171_v31 }
 0x639   : > { %v8751_v31 = vpack.c.bf16 %v8721_v5, %v19115_v44  ;;  %v19184_v5 = vpack.c.bf16 %v19183_v12, %v19001_v22  ;;  %v19185_v44 = vld [vmem:[#allocation114_spill] sm:$0xff] }
 0x63f   : > { %11816 = vmatmul.mubr.msk.bf16.vlgmr.msra.gmra.mrb[32].mxu0 %vm4519_vm2, %v19172_v30 }
 0x640   : > { %11848 = vmatpush3.bf16.msra.mxu0 %v12777_v15  ;;  %11819 = vmatprep.mubr.msk.bf16.mxu0 %vm4519_vm2, %v19173_v32  ;;  %v19177_v15 = vld [vmem:[#allocation16_spill] sm:$0xff] }
 0x641   : > { %11881 = vmatprep.subr.bf16.mxu0 %v12778_v49  ;;  %v8719_v23 = vmul.f32 %v19112_v55, %v19177_v15  ;;  %v19179_v55 = vld [vmem:[#allocation103_spill] sm:$0xff] }
 0x643   : > { %v8750_v26 = vpack.c.bf16 %v8719_v23, %v19114_v19  ;;  %v19180_v23 = vpack.c.bf16 %v19179_v55, %v19117_v43  ;;  %v19181_v19 = vld [vmem:[#allocation18_spill] sm:$0xff] }
 0x647   : > { %11820 = vmatmul.mubr.msk.bf16.gmra.mrb[36].mxu0 %vm4519_vm2, %v19174_v59 }
 0x648   : > { %11823 = vmatprep.mubr.msk.bf16.mxu0 %vm4519_vm2, %v19175_v20 }
 0x64f   : > { %11824 = vmatmul.mubr.msk.bf16.gmra.mrb[40].mxu0 %vm4519_vm2, %v19176_v61 }
 0x650   : > { %11827 = vmatprep.mubr.msk.bf16.mxu0 %vm4519_vm2, %v19014_v53 }
 0x657   : > { %11828 = vmatmul.mubr.msk.bf16.gmra.mrb[44].mxu0 %vm4519_vm2, %v19021_v16 }
 0x658   : > { %11831 = vmatprep.mubr.msk.bf16.mxu0 %vm4519_vm2, %v19052_v52 }
 0x65f   : > { %11832 = vmatmul.mubr.msk.bf16.gmra.mrb[48].mxu0 %vm4519_vm2, %v19059_v6 }
 0x660   : > { %11835 = vmatprep.mubr.msk.bf16.mxu0 %vm4519_vm2, %v19067_v54 }
 0x667   : > { %11836 = vmatmul.mubr.msk.bf16.gmra.mrb[52].mxu0 %vm4519_vm2, %v19068_v13 }
 0x668   : > { %11839 = vmatprep.mubr.msk.bf16.mxu0 %vm4519_vm2, %v19069_v14 }
 0x66f   : > { %11840 = vmatmul.mubr.msk.bf16.gmra.mrb[56].mxu0 %vm4519_vm2, %v19070_v3 }
 0x670   : > { %11843 = vmatprep.mubr.msk.bf16.mxu0 %vm4519_vm2, %v19071_v57 }
 0x677   : > { %11844 = vmatmul.mubr.msk.bf16.gmra.mrb[60].mxu0 %vm4519_vm2, %v19178_v39 }
 0x678   : > { %11849 = vmatprep.mubr.msk.bf16.mxu0 %vm4519_vm2, %v8750_v26  ;;  %v19182_v26 = vpack.c.bf16 %v19181_v19, %v18998_v62 }
 0x67f   : > { %11850 = vmatmul.mubr.msk.bf16.vlgmr.msra.gmra.mrb[32].mxu0 %vm4519_vm2, %v8751_v31  ;;  %v19186_v31 = vpack.c.bf16 %v19185_v44, %v19002_v51 }
 0x680   : > { %11882 = vmatpush3.bf16.msra.mxu0 %v12778_v49  ;;  %11853 = vmatprep.mubr.msk.bf16.mxu0 %vm4519_vm2, %v19180_v23  ;;  %v19187_v49 = vld [vmem:[#allocation102_spill] sm:$0xff]  ;;  %v19189_v23 = vld [vmem:[#allocation73_spill] sm:$0xff] }
 0x681   : > { %11915 = vmatprep.subr.bf16.mxu0 %v12779_v7  ;;  %v19188_v55 = vpack.c.bf16 %v19187_v49, %v19003_v33  ;;  %v19190_v19 = vpack.c.bf16 %v19189_v23, %v16439_v17 }
 0x687   : > { %11854 = vmatmul.mubr.msk.bf16.gmra.mrb[36].mxu0 %vm4519_vm2, %v19182_v26  ;;  %v19191_v26 = vld [vmem:[#allocation68_spill] sm:$0xff] }
 0x688   : > { %11857 = vmatprep.mubr.msk.bf16.mxu0 %vm4519_vm2, %v19184_v5  ;;  %v19192_v12 = vpack.c.bf16 %v19191_v26, %v16462_v29  ;;  %v19193_v5 = vld [vmem:[#allocation13_spill] sm:$0xff] }
 0x689   : > { %v19194_v44 = vpack.c.bf16 %v19193_v5, %v16474_v60 }
 0x68f   : > { %11858 = vmatmul.mubr.msk.bf16.gmra.mrb[40].mxu0 %vm4519_vm2, %v19186_v31  ;;  %v19195_v31 = vld [vmem:[#allocation148_spill] sm:$0xff] }
 0x690   : > { %11861 = vmatprep.mubr.msk.bf16.mxu0 %vm4519_vm2, %v19188_v55  ;;  %v19196_v49 = vpack.c.bf16 %v19195_v31, %v16490_v4  ;;  %v19197_v55 = vld [vmem:[#allocation131_spill] sm:$0xff] }
 0x691   : > { %v19198_v23 = vpack.c.bf16 %v19197_v55, %v16506_v0  ;;  %v19206_v0 = vld [vmem:[#allocation45_spill] sm:$0xff] }
 0x697   : > { %11862 = vmatmul.mubr.msk.bf16.gmra.mrb[44].mxu0 %vm4519_vm2, %v19190_v19  ;;  %v19199_v19 = vld [vmem:[#allocation135_spill] sm:$0xff] }
 0x698   : > { %11865 = vmatprep.mubr.msk.bf16.mxu0 %vm4519_vm2, %v19192_v12  ;;  %v19200_v26 = vpack.c.bf16 %v19199_v19, %v16520_v34  ;;  %v19201_v12 = vld [vmem:[#allocation111_spill] sm:$0xff]  ;;  %v19207_v19 = vpack.c.bf16 %v19206_v0, %v16418_v10  ;;  %v9022_v0 = vmul.f32 %v19086_v41, %v19148_v45  ;;  %v19216_v41 = vld [vmem:[#allocation70_spill] sm:$0xff]  ;;  %v19218_v45 = vld [vmem:[#allocation156_spill] sm:$0xff] }
 0x699   : > { %v19202_v5 = vpack.c.bf16 %v19201_v12, %v16532_v1  ;;  %v12780_v12 = vld [vmem:[%s17490_s5 + $0x40] sm:$0xff]  }
 0x69f   : > { %11866 = vmatmul.mubr.msk.bf16.gmra.mrb[48].mxu0 %vm4519_vm2, %v19194_v44  ;;  %v19203_v44 = vld [vmem:[#allocation107_spill] sm:$0xff] }
 0x6a0   : > { %11869 = vmatprep.mubr.msk.bf16.mxu0 %vm4519_vm2, %v19196_v49  ;;  %v19204_v31 = vpack.c.bf16 %v19203_v44, %v16542_v48  ;;  %v19205_v49 = vld [vmem:[#allocation80_spill] sm:$0xff] }
 0x6a1   : > { %v9016_v55 = vmul.f32 %v19076_v28, %v19205_v49  ;;  %v19208_v28 = vld [vmem:[#allocation99_spill] sm:$0xff]  ;;  %v19220_v49 = vld [vmem:[#allocation157_spill] sm:$0xff] }
 0x6a2   : > { %v19209_v44 = vpack.c.bf16 %v19083_v11, %v19208_v28  ;;  %v19212_v11 = vld [vmem:[#allocation121_spill] sm:$0xff] }
 0x6a7   : > { %11870 = vmatmul.mubr.msk.bf16.gmra.mrb[52].mxu0 %vm4519_vm2, %v19198_v23  ;;  %v9048_v23 = vpack.c.bf16 %v19077_v58, %v9016_v55  ;;  %v9051_v58 = vpack.c.bf16 %v19087_v21, %v9022_v0  ;;  %v19217_v21 = vpack.c.bf16 %v18962_v18, %v19216_v41  ;;  %v19222_v55 = vld [vmem:[#allocation19_spill] sm:$0xff]  ;;  %v19266_v0 = vld [vmem:[#allocation92_spill] sm:$0xff] }
 0x6a8   : > { %11873 = vmatprep.mubr.msk.bf16.mxu0 %vm4519_vm2, %v19200_v26  ;;  %v9020_v26 = vmul.f32 %v19081_v46, %v19075_v42  ;;  %v19210_v42 = vld [vmem:[#allocation150_spill] sm:$0xff] }
 0x6a9   : > { %v19211_v46 = vpack.c.bf16 %v15966_v47, %v19210_v42  ;;  %v19219_v47 = vpack.c.bf16 %v18968_v50, %v19218_v45  ;;  %v19268_v45 = vld [vmem:[#allocation37_spill] sm:$0xff] }
 0x6af   : > { %11874 = vmatmul.mubr.msk.bf16.gmra.mrb[56].mxu0 %vm4519_vm2, %v19202_v5  ;;  %v9050_v5 = vpack.c.bf16 %v19082_v27, %v9020_v26  ;;  %v19213_v27 = vpack.c.bf16 %v18951_v24, %v19212_v11  ;;  %v19221_v24 = vpack.c.bf16 %v18969_v40, %v19220_v49  ;;  %v19228_v26 = vld [vmem:[#allocation124_spill] sm:$0xff] }
 0x6b0   : > { %11877 = vmatprep.mubr.msk.bf16.mxu0 %vm4519_vm2, %v19204_v31  ;;  %v19229_v40 = vpack.c.bf16 %v19041_v37, %v19228_v26 }
 0x6b7   : > { %11878 = vmatmul.mubr.msk.bf16.gmra.mrb[60].mxu0 %vm4519_vm2, %v19207_v19  ;;  %v19226_v19 = vld [vmem:[#allocation25_spill] sm:$0xff] }
 0x6b8   : > { %11883 = vmatprep.mubr.msk.bf16.mxu0 %vm4519_vm2, %v9048_v23  ;;  %v19224_v23 = vld [vmem:[#allocation39_spill] sm:$0xff]  ;;  %v19227_v50 = vpack.c.bf16 %v19039_v35, %v19226_v19 }
 0x6b9   : > { %v19225_v18 = vpack.c.bf16 %v19038_v38, %v19224_v23  ;;  %v19231_v38 = vpack.c.bf16 %v16804_v36, %v16795_v9  ;;  %v9613_v36 = vmul.f32 %v19113_v8, %v19177_v15  ;;  %v19236_v9 = vld [vmem:[#allocation3_spill] sm:$0xff]  ;;  %v19257_v15 = vld [vmem:[#allocation36_spill] sm:$0xff] }
 0x6ba   : > { %v19237_v37 = vpack.c.bf16 %v19236_v9, %v19117_v43  ;;  %v19246_v43 = vld [vmem:[#allocation47_spill] sm:$0xff]  ;;  %v19272_v9 = vld [vmem:[#allocation12_spill] sm:$0xff] }
 0x6bf   : > { %11884 = vmatmul.mubr.msk.bf16.vlgmr.msra.gmra.mrb[32].mxu0 %vm4519_vm2, %v19209_v44  ;;  %v19265_v44 = vld [vmem:[#allocation94_spill] sm:$0xff] }
 0x6c0   : > { %11916 = vmatpush3.bf16.msra.mxu0 %v12779_v7  ;;  %11887 = vmatprep.mubr.msk.bf16.mxu0 %vm4519_vm2, %v9050_v5  ;;  %v19214_v7 = vld [vmem:[#allocation130_spill] sm:$0xff]  ;;  %v19263_v5 = vld [vmem:[#allocation53_spill] sm:$0xff] }
 0x6c1   : > { %11949 = vmatprep.subr.bf16.mxu0 %v12780_v12  ;;  %v19215_v31 = vpack.c.bf16 %v18961_v63, %v19214_v7  ;;  %v19223_v63 = vpack.c.bf16 %v19037_v25, %v19222_v55  ;;  %v19230_v25 = vpack.c.bf16 %v19042_v2, %v16792_v56  ;;  %v19234_v56 = vld [vmem:[#allocation100_spill] sm:$0xff]  ;;  %v19264_v28 = vpack.c.bf16 %v19263_v5, %v16418_v10  ;;  %v19267_v7 = vld [vmem:[#allocation41_spill] sm:$0xff]  ;;  %v19269_v55 = vld [vmem:[#allocation15_spill] sm:$0xff] }
 0x6c2   : > { %v19238_v2 = vld [vmem:[#allocation28_spill] sm:$0xff]  ;;  %v19278_v5 = vld [vmem:[#allocation11_spill] sm:$0xff] }
 0x6c7   : > { %11888 = vmatmul.mubr.msk.bf16.gmra.mrb[36].mxu0 %vm4519_vm2, %v9051_v58  ;;  %v9643_v58 = vmul.f32 0.0, %v19266_v0 }
 0x6c8   : > { %11891 = vmatprep.mubr.msk.bf16.mxu0 %vm4519_vm2, %v19211_v46 }
 0x6cf   : > { %11892 = vmatmul.mubr.msk.bf16.gmra.mrb[40].mxu0 %vm4519_vm2, %v19213_v27 }
 0x6d0   : > { %11895 = vmatprep.mubr.msk.bf16.mxu0 %vm4519_vm2, %v19215_v31 }
 0x6d7   : > { %11896 = vmatmul.mubr.msk.bf16.gmra.mrb[44].mxu0 %vm4519_vm2, %v19217_v21 }
 0x6d8   : > { %11899 = vmatprep.mubr.msk.bf16.mxu0 %vm4519_vm2, %v19219_v47 }
 0x6df   : > { %11900 = vmatmul.mubr.msk.bf16.gmra.mrb[48].mxu0 %vm4519_vm2, %v19221_v24 }
 0x6e0   : > { %11903 = vmatprep.mubr.msk.bf16.mxu0 %vm4519_vm2, %v19223_v63 }
 0x6e7   : > { %11904 = vmatmul.mubr.msk.bf16.gmra.mrb[52].mxu0 %vm4519_vm2, %v19225_v18  ;;  %v19270_v18 = vld [vmem:[#allocation35_spill] sm:$0xff] }
 0x6e8   : > { %11907 = vmatprep.mubr.msk.bf16.mxu0 %vm4519_vm2, %v19227_v50 }
 0x6ef   : > { %11908 = vmatmul.mubr.msk.bf16.gmra.mrb[56].mxu0 %vm4519_vm2, %v19229_v40 }
 0x6f0   : > { %11911 = vmatprep.mubr.msk.bf16.mxu0 %vm4519_vm2, %v19230_v25 }
 0x6f7   : > { %11912 = vmatmul.mubr.msk.bf16.gmra.mrb[60].mxu0 %vm4519_vm2, %v19231_v38 }
 0x6f8   : > { %11917 = vmatprep.mubr.msk.bf16.mxu0 %vm4519_vm2, %v19172_v30  ;;  %v19248_v30 = vld [vmem:[#allocation119_spill] sm:$0xff] }
 0x6ff   : > { %11918 = vmatmul.mubr.msk.bf16.vlgmr.msra.gmra.mrb[32].mxu0 %vm4519_vm2, %v19173_v32  ;;  %v19250_v32 = vld [vmem:[#allocation129_spill] sm:$0xff] }
 0x700   : > { %11950 = vmatpush3.bf16.msra.mxu0 %v12780_v12  ;;  %11921 = vmatprep.mubr.msk.bf16.mxu0 %vm4519_vm2, %v19174_v59  ;;  %v19252_v59 = vld [vmem:[#allocation127_spill] sm:$0xff]  ;;  %v19261_v12 = vld [vmem:[#allocation22_spill] sm:$0xff] }
 0x707   : > { %11922 = vmatmul.mubr.msk.bf16.gmra.mrb[36].mxu0 %vm4519_vm2, %v19175_v20  ;;  %v19254_v20 = vld [vmem:[#allocation91_spill] sm:$0xff] }
 0x708   : > { %11925 = vmatprep.mubr.msk.bf16.mxu0 %vm4519_vm2, %v19176_v61  ;;  %v19255_v61 = vld [vmem:[#allocation146_spill] sm:$0xff] }
 0x70f   : > { %11926 = vmatmul.mubr.msk.bf16.gmra.mrb[40].mxu0 %vm4519_vm2, %v19014_v53  ;;  %v19233_v53 = vld [vmem:[#allocation86_spill] sm:$0xff] }
 0x710   : > { %11929 = vmatprep.mubr.msk.bf16.mxu0 %vm4519_vm2, %v19021_v16  ;;  %v19232_v16 = vld [vmem:[#allocation84_spill] sm:$0xff] }
 0x711   : > { %v9644_v35 = vpack.c.bf16 %v9613_v36, %v19232_v16 }
 0x717   : > { %11930 = vmatmul.mubr.msk.bf16.gmra.mrb[44].mxu0 %vm4519_vm2, %v19052_v52  ;;  %v19235_v52 = vpack.c.bf16 %v19233_v53, %v19234_v56 }
 0x718   : > { %11933 = vmatprep.mubr.msk.bf16.mxu0 %vm4519_vm2, %v19059_v6  ;;  %v19239_v6 = vpack.c.bf16 %v19238_v2, %v18998_v62  ;;  %v19247_v62 = vpack.c.bf16 %v19246_v43, %v16439_v17  ;;  %v19256_v17 = vpack.c.bf16 %v19254_v20, %v19255_v61 }
 0x71f   : > { %11934 = vmatmul.mubr.msk.bf16.gmra.mrb[48].mxu0 %vm4519_vm2, %v19067_v54  ;;  %v19240_v54 = vld [vmem:[#allocation128_spill] sm:$0xff] }
 0x720   : > { %11937 = vmatprep.mubr.msk.bf16.mxu0 %vm4519_vm2, %v19068_v13  ;;  %v19241_v13 = vpack.c.bf16 %v19240_v54, %v19001_v22  ;;  %v19249_v22 = vpack.c.bf16 %v19248_v30, %v16462_v29  ;;  %v19258_v29 = vpack.c.bf16 %v19257_v15, %v16520_v34  ;;  %v9642_v34 = vmul.f32 0.0, %v19265_v44  ;;  %v19273_v54 = vld [vmem:[#allocation43_spill] sm:$0xff] }
 0x722   : > { %v9659_v42 = vpack.c.bf16 %v9643_v58, %v9642_v34 }
 0x727   : > { %11938 = vmatmul.mubr.msk.bf16.gmra.mrb[52].mxu0 %vm4519_vm2, %v19069_v14  ;;  %v19242_v14 = vld [vmem:[#allocation29_spill] sm:$0xff] }
 0x728   : > { %11941 = vmatprep.mubr.msk.bf16.mxu0 %vm4519_vm2, %v19070_v3  ;;  %v19243_v3 = vpack.c.bf16 %v19242_v14, %v19002_v51  ;;  %v19251_v51 = vpack.c.bf16 %v19250_v32, %v16474_v60 }
 0x72f   : > { %11942 = vmatmul.mubr.msk.bf16.gmra.mrb[56].mxu0 %vm4519_vm2, %v19071_v57  ;;  %v19244_v57 = vld [vmem:[#allocation85_spill] sm:$0xff] }
 0x730   : > { %11945 = vmatprep.mubr.msk.bf16.mxu0 %vm4519_vm2, %v19178_v39  ;;  %v19245_v8 = vpack.c.bf16 %v19244_v57, %v19003_v33  ;;  %v19253_v33 = vpack.c.bf16 %v19252_v59, %v16490_v4  ;;  %v19259_v39 = vld [vmem:[#allocation134_spill] sm:$0xff]  ;;  %v19262_v4 = vpack.c.bf16 %v19261_v12, %v16542_v48 }
 0x731   : > { %v19260_v60 = vpack.c.bf16 %v19259_v39, %v16532_v1  ;;  %v17377_v1 = vld [vmem:[%s17491_s6] ss:$0 sm:$0xff] }
 0x732   : > { %v19275_v59 = vld [vmem:[#allocation46_spill] sm:$0xff] }
 0x737   : > { %11946 = vmatmul.mubr.msk.bf16.gmra.mrb[60].mxu0 %vm4519_vm2, %v19235_v52 }
 0x738   : > { %11951 = vmatprep.mubr.msk.bf16.mxu0 %vm4519_vm2, %v9644_v35  ;;  %v19271_v35 = vld [vmem:[#allocation30_spill] sm:$0xff] }
 0x73f   : > { %11952 = vmatmul.mubr.msk.bf16.vlgmr.msra.gmra.mrb[32].mxu0 %vm4519_vm2, %v19237_v37 }
 0x740   : > { %11955 = vmatprep.mubr.msk.bf16.mxu0 %vm4519_vm2, %v19239_v6 }
 0x747   : > { %11956 = vmatmul.mubr.msk.bf16.gmra.mrb[36].mxu0 %vm4519_vm2, %v19241_v13 }
 0x748   : > { %11959 = vmatprep.mubr.msk.bf16.mxu0 %vm4519_vm2, %v19243_v3  ;;  %v19274_v3 = vld [vmem:[#allocation21_spill] sm:$0xff] }
 0x74f   : > { %11960 = vmatmul.mubr.msk.bf16.gmra.mrb[40].mxu0 %vm4519_vm2, %v19245_v8 }
 0x750   : > { %11963 = vmatprep.mubr.msk.bf16.mxu0 %vm4519_vm2, %v19247_v62 }
 0x757   : > { %11964 = vmatmul.mubr.msk.bf16.gmra.mrb[44].mxu0 %vm4519_vm2, %v19249_v22 }
 0x758   : > { %11967 = vmatprep.mubr.msk.bf16.mxu0 %vm4519_vm2, %v19251_v51 }
 0x75f   : > { %11968 = vmatmul.mubr.msk.bf16.gmra.mrb[48].mxu0 %vm4519_vm2, %v19253_v33 }
 0x760   : > { %11971 = vmatprep.mubr.msk.bf16.mxu0 %vm4519_vm2, %v19256_v17  ;;  %v19276_v17 = vld [vmem:[#allocation20_spill] sm:$0xff] }
 0x767   : > { %11972 = vmatmul.mubr.msk.bf16.gmra.mrb[52].mxu0 %vm4519_vm2, %v19258_v29 }
 0x768   : > { %11975 = vmatprep.mubr.msk.bf16.mxu0 %vm4519_vm2, %v19260_v60  ;;  %v19277_v60 = vld [vmem:[#allocation5_spill] sm:$0xff] }
 0x76f   : > { %11976 = vmatmul.mubr.msk.bf16.gmra.mrb[56].mxu0 %vm4519_vm2, %v19262_v4 }
 0x770   : > { %11979 = vmatprep.mubr.msk.bf16.mxu0 %vm4519_vm2, %v19264_v28 }
 0x777   : > { %11980 = vmatmul.mubr.msk.bf16.gmra.mrb[60].mxu0 %vm4519_vm2, %v9659_v42 }
 0x812   : > { %v11953_v48 = vpop.f32.mrb[32].mxu0 }
 0x813   : > { %v9919_v46 = vadd.f32 %v11953_v48, %v17377_v1  ;;  %v9751_v11 = vpop.f32.mrb[33].mxu0 }
 0x814   : > { %v9917_v10 = vadd.f32 %v17377_v1, %v9751_v11  ;;  %v11954_v27 = vpop.f32.mrb[34].mxu0  ;;  %v19279_v11 = vld [vmem:[#allocation9_spill] sm:$0xff] }
 0x815   : > { %v9951_v31 = vadd.f32 %v9919_v46, %v19267_v7  ;;  %v9920_v41 = vadd.f32 %v11954_v27, %v17377_v1  ;;  %v9754_v21 = vpop.f32.mrb[35].mxu0 }
 0x816   : > { %v9949_v47 = vadd.f32 %v9917_v10, %v19268_v45  ;;  %v9918_v49 = vadd.f32 %v17377_v1, %v9754_v21 }
 0x817   : > { %v9983_v24 = vmax.f32 %v9951_v31, 0.0  ;;  %v9952_v63 = vadd.f32 %v9920_v41, %v19269_v55  ;;  %v19280_v31 = vld [vmem:[#allocation6_spill] sm:$0xff]  ;;  %v19282_v55 = vld [vmem:[#allocation7_spill] sm:$0xff] }
 0x818   : > { %v9981_v23 = vmax.f32 %v9949_v47, 0.0  ;;  %v9950_v19 = vadd.f32 %v9918_v49, %v19270_v18  ;;  %v19281_v47 = vld [vmem:[#allocation51_spill] sm:$0xff] }
 0x819   : > { %10015 = vst [vmem:[%s17388_s8 + $0x10] sm:$0xff] %v9983_v24  ;;  %v9984_v50 = vmax.f32 %v9952_v63, 0.0 }
 0x81a   : > { %10013 = vst [vmem:[%s17388_s8] sm:$0xff] %v9981_v23  ;;  %v9982_v26 = vmax.f32 %v9950_v19, 0.0  ;;  %v11957_v40 = vpop.f32.mrb[36].mxu0 }
 0x81b   : > { %10016 = vst [vmem:[%s17388_s8 + $0x18] sm:$0xff] %v9984_v50  ;;  %v9923_v25 = vadd.f32 %v11957_v40, %v17377_v1  ;;  %v9767_v38 = vpop.f32.mrb[37].mxu0 }
 0x81c   : > { %10014 = vst [vmem:[%s17388_s8 + $0x8] sm:$0xff] %v9982_v26  ;;  %v9921_v36 = vadd.f32 %v17377_v1, %v9767_v38  ;;  %v11958_v16 = vpop.f32.mrb[38].mxu0  ;;  %v19283_v38 = vld [vmem:[#allocation75_spill] sm:$0xff] }
 0x81d   : > { %v9955_v53 = vadd.f32 %v9923_v25, %v19271_v35  ;;  %v9924_v56 = vadd.f32 %v11958_v16, %v17377_v1  ;;  %v9770_v52 = vpop.f32.mrb[39].mxu0 }
 0x81e   : > { %v9953_v37 = vadd.f32 %v9921_v36, %v19272_v9  ;;  %v9922_v2 = vadd.f32 %v17377_v1, %v9770_v52 }
 0x81f   : > { %v9987_v6 = vmax.f32 %v9955_v53, 0.0  ;;  %v9956_v13 = vadd.f32 %v9924_v56, %v19273_v54  ;;  %v19284_v53 = vld [vmem:[#allocation26_spill] sm:$0xff] }
 0x820   : > { %v9985_v14 = vmax.f32 %v9953_v37, 0.0  ;;  %v9954_v57 = vadd.f32 %v9922_v2, %v19274_v3  ;;  %v19285_v37 = vld [vmem:[#allocation55_spill] sm:$0xff]  ;;  %v19286_v54 = vld [vmem:[#allocation58_spill] sm:$0xff] }
 0x821   : > { %10019 = vst [vmem:[%s17388_s8 + $0x30] sm:$0xff] %v9987_v6  ;;  %v9988_v8 = vmax.f32 %v9956_v13, 0.0 }
 0x822   : > { %10017 = vst [vmem:[%s17388_s8 + $0x20] sm:$0xff] %v9985_v14  ;;  %v9986_v43 = vmax.f32 %v9954_v57, 0.0  ;;  %v11961_v62 = vpop.f32.mrb[40].mxu0 }
 0x823   : > { %10020 = vst [vmem:[%s17388_s8 + $0x38] sm:$0xff] %v9988_v8  ;;  %v9927_v30 = vadd.f32 %v11961_v62, %v17377_v1  ;;  %v9783_v22 = vpop.f32.mrb[41].mxu0 }
 0x824   : > { %10018 = vst [vmem:[%s17388_s8 + $0x28] sm:$0xff] %v9986_v43  ;;  %v9925_v32 = vadd.f32 %v17377_v1, %v9783_v22  ;;  %v11962_v51 = vpop.f32.mrb[42].mxu0  ;;  %v19287_v22 = vld [vmem:[#allocation54_spill] sm:$0xff] }
 0x825   : > { %v9959_v33 = vadd.f32 %v9927_v30, %v19275_v59  ;;  %v9928_v20 = vadd.f32 %v11962_v51, %v17377_v1  ;;  %v9786_v61 = vpop.f32.mrb[43].mxu0 }
 0x826   : > { %v9957_v15 = vadd.f32 %v9925_v32, %v19276_v17  ;;  %v9926_v29 = vadd.f32 %v17377_v1, %v9786_v61 }
 0x827   : > { %v9991_v39 = vmax.f32 %v9959_v33, 0.0  ;;  %v9960_v12 = vadd.f32 %v9928_v20, %v19277_v60  ;;  %v19288_v33 = vld [vmem:[#allocation48_spill] sm:$0xff]  ;;  %v19290_v60 = vld [vmem:[#allocation50_spill] sm:$0xff] }
 0x828   : > { %v9989_v4 = vmax.f32 %v9957_v15, 0.0  ;;  %v9958_v28 = vadd.f32 %v9926_v29, %v19278_v5  ;;  %v19289_v15 = vld [vmem:[#allocation88_spill] sm:$0xff] }
 0x829   : > { %10023 = vst [vmem:[%s17388_s8 + $0x50] sm:$0xff] %v9991_v39  ;;  %v9992_v44 = vmax.f32 %v9960_v12, 0.0 }
 0x82a   : > { %10021 = vst [vmem:[%s17388_s8 + $0x40] sm:$0xff] %v9989_v4  ;;  %v9990_v34 = vmax.f32 %v9958_v28, 0.0  ;;  %v11965_v0 = vpop.f32.mrb[44].mxu0 }
 0x82b   : > { %10024 = vst [vmem:[%s17388_s8 + $0x58] sm:$0xff] %v9992_v44  ;;  %v9931_v58 = vadd.f32 %v11965_v0, %v17377_v1  ;;  %v9799_v42 = vpop.f32.mrb[45].mxu0 }
 0x82c   : > { %10022 = vst [vmem:[%s17388_s8 + $0x48] sm:$0xff] %v9990_v34  ;;  %v9929_v48 = vadd.f32 %v17377_v1, %v9799_v42  ;;  %v11966_v46 = vpop.f32.mrb[46].mxu0  ;;  %v19291_v42 = vld [vmem:[#allocation60_spill] sm:$0xff] }
 0x82d   : > { %v9963_v10 = vadd.f32 %v9931_v58, %v19279_v11  ;;  %v9932_v27 = vadd.f32 %v11966_v46, %v17377_v1  ;;  %v9802_v7 = vpop.f32.mrb[47].mxu0 }
 0x82e   : > { %v9961_v41 = vadd.f32 %v9929_v48, %v19280_v31  ;;  %v9930_v21 = vadd.f32 %v17377_v1, %v9802_v7 }
 0x82f   : > { %v9995_v45 = vmax.f32 %v9963_v10, 0.0  ;;  %v9964_v49 = vadd.f32 %v9932_v27, %v19281_v47  ;;  %v19292_v10 = vld [vmem:[#allocation89_spill] sm:$0xff] }
 0x830   : > { %v9993_v24 = vmax.f32 %v9961_v41, 0.0  ;;  %v9962_v63 = vadd.f32 %v9930_v21, %v19282_v55  ;;  %v19293_v41 = vld [vmem:[#allocation57_spill] sm:$0xff] }
 0x831   : > { %10027 = vst [vmem:[%s17388_s8 + $0x70] sm:$0xff] %v9995_v45  ;;  %v9996_v23 = vmax.f32 %v9964_v49, 0.0  ;;  %v19294_v47 = vld [vmem:[#allocation49_spill] sm:$0xff] }
 0x832   : > { %10025 = vst [vmem:[%s17388_s8 + $0x60] sm:$0xff] %v9993_v24  ;;  %v9994_v18 = vmax.f32 %v9962_v63, 0.0  ;;  %v11969_v19 = vpop.f32.mrb[48].mxu0 }
 0x833   : > { %10028 = vst [vmem:[%s17388_s8 + $0x78] sm:$0xff] %v9996_v23  ;;  %v9935_v50 = vadd.f32 %v11969_v19, %v17377_v1  ;;  %v9815_v26 = vpop.f32.mrb[49].mxu0 }
 0x834   : > { %10026 = vst [vmem:[%s17388_s8 + $0x68] sm:$0xff] %v9994_v18  ;;  %v9933_v40 = vadd.f32 %v17377_v1, %v9815_v26  ;;  %v11970_v25 = vpop.f32.mrb[50].mxu0  ;;  %v19295_v26 = vld [vmem:[#allocation40_spill] sm:$0xff] }
 0x835   : > { %v9967_v36 = vadd.f32 %v9935_v50, %v19283_v38  ;;  %v9936_v16 = vadd.f32 %v11970_v25, %v17377_v1  ;;  %v9818_v35 = vpop.f32.mrb[51].mxu0 }
 0x836   : > { %v9965_v56 = vadd.f32 %v9933_v40, %v19284_v53  ;;  %v9934_v52 = vadd.f32 %v17377_v1, %v9818_v35 }
 0x837   : > { %v9999_v9 = vmax.f32 %v9967_v36, 0.0  ;;  %v9968_v2 = vadd.f32 %v9936_v16, %v19285_v37  ;;  %v19296_v36 = vld [vmem:[#allocation66_spill] sm:$0xff]  ;;  %v19298_v37 = vld [vmem:[#allocation72_spill] sm:$0xff] }
 0x838   : > { %v9997_v6 = vmax.f32 %v9965_v56, 0.0  ;;  %v9966_v13 = vadd.f32 %v9934_v52, %v19286_v54  ;;  %v19297_v56 = vld [vmem:[#allocation52_spill] sm:$0xff] }
 0x839   : > { %10031 = vst [vmem:[%s17388_s8 + $0x90] sm:$0xff] %v9999_v9  ;;  %v10000_v14 = vmax.f32 %v9968_v2, 0.0 }
 0x83a   : > { %10029 = vst [vmem:[%s17388_s8 + $0x80] sm:$0xff] %v9997_v6  ;;  %v9998_v3 = vmax.f32 %v9966_v13, 0.0  ;;  %v11973_v57 = vpop.f32.mrb[52].mxu0 }
 0x83b   : > { %10032 = vst [vmem:[%s17388_s8 + $0x98] sm:$0xff] %v10000_v14  ;;  %v9939_v8 = vadd.f32 %v11973_v57, %v17377_v1  ;;  %v9831_v43 = vpop.f32.mrb[53].mxu0 }
 0x83c   : > { %10030 = vst [vmem:[%s17388_s8 + $0x88] sm:$0xff] %v9998_v3  ;;  %v9937_v62 = vadd.f32 %v17377_v1, %v9831_v43  ;;  %v11974_v30 = vpop.f32.mrb[54].mxu0 }
 0x83d   : > { %v9971_v32 = vadd.f32 %v9939_v8, %v19287_v22  ;;  %v9940_v51 = vadd.f32 %v11974_v30, %v17377_v1  ;;  %v9834_v59 = vpop.f32.mrb[55].mxu0 }
 0x83e   : > { %v9969_v20 = vadd.f32 %v9937_v62, %v19288_v33  ;;  %v9938_v61 = vadd.f32 %v17377_v1, %v9834_v59 }
 0x83f   : > { %v10003_v17 = vmax.f32 %v9971_v32, 0.0  ;;  %v9972_v29 = vadd.f32 %v9940_v51, %v19289_v15 }
 0x840   : > { %v10001_v39 = vmax.f32 %v9969_v20, 0.0  ;;  %v9970_v12 = vadd.f32 %v9938_v61, %v19290_v60 }
 0x841   : > { %10035 = vst [vmem:[%s17388_s8 + $0xb0] sm:$0xff] %v10003_v17  ;;  %v10004_v4 = vmax.f32 %v9972_v29, 0.0 }
 0x842   : > { %10033 = vst [vmem:[%s17388_s8 + $0xa0] sm:$0xff] %v10001_v39  ;;  %v10002_v5 = vmax.f32 %v9970_v12, 0.0  ;;  %v11977_v28 = vpop.f32.mrb[56].mxu0 }
 0x843   : > { %10036 = vst [vmem:[%s17388_s8 + $0xb8] sm:$0xff] %v10004_v4  ;;  %v9943_v44 = vadd.f32 %v11977_v28, %v17377_v1  ;;  %v9847_v34 = vpop.f32.mrb[57].mxu0 }
 0x844   : > { %10034 = vst [vmem:[%s17388_s8 + $0xa8] sm:$0xff] %v10002_v5  ;;  %v9941_v0 = vadd.f32 %v17377_v1, %v9847_v34  ;;  %v11978_v58 = vpop.f32.mrb[58].mxu0 }
 0x845   : > { %v9975_v48 = vadd.f32 %v9943_v44, %v19291_v42  ;;  %v9944_v46 = vadd.f32 %v11978_v58, %v17377_v1  ;;  %v9850_v11 = vpop.f32.mrb[59].mxu0 }
 0x846   : > { %v9973_v27 = vadd.f32 %v9941_v0, %v19292_v10  ;;  %v9942_v7 = vadd.f32 %v17377_v1, %v9850_v11 }
 0x847   : > { %v10007_v31 = vmax.f32 %v9975_v48, 0.0  ;;  %v9976_v21 = vadd.f32 %v9944_v46, %v19293_v41 }
 0x848   : > { %v10005_v45 = vmax.f32 %v9973_v27, 0.0  ;;  %v9974_v49 = vadd.f32 %v9942_v7, %v19294_v47 }
 0x849   : > { %10039 = vst [vmem:[%s17388_s8 + $0xd0] sm:$0xff] %v10007_v31  ;;  %v10008_v24 = vmax.f32 %v9976_v21, 0.0 }
 0x84a   : > { %10037 = vst [vmem:[%s17388_s8 + $0xc0] sm:$0xff] %v10005_v45  ;;  %v10006_v55 = vmax.f32 %v9974_v49, 0.0  ;;  %v11981_v63 = vpop.f32.mrb[60].mxu0 }
 0x84b   : > { %10040 = vst [vmem:[%s17388_s8 + $0xd8] sm:$0xff] %v10008_v24  ;;  %v9947_v23 = vadd.f32 %v11981_v63, %v17377_v1  ;;  %v9863_v18 = vpop.f32.mrb[61].mxu0 }
 0x84c   : > { %10038 = vst [vmem:[%s17388_s8 + $0xc8] sm:$0xff] %v10006_v55  ;;  %v9945_v19 = vadd.f32 %v17377_v1, %v9863_v18  ;;  %v11982_v50 = vpop.f32.mrb[62].mxu0 }
 0x84d   : > { %v9979_v40 = vadd.f32 %v9947_v23, %v19295_v26  ;;  %v9948_v25 = vadd.f32 %v11982_v50, %v17377_v1  ;;  %v9866_v38 = vpop.f32.mrb[63].mxu0 }
 0x84e   : > { %v9977_v16 = vadd.f32 %v9945_v19, %v19296_v36  ;;  %v9946_v35 = vadd.f32 %v17377_v1, %v9866_v38 }
 0x84f   : > { %v10011_v53 = vmax.f32 %v9979_v40, 0.0  ;;  %v9980_v52 = vadd.f32 %v9948_v25, %v19297_v56 }
 0x850   : > { %v10009_v9 = vmax.f32 %v9977_v16, 0.0  ;;  %v9978_v2 = vadd.f32 %v9946_v35, %v19298_v37 }
 0x851   : > { %10043 = vst [vmem:[%s17388_s8 + $0xf0] sm:$0xff] %v10011_v53  ;;  %v10012_v6 = vmax.f32 %v9980_v52, 0.0 }
 0x852   : > { %10041 = vst [vmem:[%s17388_s8 + $0xe0] sm:$0xff] %v10009_v9  ;;  %v10010_v54 = vmax.f32 %v9978_v2, 0.0 }
 0x853   : > { %10044 = vst [vmem:[%s17388_s8 + $0xf8] sm:$0xff] %v10012_v6 }
 0x854   : > { %10042 = vst [vmem:[%s17388_s8 + $0xe8] sm:$0xff] %v10010_v54 }
 0x855 PF: > { %s17_s24 = sadd.s32 1, %s12791_s24  }
 0x856   : > { %p14_p4 = scmp.ge.s32.totalorder %s17_s24, 4  }
 0x858   :  { %16 = sbr.rel (!%p14_p4) target bundleno = 1 (0x1), region = 102 }

</bundles_post_ra>
